<compile_context>
chip_gen: v7x
topology: tpu7x:2x2x1
jax: 0.10.0
libtpu: 0.0.40
codegen_flags: <defaults>
</compile_context>

<pallas_src>
import functools

import numpy as np

import jax
import jax.numpy as jnp
from jax import lax
from jax.experimental import pallas as pl
from jax.experimental.pallas import tpu as pltpu

MATMUL_DTYPE = jnp.bfloat16   # bf16 operands, f32 accumulation; set to jnp.float32 for exact f32 math
LEAKY_SLOPE = 0.2             # TODO(synk): slope of the 'leaky' act in the original layer factory unknown; using 0.2.
GN_EPS = 1e-5


def _unet_up_kernel(xs_ref, xb_ref, m_ref,
                    up_ref, pad1_ref, pad2_ref, c2p_ref, e2_ref,
                    w1_ref, w2_ref, pv_ref,
                    o_ref, mo_ref,
                    a1_ref, a2_ref,
                    *, k1, H, W, Cin, Cout):
    """One batch element: 2x upsample -> pconv1 -> concat -> pconv2 -> GroupNorm -> LeakyReLU.

    Flattened-lane layout: a padded plane (Hp, Wp) is stored as a single lane axis of length
    Hp*Wp (+ small tail).  A tap (dy, dx) is then just a static lane slice at offset dy*Wp+dx;
    output lanes use stride Wp, and the 2*pad "garbage" columns per row are dropped at the end
    by a constant compaction matmul.
    """
    f32 = jnp.float32
    k2 = 3
    Wp1 = W + 2 * (k1 // 2)
    Wp2 = W + 2
    L1 = H * Wp1                      # conv1 compute lanes (stride Wp1; extra cols discarded later)
    L2 = H * Wp2

    # Packed per-channel params: [b1 | b2 | gamma | beta], each (Cout, 1).
    b1 = pv_ref[:, 0:1]
    b2 = pv_ref[:, 1:2]
    gamma = pv_ref[:, 2:3]
    beta = pv_ref[:, 3:4]

    # ---------------- conv1: PartialConv(upsample(x_small)), identity norm/act ----------------
    # Nearest 2x upsample + zero pad in ONE constant scatter matmul (exact in f32).
    x1p = jnp.dot(xs_ref[0], up_ref[...], preferred_element_type=f32)        # (Cin, F1)
    m1p = jnp.dot(m_ref[0], pad1_ref[...], preferred_element_type=f32)       # (1,   F1)
    xm1 = x1p * m1p                                                          # mask applied ONCE

    # im2col: stack the k1*k1 shifted windows into scratch -> single MXU matmul.
    msum1 = jnp.zeros((1, L1), f32)
    for t in range(k1 * k1):
        off = (t // k1) * Wp1 + (t % k1)
        a1_ref[t * Cin:(t + 1) * Cin, :] = xm1[:, off:off + L1]
        msum1 = msum1 + m1p[:, off:off + L1]
    conv1 = jnp.dot(w1_ref[...], a1_ref[...].astype(w1_ref.dtype),
                    preferred_element_type=f32)                              # (Cout, L1)

    valid1 = (msum1 > 0.0).astype(f32)
    # NOTE: k*k/msum could use pl.reciprocal(..., approx=True) on the EUP; a plain divide is
    # kept for exactness.  jnp.maximum(...,1) assumes a binary mask.
    scale1 = float(k1 * k1) / jnp.maximum(msum1, 1.0)
    x_up = (conv1 * scale1 + b1) * valid1                                    # (Cout, L1), already masked

    # ---------- conv2: PartialConv(cat[x_up, x_big]) + GroupNorm(per-ch) + LeakyReLU ----------
    # Map conv1 results (and its mask) straight into conv2's zero-padded layout -- this also
    # drops conv1's garbage columns -- so there is no HBM round trip between the convs.
    # x_up already carries the valid1 factor, so multiplying the scattered result by m2p would
    # be a no-op (valid1 is 0/1 and the scatter matrix is 0/1 with <=1 one per column): skip it.
    xup_p = jnp.dot(x_up, c2p_ref[...], preferred_element_type=f32)          # (Cout, F2)
    m2p = jnp.dot(valid1, c2p_ref[...], preferred_element_type=f32)          # (1,   F2)
    xb_p = jnp.dot(xb_ref[0], pad2_ref[...], preferred_element_type=f32)     # (Cout, F2)
    xmb = xb_p * m2p                                                         # x_big masked by propagated mask

    msum2 = jnp.zeros((1, L2), f32)
    C2 = 2 * Cout
    for t in range(k2 * k2):
        off = (t // k2) * Wp2 + (t % k2)
        a2_ref[t * C2:t * C2 + Cout, :] = xup_p[:, off:off + L2]             # xcat = [x_up, x_big]
        a2_ref[t * C2 + Cout:(t + 1) * C2, :] = xmb[:, off:off + L2]
        msum2 = msum2 + m2p[:, off:off + L2]
    conv2 = jnp.dot(w2_ref[...], a2_ref[...].astype(w2_ref.dtype),
                    preferred_element_type=f32)                              # (Cout, L2)

    valid2 = (msum2 > 0.0).astype(f32)
    scale2 = float(k2 * k2) / jnp.maximum(msum2, 1.0)
    y = (conv2 * scale2 + b2) * valid2                                       # (Cout, L2)

    # Compact the padded-width lanes back to a dense, lane-dense (Cout, H*W) slab.
    y = jnp.dot(y, e2_ref[...], preferred_element_type=f32)                  # (Cout, H*W)
    mask2 = jnp.dot(valid2, e2_ref[...], preferred_element_type=f32)         # (1,   H*W)

    # GroupNorm(num_groups == Cout) == per-channel, per-sample normalization over H*W.
    # (Hole positions are zeros and ARE included in the stats, matching GroupNorm applied to the
    #  masked partial-conv output in the PyTorch module.)
    mean = jnp.mean(y, axis=1, keepdims=True)
    var = jnp.mean((y - mean) * (y - mean), axis=1, keepdims=True)
    y = (y - mean) * lax.rsqrt(var + GN_EPS)
    y = y * gamma + beta
    y = jnp.where(y >= 0.0, y, LEAKY_SLOPE * y)                              # LeakyReLU

    o_ref[0] = y
    mo_ref[0] = mask2


def _build_scatter_constants(H, W, Hs, Ws, k1):
    """Constant 0/1 matrices implementing upsample / zero-pad / column-compaction as exact matmuls."""
    p1, k2, p2 = k1 // 2, 3, 1
    Hp1, Wp1 = H + 2 * p1, W + 2 * p1
    Hp2, Wp2 = H + 2 * p2, W + 2 * p2
    F1 = Hp1 * Wp1 + 2 * p1          # flattened padded plane (+tail so every tap slice is in-bounds)
    F2 = Hp2 * Wp2 + 2 * p2
    L1, L2 = H * Wp1, H * Wp2
    S, Ss = H * W, Hs * Ws

    up = np.zeros((Ss, F1), np.float32)      # nearest 2x upsample + zero pad (conv1 input)
    for ys in range(Hs):
        for xs in range(Ws):
            for dy in range(2):
                for dx in range(2):
                    up[ys * Ws + xs, (2 * ys + dy + p1) * Wp1 + (2 * xs + dx + p1)] = 1.0

    pad1 = np.zeros((S, F1), np.float32)     # dense H*W -> conv1 padded layout
    pad2 = np.zeros((S, F2), np.float32)     # dense H*W -> conv2 padded layout
    e1 = np.zeros((L1, S), np.float32)       # conv1 compute lanes -> dense H*W
    e2 = np.zeros((L2, S), np.float32)       # conv2 compute lanes -> dense H*W
    for y in range(H):
        for x in range(W):
            s = y * W + x
            pad1[s, (y + p1) * Wp1 + (x + p1)] = 1.0
            pad2[s, (y + p2) * Wp2 + (x + p2)] = 1.0
            e1[y * Wp1 + x, s] = 1.0
            e2[y * Wp2 + x, s] = 1.0

    c2p = e1 @ pad2                          # conv1 lanes -> conv2 padded layout (drops garbage cols)
    return (jnp.asarray(up), jnp.asarray(pad1), jnp.asarray(pad2),
            jnp.asarray(c2p), jnp.asarray(e2))


@functools.partial(jax.jit, static_argnames=("kernel",))
def unet_up_forward(x_small, x_big, m_big, params, *, kernel):
    """UnetUp.forward.  Inputs/outputs are NCHW (PyTorch convention)."""
    N, Cin, Hs, Ws = x_small.shape
    _, Cout, H, W = x_big.shape
    assert (H, W) == (2 * Hs, 2 * Ws), "up_conv performs a 2x upsample"
    assert m_big.shape == (N, 1, H, W)
    # TODO(synk): upsample mode of UpPConvBnActLayer assumed to be nearest-neighbor (2x).

    p1 = kernel // 2
    Wp1, Wp2 = W + 2 * p1, W + 2
    F1 = (H + 2 * p1) * Wp1 + 2 * p1
    F2 = (H + 2) * Wp2 + 2
    L1, L2 = H * Wp1, H * Wp2
    S, Ss = H * W, Hs * Ws
    kk1 = kernel * kernel

    # Lane-dense internal layout: NCHW -> (N, C, H*W) is a pure (contiguous) reshape, no copy.
    xs_f = x_small.reshape(N, Cin, Ss)
    xb_f = x_big.reshape(N, Cout, S)
    m_f = m_big.reshape(N, 1, S)

    up, pad1, pad2, c2p, e2 = _build_scatter_constants(H, W, Hs, Ws, kernel)

    w1 = params["w1"].astype(MATMUL_DTYPE)
    w2 = params["w2"].astype(MATMUL_DTYPE)
    # Pack per-channel vectors into a single small operand: [b1 | b2 | gamma | beta].
    pvec = jnp.concatenate(
        [params["b1"], params["b2"], params["gamma"], params["beta"]], axis=1)   # (Cout, 4)

    kernel_fn = functools.partial(_unet_up_kernel, k1=kernel, H=H, W=W, Cin=Cin, Cout=Cout)

    out_f, mask_f = pl.pallas_call(
        kernel_fn,
        out_shape=(jax.ShapeDtypeStruct((N, Cout, S), jnp.float32),
                   jax.ShapeDtypeStruct((N, 1, S), jnp.float32)),
        grid=(N,),
        in_specs=[
            pl.BlockSpec((1, Cin, Ss), lambda n: (n, 0, 0)),        # x_small (flattened)
            pl.BlockSpec((1, Cout, S), lambda n: (n, 0, 0)),        # x_big   (flattened)
            pl.BlockSpec((1, 1, S), lambda n: (n, 0, 0)),           # m_big   (flattened)
            pl.BlockSpec((Ss, F1), lambda n: (0, 0)),               # upsample+pad scatter
            pl.BlockSpec((S, F1), lambda n: (0, 0)),                # pad -> conv1 layout
            pl.BlockSpec((S, F2), lambda n: (0, 0)),                # pad -> conv2 layout
            pl.BlockSpec((L1, F2), lambda n: (0, 0)),               # conv1 lanes -> conv2 layout
            pl.BlockSpec((L2, S), lambda n: (0, 0)),                # compaction
            pl.BlockSpec((Cout, kk1 * Cin), lambda n: (0, 0)),      # w1 (im2col-packed)
            pl.BlockSpec((Cout, 9 * 2 * Cout), lambda n: (0, 0)),   # w2 (im2col-packed)
            pl.BlockSpec((Cout, 4), lambda n: (0, 0)),              # [b1 | b2 | gamma | beta]
        ],
        out_specs=(pl.BlockSpec((1, Cout, S), lambda n: (n, 0, 0)),
                   pl.BlockSpec((1, 1, S), lambda n: (n, 0, 0))),
        scratch_shapes=[pltpu.VMEM((kk1 * Cin, L1), jnp.float32),       # conv1 im2col operand
                        pltpu.VMEM((9 * 2 * Cout, L2), jnp.float32)],   # conv2 im2col operand
        compiler_params=pltpu.CompilerParams(dimension_semantics=("parallel",)),
        # TODO(synk): at realistic UNet resolutions the constant scatter matmuls scale O((H*W)^2);
        # there, tile H into row bands with a (k-1)-row halo, add the band as a second "parallel"
        # grid axis (v7x 2-TC load balance) and set vmem_limit_bytes explicitly; full-plane blocks
        # and scatter matmuls are only the right call at these small, lane-starved sizes.
    )(xs_f, xb_f, m_f, up, pad1, pad2, c2p, e2, w1, w2, pvec)

    return out_f.reshape(N, Cout, H, W), mask_f.reshape(N, 1, H, W)


def _torch_weight_to_matrix(w_oihw):
    """(Cout, Cin, kh, kw) PyTorch conv weight -> (Cout, kh*kw*Cin) im2col-packed matrix."""
    Cout, Cin, kh, kw = w_oihw.shape
    return jnp.transpose(w_oihw, (0, 2, 3, 1)).reshape(Cout, kh * kw * Cin)


def init_params(key, in_filter, out_filter, kernel):
    k1, k2, k3, k4 = jax.random.split(key, 4)
    w1 = 0.1 * jax.random.normal(k1, (out_filter, in_filter, kernel, kernel), jnp.float32)
    b1 = 0.1 * jax.random.normal(k2, (out_filter,), jnp.float32)
    w2 = 0.1 * jax.random.normal(k3, (out_filter, 2 * out_filter, 3, 3), jnp.float32)
    b2 = 0.1 * jax.random.normal(k4, (out_filter,), jnp.float32)
    return {"w1": _torch_weight_to_matrix(w1), "b1": b1.reshape(out_filter, 1),
            "w2": _torch_weight_to_matrix(w2), "b2": b2.reshape(out_filter, 1),
            "gamma": jnp.ones((out_filter, 1), jnp.float32),    # GroupNorm default init
            "beta": jnp.zeros((out_filter, 1), jnp.float32)}


if __name__ == "__main__":
    N = 2
    in_filter, out_filter, kernel = 8, 4, 3
    H = W = 16               # big resolution
    Hs, Ws = H // 2, W // 2  # small resolution

    key = jax.random.PRNGKey(0)
    k_xs, k_xb, k_m, k_p = jax.random.split(key, 4)
    x_small = jax.random.normal(k_xs, (N, in_filter, Hs, Ws), jnp.float32)
    x_big = jax.random.normal(k_xb, (N, out_filter, H, W), jnp.float32)
    m_big = (jax.random.uniform(k_m, (N, 1, H, W)) > 0.3).astype(jnp.float32)

    params = init_params(k_p, in_filter, out_filter, kernel)

    out, mask = unet_up_forward(x_small, x_big, m_big, params, kernel=kernel)
    jax.block_until_ready((out, mask))
    assert out.shape == (N, out_filter, H, W) and mask.shape == (N, 1, H, W)
    assert bool(jnp.all(jnp.isfinite(out))) and bool(jnp.all(jnp.isfinite(mask)))
    # Mask must stay binary after two partial convs.
    assert bool(jnp.all((mask == 0.0) | (mask == 1.0)))
    print("KERNEL_OK")
</pallas_src>

<mosaic_0001>
module attributes {stable_mosaic.version = 11 : i64} {
  func.func @_unet_up_kernel(%arg0: i32, %arg1: memref<1x8x64xf32, #tpu.memory_space<vmem>>, %arg2: memref<1x4x256xf32, #tpu.memory_space<vmem>>, %arg3: memref<1x1x256xf32, #tpu.memory_space<vmem>>, %arg4: memref<64x326xf32, #tpu.memory_space<vmem>>, %arg5: memref<256x326xf32, #tpu.memory_space<vmem>>, %arg6: memref<256x326xf32, #tpu.memory_space<vmem>>, %arg7: memref<288x326xf32, #tpu.memory_space<vmem>>, %arg8: memref<288x256xf32, #tpu.memory_space<vmem>>, %arg9: memref<4x72xbf16, #tpu.memory_space<vmem>>, %arg10: memref<4x72xbf16, #tpu.memory_space<vmem>>, %arg11: memref<4x4xf32, #tpu.memory_space<vmem>>, %arg12: memref<1x4x256xf32, #tpu.memory_space<vmem>>, %arg13: memref<1x1x256xf32, #tpu.memory_space<vmem>>, %arg14: memref<72x288xf32, #tpu.memory_space<vmem>>, %arg15: memref<72x288xf32, #tpu.memory_space<vmem>>) attributes {dimension_semantics = [#tpu.dimension_semantics<parallel>], iteration_bounds = array<i64: 2>, scalar_prefetch = 0 : i64, scratch_operands = 2 : i64, tpu.core_type = #tpu.core_type<tc>, window_params = [{transform_indices = @transform_0, window_bounds = array<i64: 1, 8, 64>}, {transform_indices = @transform_1, window_bounds = array<i64: 1, 4, 256>}, {transform_indices = @transform_2, window_bounds = array<i64: 1, 1, 256>}, {pipeline_mode = #tpu.pipeline_mode<synchronous>, transform_indices = @transform_3, window_bounds = array<i64: 64, 326>}, {pipeline_mode = #tpu.pipeline_mode<synchronous>, transform_indices = @transform_4, window_bounds = array<i64: 256, 326>}, {pipeline_mode = #tpu.pipeline_mode<synchronous>, transform_indices = @transform_5, window_bounds = array<i64: 256, 326>}, {pipeline_mode = #tpu.pipeline_mode<synchronous>, transform_indices = @transform_6, window_bounds = array<i64: 288, 326>}, {pipeline_mode = #tpu.pipeline_mode<synchronous>, transform_indices = @transform_7, window_bounds = array<i64: 288, 256>}, {pipeline_mode = #tpu.pipeline_mode<synchronous>, transform_indices = @transform_8, window_bounds = array<i64: 4, 72>}, {pipeline_mode = #tpu.pipeline_mode<synchronous>, transform_indices = @transform_9, window_bounds = array<i64: 4, 72>}, {pipeline_mode = #tpu.pipeline_mode<synchronous>, transform_indices = @transform_10, window_bounds = array<i64: 4, 4>}, {transform_indices = @transform_11, window_bounds = array<i64: 1, 4, 256>}, {transform_indices = @transform_12, window_bounds = array<i64: 1, 1, 256>}]} {
    %c0 = arith.constant 0 : index
    %c0_0 = arith.constant 0 : index
    %0 = vector.load %arg11[%c0, %c0_0] : memref<4x4xf32, #tpu.memory_space<vmem>>, vector<4x1xf32>
    %c0_1 = arith.constant 0 : index
    %c1 = arith.constant 1 : index
    %1 = vector.load %arg11[%c0_1, %c1] : memref<4x4xf32, #tpu.memory_space<vmem>>, vector<4x1xf32>
    %c0_2 = arith.constant 0 : index
    %c2 = arith.constant 2 : index
    %2 = vector.load %arg11[%c0_2, %c2] : memref<4x4xf32, #tpu.memory_space<vmem>>, vector<4x1xf32>
    %c0_3 = arith.constant 0 : index
    %c3 = arith.constant 3 : index
    %3 = vector.load %arg11[%c0_3, %c3] : memref<4x4xf32, #tpu.memory_space<vmem>>, vector<4x1xf32>
    %c0_4 = arith.constant 0 : index
    %c0_5 = arith.constant 0 : index
    %c0_6 = arith.constant 0 : index
    %4 = vector.load %arg1[%c0_4, %c0_5, %c0_6] : memref<1x8x64xf32, #tpu.memory_space<vmem>>, vector<1x8x64xf32>
    %5 = vector.shape_cast %4 : vector<1x8x64xf32> to vector<8x64xf32>
    %c0_7 = arith.constant 0 : index
    %c0_8 = arith.constant 0 : index
    %6 = vector.load %arg4[%c0_7, %c0_8] : memref<64x326xf32, #tpu.memory_space<vmem>>, vector<64x326xf32>
    %cst = arith.constant dense<0.000000e+00> : vector<8x326xf32>
    %7 = tpu.matmul %5, %6, %cst {dimension_numbers = #tpu.dot_dimension_numbers<[1], [0], [0], [1], [0, 0, 1, 1], [], []>} : vector<8x64xf32>, vector<64x326xf32>, vector<8x326xf32> -> vector<8x326xf32>
    %c0_9 = arith.constant 0 : index
    %c0_10 = arith.constant 0 : index
    %c0_11 = arith.constant 0 : index
    %8 = vector.load %arg3[%c0_9, %c0_10, %c0_11] : memref<1x1x256xf32, #tpu.memory_space<vmem>>, vector<1x1x256xf32>
    %9 = vector.shape_cast %8 : vector<1x1x256xf32> to vector<1x256xf32>
    %c0_12 = arith.constant 0 : index
    %c0_13 = arith.constant 0 : index
    %10 = vector.load %arg5[%c0_12, %c0_13] : memref<256x326xf32, #tpu.memory_space<vmem>>, vector<256x326xf32>
    %cst_14 = arith.constant dense<0.000000e+00> : vector<1x326xf32>
    %11 = tpu.matmul %9, %10, %cst_14 {dimension_numbers = #tpu.dot_dimension_numbers<[1], [0], [0], [1], [0, 0, 1, 1], [], []>} : vector<1x256xf32>, vector<256x326xf32>, vector<1x326xf32> -> vector<1x326xf32>
    %12 = vector.broadcast %11 : vector<1x326xf32> to vector<8x326xf32>
    %13 = arith.mulf %7, %12 : vector<8x326xf32>
    %cst_15 = arith.constant 0.000000e+00 : f32
    %14 = vector.broadcast %cst_15 : f32 to vector<1x288xf32>
    %15 = vector.extract_strided_slice %13 {offsets = [0, 0], sizes = [8, 288], strides = [1, 1]} : vector<8x326xf32> to vector<8x288xf32>
    %c0_16 = arith.constant 0 : index
    %c0_17 = arith.constant 0 : index
    %16 = vector.load %arg14[%c0_16, %c0_17] : memref<72x288xf32, #tpu.memory_space<vmem>>, vector<8x288xf32>
    tpu.vector_store %arg14[%c0_16, %c0_17], %15 {strides = array<i32>} : memref<72x288xf32, #tpu.memory_space<vmem>>, vector<8x288xf32>,
    %17 = vector.extract_strided_slice %11 {offsets = [0, 0], sizes = [1, 288], strides = [1, 1]} : vector<1x326xf32> to vector<1x288xf32>
    %18 = arith.addf %14, %17 : vector<1x288xf32>
    %19 = vector.extract_strided_slice %13 {offsets = [0, 1], sizes = [8, 288], strides = [1, 1]} : vector<8x326xf32> to vector<8x288xf32>
    %c8 = arith.constant 8 : index
    %c0_18 = arith.constant 0 : index
    %20 = vector.load %arg14[%c8, %c0_18] : memref<72x288xf32, #tpu.memory_space<vmem>>, vector<8x288xf32>
    tpu.vector_store %arg14[%c8, %c0_18], %19 {strides = array<i32>} : memref<72x288xf32, #tpu.memory_space<vmem>>, vector<8x288xf32>,
    %21 = vector.extract_strided_slice %11 {offsets = [0, 1], sizes = [1, 288], strides = [1, 1]} : vector<1x326xf32> to vector<1x288xf32>
    %22 = arith.addf %18, %21 : vector<1x288xf32>
    %23 = vector.extract_strided_slice %13 {offsets = [0, 2], sizes = [8, 288], strides = [1, 1]} : vector<8x326xf32> to vector<8x288xf32>
    %c16 = arith.constant 16 : index
    %c0_19 = arith.constant 0 : index
    %24 = vector.load %arg14[%c16, %c0_19] : memref<72x288xf32, #tpu.memory_space<vmem>>, vector<8x288xf32>
    tpu.vector_store %arg14[%c16, %c0_19], %23 {strides = array<i32>} : memref<72x288xf32, #tpu.memory_space<vmem>>, vector<8x288xf32>,
    %25 = vector.extract_strided_slice %11 {offsets = [0, 2], sizes = [1, 288], strides = [1, 1]} : vector<1x326xf32> to vector<1x288xf32>
    %26 = arith.addf %22, %25 : vector<1x288xf32>
    %27 = vector.extract_strided_slice %13 {offsets = [0, 18], sizes = [8, 288], strides = [1, 1]} : vector<8x326xf32> to vector<8x288xf32>
    %c24 = arith.constant 24 : index
    %c0_20 = arith.constant 0 : index
    %28 = vector.load %arg14[%c24, %c0_20] : memref<72x288xf32, #tpu.memory_space<vmem>>, vector<8x288xf32>
    tpu.vector_store %arg14[%c24, %c0_20], %27 {strides = array<i32>} : memref<72x288xf32, #tpu.memory_space<vmem>>, vector<8x288xf32>,
    %29 = vector.extract_strided_slice %11 {offsets = [0, 18], sizes = [1, 288], strides = [1, 1]} : vector<1x326xf32> to vector<1x288xf32>
    %30 = arith.addf %26, %29 : vector<1x288xf32>
    %31 = vector.extract_strided_slice %13 {offsets = [0, 19], sizes = [8, 288], strides = [1, 1]} : vector<8x326xf32> to vector<8x288xf32>
    %c32 = arith.constant 32 : index
    %c0_21 = arith.constant 0 : index
    %32 = vector.load %arg14[%c32, %c0_21] : memref<72x288xf32, #tpu.memory_space<vmem>>, vector<8x288xf32>
    tpu.vector_store %arg14[%c32, %c0_21], %31 {strides = array<i32>} : memref<72x288xf32, #tpu.memory_space<vmem>>, vector<8x288xf32>,
    %33 = vector.extract_strided_slice %11 {offsets = [0, 19], sizes = [1, 288], strides = [1, 1]} : vector<1x326xf32> to vector<1x288xf32>
    %34 = arith.addf %30, %33 : vector<1x288xf32>
    %35 = vector.extract_strided_slice %13 {offsets = [0, 20], sizes = [8, 288], strides = [1, 1]} : vector<8x326xf32> to vector<8x288xf32>
    %c40 = arith.constant 40 : index
    %c0_22 = arith.constant 0 : index
    %36 = vector.load %arg14[%c40, %c0_22] : memref<72x288xf32, #tpu.memory_space<vmem>>, vector<8x288xf32>
    tpu.vector_store %arg14[%c40, %c0_22], %35 {strides = array<i32>} : memref<72x288xf32, #tpu.memory_space<vmem>>, vector<8x288xf32>,
    %37 = vector.extract_strided_slice %11 {offsets = [0, 20], sizes = [1, 288], strides = [1, 1]} : vector<1x326xf32> to vector<1x288xf32>
    %38 = arith.addf %34, %37 : vector<1x288xf32>
    %39 = vector.extract_strided_slice %13 {offsets = [0, 36], sizes = [8, 288], strides = [1, 1]} : vector<8x326xf32> to vector<8x288xf32>
    %c48 = arith.constant 48 : index
    %c0_23 = arith.constant 0 : index
    %40 = vector.load %arg14[%c48, %c0_23] : memref<72x288xf32, #tpu.memory_space<vmem>>, vector<8x288xf32>
    tpu.vector_store %arg14[%c48, %c0_23], %39 {strides = array<i32>} : memref<72x288xf32, #tpu.memory_space<vmem>>, vector<8x288xf32>,
    %41 = vector.extract_strided_slice %11 {offsets = [0, 36], sizes = [1, 288], strides = [1, 1]} : vector<1x326xf32> to vector<1x288xf32>
    %42 = arith.addf %38, %41 : vector<1x288xf32>
    %43 = vector.extract_strided_slice %13 {offsets = [0, 37], sizes = [8, 288], strides = [1, 1]} : vector<8x326xf32> to vector<8x288xf32>
    %c56 = arith.constant 56 : index
    %c0_24 = arith.constant 0 : index
    %44 = vector.load %arg14[%c56, %c0_24] : memref<72x288xf32, #tpu.memory_space<vmem>>, vector<8x288xf32>
    tpu.vector_store %arg14[%c56, %c0_24], %43 {strides = array<i32>} : memref<72x288xf32, #tpu.memory_space<vmem>>, vector<8x288xf32>,
    %45 = vector.extract_strided_slice %11 {offsets = [0, 37], sizes = [1, 288], strides = [1, 1]} : vector<1x326xf32> to vector<1x288xf32>
    %46 = arith.addf %42, %45 : vector<1x288xf32>
    %47 = vector.extract_strided_slice %13 {offsets = [0, 38], sizes = [8, 288], strides = [1, 1]} : vector<8x326xf32> to vector<8x288xf32>
    %c64 = arith.constant 64 : index
    %c0_25 = arith.constant 0 : index
    %48 = vector.load %arg14[%c64, %c0_25] : memref<72x288xf32, #tpu.memory_space<vmem>>, vector<8x288xf32>
    tpu.vector_store %arg14[%c64, %c0_25], %47 {strides = array<i32>} : memref<72x288xf32, #tpu.memory_space<vmem>>, vector<8x288xf32>,
    %49 = vector.extract_strided_slice %11 {offsets = [0, 38], sizes = [1, 288], strides = [1, 1]} : vector<1x326xf32> to vector<1x288xf32>
    %50 = arith.addf %46, %49 : vector<1x288xf32>
    %c0_26 = arith.constant 0 : index
    %c0_27 = arith.constant 0 : index
    %51 = vector.load %arg9[%c0_26, %c0_27] : memref<4x72xbf16, #tpu.memory_space<vmem>>, vector<4x72xbf16>
    %c0_28 = arith.constant 0 : index
    %c0_29 = arith.constant 0 : index
    %52 = vector.load %arg14[%c0_28, %c0_29] : memref<72x288xf32, #tpu.memory_space<vmem>>, vector<72x288xf32>
    %53 = arith.truncf %52 : vector<72x288xf32> to vector<72x288xbf16>
    %cst_30 = arith.constant dense<0.000000e+00> : vector<4x288xf32>
    %54 = tpu.matmul %51, %53, %cst_30 {dimension_numbers = #tpu.dot_dimension_numbers<[1], [0], [0], [1], [0, 0, 1, 1], [], []>} : vector<4x72xbf16>, vector<72x288xbf16>, vector<4x288xf32> -> vector<4x288xf32>
    %cst_31 = arith.constant 0.000000e+00 : f32
    %55 = vector.broadcast %cst_31 : f32 to vector<1x288xf32>
    %56 = arith.cmpf ogt, %50, %55 : vector<1x288xf32>
    %57 = arith.extui %56 : vector<1x288xi1> to vector<1x288xi32>
    %58 = arith.sitofp %57 : vector<1x288xi32> to vector<1x288xf32>
    %cst_32 = arith.constant 1.000000e+00 : f32
    %59 = vector.broadcast %cst_32 : f32 to vector<1x288xf32>
    %60 = arith.maximumf %50, %59 : vector<1x288xf32>
    %cst_33 = arith.constant 9.000000e+00 : f32
    %61 = vector.broadcast %cst_33 : f32 to vector<1x288xf32>
    %62 = arith.divf %61, %60 : vector<1x288xf32>
    %63 = vector.broadcast %62 : vector<1x288xf32> to vector<4x288xf32>
    %64 = arith.mulf %54, %63 : vector<4x288xf32>
    %65 = vector.broadcast %0 : vector<4x1xf32> to vector<4x288xf32>
    %66 = arith.addf %64, %65 : vector<4x288xf32>
    %67 = vector.broadcast %58 : vector<1x288xf32> to vector<4x288xf32>
    %68 = arith.mulf %66, %67 : vector<4x288xf32>
    %c0_34 = arith.constant 0 : index
    %c0_35 = arith.constant 0 : index
    %69 = vector.load %arg7[%c0_34, %c0_35] : memref<288x326xf32, #tpu.memory_space<vmem>>, vector<288x326xf32>
    %cst_36 = arith.constant dense<0.000000e+00> : vector<4x326xf32>
    %70 = tpu.matmul %68, %69, %cst_36 {dimension_numbers = #tpu.dot_dimension_numbers<[1], [0], [0], [1], [0, 0, 1, 1], [], []>} : vector<4x288xf32>, vector<288x326xf32>, vector<4x326xf32> -> vector<4x326xf32>
    %c0_37 = arith.constant 0 : index
    %c0_38 = arith.constant 0 : index
    %71 = vector.load %arg7[%c0_37, %c0_38] : memref<288x326xf32, #tpu.memory_space<vmem>>, vector<288x326xf32>
    %cst_39 = arith.constant dense<0.000000e+00> : vector<1x326xf32>
    %72 = tpu.matmul %58, %71, %cst_39 {dimension_numbers = #tpu.dot_dimension_numbers<[1], [0], [0], [1], [0, 0, 1, 1], [], []>} : vector<1x288xf32>, vector<288x326xf32>, vector<1x326xf32> -> vector<1x326xf32>
    %c0_40 = arith.constant 0 : index
    %c0_41 = arith.constant 0 : index
    %c0_42 = arith.constant 0 : index
    %73 = vector.load %arg2[%c0_40, %c0_41, %c0_42] : memref<1x4x256xf32, #tpu.memory_space<vmem>>, vector<1x4x256xf32>
    %74 = vector.shape_cast %73 : vector<1x4x256xf32> to vector<4x256xf32>
    %c0_43 = arith.constant 0 : index
    %c0_44 = arith.constant 0 : index
    %75 = vector.load %arg6[%c0_43, %c0_44] : memref<256x326xf32, #tpu.memory_space<vmem>>, vector<256x326xf32>
    %cst_45 = arith.constant dense<0.000000e+00> : vector<4x326xf32>
    %76 = tpu.matmul %74, %75, %cst_45 {dimension_numbers = #tpu.dot_dimension_numbers<[1], [0], [0], [1], [0, 0, 1, 1], [], []>} : vector<4x256xf32>, vector<256x326xf32>, vector<4x326xf32> -> vector<4x326xf32>
    %77 = vector.broadcast %72 : vector<1x326xf32> to vector<4x326xf32>
    %78 = arith.mulf %76, %77 : vector<4x326xf32>
    %cst_46 = arith.constant 0.000000e+00 : f32
    %79 = vector.broadcast %cst_46 : f32 to vector<1x288xf32>
    %80 = vector.extract_strided_slice %70 {offsets = [0, 0], sizes = [4, 288], strides = [1, 1]} : vector<4x326xf32> to vector<4x288xf32>
    %c0_47 = arith.constant 0 : index
    %c0_48 = arith.constant 0 : index
    %81 = vector.load %arg15[%c0_47, %c0_48] : memref<72x288xf32, #tpu.memory_space<vmem>>, vector<4x288xf32>
    tpu.vector_store %arg15[%c0_47, %c0_48], %80 {strides = array<i32>} : memref<72x288xf32, #tpu.memory_space<vmem>>, vector<4x288xf32>,
    %82 = vector.extract_strided_slice %78 {offsets = [0, 0], sizes = [4, 288], strides = [1, 1]} : vector<4x326xf32> to vector<4x288xf32>
    %c4 = arith.constant 4 : index
    %c0_49 = arith.constant 0 : index
    %83 = vector.load %arg15[%c4, %c0_49] : memref<72x288xf32, #tpu.memory_space<vmem>>, vector<4x288xf32>
    tpu.vector_store %arg15[%c4, %c0_49], %82 {strides = array<i32>} : memref<72x288xf32, #tpu.memory_space<vmem>>, vector<4x288xf32>,
    %84 = vector.extract_strided_slice %72 {offsets = [0, 0], sizes = [1, 288], strides = [1, 1]} : vector<1x326xf32> to vector<1x288xf32>
    %85 = arith.addf %79, %84 : vector<1x288xf32>
    %86 = vector.extract_strided_slice %70 {offsets = [0, 1], sizes = [4, 288], strides = [1, 1]} : vector<4x326xf32> to vector<4x288xf32>
    %c8_50 = arith.constant 8 : index
    %c0_51 = arith.constant 0 : index
    %87 = vector.load %arg15[%c8_50, %c0_51] : memref<72x288xf32, #tpu.memory_space<vmem>>, vector<4x288xf32>
    tpu.vector_store %arg15[%c8_50, %c0_51], %86 {strides = array<i32>} : memref<72x288xf32, #tpu.memory_space<vmem>>, vector<4x288xf32>,
    %88 = vector.extract_strided_slice %78 {offsets = [0, 1], sizes = [4, 288], strides = [1, 1]} : vector<4x326xf32> to vector<4x288xf32>
    %c12 = arith.constant 12 : index
    %c0_52 = arith.constant 0 : index
    %89 = vector.load %arg15[%c12, %c0_52] : memref<72x288xf32, #tpu.memory_space<vmem>>, vector<4x288xf32>
    tpu.vector_store %arg15[%c12, %c0_52], %88 {strides = array<i32>} : memref<72x288xf32, #tpu.memory_space<vmem>>, vector<4x288xf32>,
    %90 = vector.extract_strided_slice %72 {offsets = [0, 1], sizes = [1, 288], strides = [1, 1]} : vector<1x326xf32> to vector<1x288xf32>
    %91 = arith.addf %85, %90 : vector<1x288xf32>
    %92 = vector.extract_strided_slice %70 {offsets = [0, 2], sizes = [4, 288], strides = [1, 1]} : vector<4x326xf32> to vector<4x288xf32>
    %c16_53 = arith.constant 16 : index
    %c0_54 = arith.constant 0 : index
    %93 = vector.load %arg15[%c16_53, %c0_54] : memref<72x288xf32, #tpu.memory_space<vmem>>, vector<4x288xf32>
    tpu.vector_store %arg15[%c16_53, %c0_54], %92 {strides = array<i32>} : memref<72x288xf32, #tpu.memory_space<vmem>>, vector<4x288xf32>,
    %94 = vector.extract_strided_slice %78 {offsets = [0, 2], sizes = [4, 288], strides = [1, 1]} : vector<4x326xf32> to vector<4x288xf32>
    %c20 = arith.constant 20 : index
    %c0_55 = arith.constant 0 : index
    %95 = vector.load %arg15[%c20, %c0_55] : memref<72x288xf32, #tpu.memory_space<vmem>>, vector<4x288xf32>
    tpu.vector_store %arg15[%c20, %c0_55], %94 {strides = array<i32>} : memref<72x288xf32, #tpu.memory_space<vmem>>, vector<4x288xf32>,
    %96 = vector.extract_strided_slice %72 {offsets = [0, 2], sizes = [1, 288], strides = [1, 1]} : vector<1x326xf32> to vector<1x288xf32>
    %97 = arith.addf %91, %96 : vector<1x288xf32>
    %98 = vector.extract_strided_slice %70 {offsets = [0, 18], sizes = [4, 288], strides = [1, 1]} : vector<4x326xf32> to vector<4x288xf32>
    %c24_56 = arith.constant 24 : index
    %c0_57 = arith.constant 0 : index
    %99 = vector.load %arg15[%c24_56, %c0_57] : memref<72x288xf32, #tpu.memory_space<vmem>>, vector<4x288xf32>
    tpu.vector_store %arg15[%c24_56, %c0_57], %98 {strides = array<i32>} : memref<72x288xf32, #tpu.memory_space<vmem>>, vector<4x288xf32>,
    %100 = vector.extract_strided_slice %78 {offsets = [0, 18], sizes = [4, 288], strides = [1, 1]} : vector<4x326xf32> to vector<4x288xf32>
    %c28 = arith.constant 28 : index
    %c0_58 = arith.constant 0 : index
    %101 = vector.load %arg15[%c28, %c0_58] : memref<72x288xf32, #tpu.memory_space<vmem>>, vector<4x288xf32>
    tpu.vector_store %arg15[%c28, %c0_58], %100 {strides = array<i32>} : memref<72x288xf32, #tpu.memory_space<vmem>>, vector<4x288xf32>,
    %102 = vector.extract_strided_slice %72 {offsets = [0, 18], sizes = [1, 288], strides = [1, 1]} : vector<1x326xf32> to vector<1x288xf32>
    %103 = arith.addf %97, %102 : vector<1x288xf32>
    %104 = vector.extract_strided_slice %70 {offsets = [0, 19], sizes = [4, 288], strides = [1, 1]} : vector<4x326xf32> to vector<4x288xf32>
    %c32_59 = arith.constant 32 : index
    %c0_60 = arith.constant 0 : index
    %105 = vector.load %arg15[%c32_59, %c0_60] : memref<72x288xf32, #tpu.memory_space<vmem>>, vector<4x288xf32>
    tpu.vector_store %arg15[%c32_59, %c0_60], %104 {strides = array<i32>} : memref<72x288xf32, #tpu.memory_space<vmem>>, vector<4x288xf32>,
    %106 = vector.extract_strided_slice %78 {offsets = [0, 19], sizes = [4, 288], strides = [1, 1]} : vector<4x326xf32> to vector<4x288xf32>
    %c36 = arith.constant 36 : index
    %c0_61 = arith.constant 0 : index
    %107 = vector.load %arg15[%c36, %c0_61] : memref<72x288xf32, #tpu.memory_space<vmem>>, vector<4x288xf32>
    tpu.vector_store %arg15[%c36, %c0_61], %106 {strides = array<i32>} : memref<72x288xf32, #tpu.memory_space<vmem>>, vector<4x288xf32>,
    %108 = vector.extract_strided_slice %72 {offsets = [0, 19], sizes = [1, 288], strides = [1, 1]} : vector<1x326xf32> to vector<1x288xf32>
    %109 = arith.addf %103, %108 : vector<1x288xf32>
    %110 = vector.extract_strided_slice %70 {offsets = [0, 20], sizes = [4, 288], strides = [1, 1]} : vector<4x326xf32> to vector<4x288xf32>
    %c40_62 = arith.constant 40 : index
    %c0_63 = arith.constant 0 : index
    %111 = vector.load %arg15[%c40_62, %c0_63] : memref<72x288xf32, #tpu.memory_space<vmem>>, vector<4x288xf32>
    tpu.vector_store %arg15[%c40_62, %c0_63], %110 {strides = array<i32>} : memref<72x288xf32, #tpu.memory_space<vmem>>, vector<4x288xf32>,
    %112 = vector.extract_strided_slice %78 {offsets = [0, 20], sizes = [4, 288], strides = [1, 1]} : vector<4x326xf32> to vector<4x288xf32>
    %c44 = arith.constant 44 : index
    %c0_64 = arith.constant 0 : index
    %113 = vector.load %arg15[%c44, %c0_64] : memref<72x288xf32, #tpu.memory_space<vmem>>, vector<4x288xf32>
    tpu.vector_store %arg15[%c44, %c0_64], %112 {strides = array<i32>} : memref<72x288xf32, #tpu.memory_space<vmem>>, vector<4x288xf32>,
    %114 = vector.extract_strided_slice %72 {offsets = [0, 20], sizes = [1, 288], strides = [1, 1]} : vector<1x326xf32> to vector<1x288xf32>
    %115 = arith.addf %109, %114 : vector<1x288xf32>
    %116 = vector.extract_strided_slice %70 {offsets = [0, 36], sizes = [4, 288], strides = [1, 1]} : vector<4x326xf32> to vector<4x288xf32>
    %c48_65 = arith.constant 48 : index
    %c0_66 = arith.constant 0 : index
    %117 = vector.load %arg15[%c48_65, %c0_66] : memref<72x288xf32, #tpu.memory_space<vmem>>, vector<4x288xf32>
    tpu.vector_store %arg15[%c48_65, %c0_66], %116 {strides = array<i32>} : memref<72x288xf32, #tpu.memory_space<vmem>>, vector<4x288xf32>,
    %118 = vector.extract_strided_slice %78 {offsets = [0, 36], sizes = [4, 288], strides = [1, 1]} : vector<4x326xf32> to vector<4x288xf32>
    %c52 = arith.constant 52 : index
    %c0_67 = arith.constant 0 : index
    %119 = vector.load %arg15[%c52, %c0_67] : memref<72x288xf32, #tpu.memory_space<vmem>>, vector<4x288xf32>
    tpu.vector_store %arg15[%c52, %c0_67], %118 {strides = array<i32>} : memref<72x288xf32, #tpu.memory_space<vmem>>, vector<4x288xf32>,
    %120 = vector.extract_strided_slice %72 {offsets = [0, 36], sizes = [1, 288], strides = [1, 1]} : vector<1x326xf32> to vector<1x288xf32>
    %121 = arith.addf %115, %120 : vector<1x288xf32>
    %122 = vector.extract_strided_slice %70 {offsets = [0, 37], sizes = [4, 288], strides = [1, 1]} : vector<4x326xf32> to vector<4x288xf32>
    %c56_68 = arith.constant 56 : index
    %c0_69 = arith.constant 0 : index
    %123 = vector.load %arg15[%c56_68, %c0_69] : memref<72x288xf32, #tpu.memory_space<vmem>>, vector<4x288xf32>
    tpu.vector_store %arg15[%c56_68, %c0_69], %122 {strides = array<i32>} : memref<72x288xf32, #tpu.memory_space<vmem>>, vector<4x288xf32>,
    %124 = vector.extract_strided_slice %78 {offsets = [0, 37], sizes = [4, 288], strides = [1, 1]} : vector<4x326xf32> to vector<4x288xf32>
    %c60 = arith.constant 60 : index
    %c0_70 = arith.constant 0 : index
    %125 = vector.load %arg15[%c60, %c0_70] : memref<72x288xf32, #tpu.memory_space<vmem>>, vector<4x288xf32>
    tpu.vector_store %arg15[%c60, %c0_70], %124 {strides = array<i32>} : memref<72x288xf32, #tpu.memory_space<vmem>>, vector<4x288xf32>,
    %126 = vector.extract_strided_slice %72 {offsets = [0, 37], sizes = [1, 288], strides = [1, 1]} : vector<1x326xf32> to vector<1x288xf32>
    %127 = arith.addf %121, %126 : vector<1x288xf32>
    %128 = vector.extract_strided_slice %70 {offsets = [0, 38], sizes = [4, 288], strides = [1, 1]} : vector<4x326xf32> to vector<4x288xf32>
    %c64_71 = arith.constant 64 : index
    %c0_72 = arith.constant 0 : index
    %129 = vector.load %arg15[%c64_71, %c0_72] : memref<72x288xf32, #tpu.memory_space<vmem>>, vector<4x288xf32>
    tpu.vector_store %arg15[%c64_71, %c0_72], %128 {strides = array<i32>} : memref<72x288xf32, #tpu.memory_space<vmem>>, vector<4x288xf32>,
    %130 = vector.extract_strided_slice %78 {offsets = [0, 38], sizes = [4, 288], strides = [1, 1]} : vector<4x326xf32> to vector<4x288xf32>
    %c68 = arith.constant 68 : index
    %c0_73 = arith.constant 0 : index
    %131 = vector.load %arg15[%c68, %c0_73] : memref<72x288xf32, #tpu.memory_space<vmem>>, vector<4x288xf32>
    tpu.vector_store %arg15[%c68, %c0_73], %130 {strides = array<i32>} : memref<72x288xf32, #tpu.memory_space<vmem>>, vector<4x288xf32>,
    %132 = vector.extract_strided_slice %72 {offsets = [0, 38], sizes = [1, 288], strides = [1, 1]} : vector<1x326xf32> to vector<1x288xf32>
    %133 = arith.addf %127, %132 : vector<1x288xf32>
    %c0_74 = arith.constant 0 : index
    %c0_75 = arith.constant 0 : index
    %134 = vector.load %arg10[%c0_74, %c0_75] : memref<4x72xbf16, #tpu.memory_space<vmem>>, vector<4x72xbf16>
    %c0_76 = arith.constant 0 : index
    %c0_77 = arith.constant 0 : index
    %135 = vector.load %arg15[%c0_76, %c0_77] : memref<72x288xf32, #tpu.memory_space<vmem>>, vector<72x288xf32>
    %136 = arith.truncf %135 : vector<72x288xf32> to vector<72x288xbf16>
    %cst_78 = arith.constant dense<0.000000e+00> : vector<4x288xf32>
    %137 = tpu.matmul %134, %136, %cst_78 {dimension_numbers = #tpu.dot_dimension_numbers<[1], [0], [0], [1], [0, 0, 1, 1], [], []>} : vector<4x72xbf16>, vector<72x288xbf16>, vector<4x288xf32> -> vector<4x288xf32>
    %cst_79 = arith.constant 0.000000e+00 : f32
    %138 = vector.broadcast %cst_79 : f32 to vector<1x288xf32>
    %139 = arith.cmpf ogt, %133, %138 : vector<1x288xf32>
    %140 = arith.extui %139 : vector<1x288xi1> to vector<1x288xi32>
    %141 = arith.sitofp %140 : vector<1x288xi32> to vector<1x288xf32>
    %cst_80 = arith.constant 1.000000e+00 : f32
    %142 = vector.broadcast %cst_80 : f32 to vector<1x288xf32>
    %143 = arith.maximumf %133, %142 : vector<1x288xf32>
    %cst_81 = arith.constant 9.000000e+00 : f32
    %144 = vector.broadcast %cst_81 : f32 to vector<1x288xf32>
    %145 = arith.divf %144, %143 : vector<1x288xf32>
    %146 = vector.broadcast %145 : vector<1x288xf32> to vector<4x288xf32>
    %147 = arith.mulf %137, %146 : vector<4x288xf32>
    %148 = vector.broadcast %1 : vector<4x1xf32> to vector<4x288xf32>
    %149 = arith.addf %147, %148 : vector<4x288xf32>
    %150 = vector.broadcast %141 : vector<1x288xf32> to vector<4x288xf32>
    %151 = arith.mulf %149, %150 : vector<4x288xf32>
    %c0_82 = arith.constant 0 : index
    %c0_83 = arith.constant 0 : index
    %152 = vector.load %arg8[%c0_82, %c0_83] : memref<288x256xf32, #tpu.memory_space<vmem>>, vector<288x256xf32>
    %cst_84 = arith.constant dense<0.000000e+00> : vector<4x256xf32>
    %153 = tpu.matmul %151, %152, %cst_84 {dimension_numbers = #tpu.dot_dimension_numbers<[1], [0], [0], [1], [0, 0, 1, 1], [], []>} : vector<4x288xf32>, vector<288x256xf32>, vector<4x256xf32> -> vector<4x256xf32>
    %c0_85 = arith.constant 0 : index
    %c0_86 = arith.constant 0 : index
    %154 = vector.load %arg8[%c0_85, %c0_86] : memref<288x256xf32, #tpu.memory_space<vmem>>, vector<288x256xf32>
    %cst_87 = arith.constant dense<0.000000e+00> : vector<1x256xf32>
    %155 = tpu.matmul %141, %154, %cst_87 {dimension_numbers = #tpu.dot_dimension_numbers<[1], [0], [0], [1], [0, 0, 1, 1], [], []>} : vector<1x288xf32>, vector<288x256xf32>, vector<1x256xf32> -> vector<1x256xf32>
    %cst_88 = arith.constant dense<0.000000e+00> : vector<4xf32>
    %156 = vector.multi_reduction <add>, %153, %cst_88 [1] : vector<4x256xf32> to vector<4xf32>
    %157 = vector.shape_cast %156 : vector<4xf32> to vector<4x1xf32>
    %cst_89 = arith.constant 2.560000e+02 : f32
    %158 = vector.broadcast %cst_89 : f32 to vector<4x1xf32>
    %159 = arith.divf %157, %158 : vector<4x1xf32>
    %160 = vector.broadcast %159 : vector<4x1xf32> to vector<4x256xf32>
    %161 = arith.subf %153, %160 : vector<4x256xf32>
    %162 = vector.broadcast %159 : vector<4x1xf32> to vector<4x256xf32>
    %163 = arith.subf %153, %162 : vector<4x256xf32>
    %164 = arith.mulf %161, %163 : vector<4x256xf32>
    %cst_90 = arith.constant dense<0.000000e+00> : vector<4xf32>
    %165 = vector.multi_reduction <add>, %164, %cst_90 [1] : vector<4x256xf32> to vector<4xf32>
    %166 = vector.shape_cast %165 : vector<4xf32> to vector<4x1xf32>
    %cst_91 = arith.constant 2.560000e+02 : f32
    %167 = vector.broadcast %cst_91 : f32 to vector<4x1xf32>
    %168 = arith.divf %166, %167 : vector<4x1xf32>
    %169 = vector.broadcast %159 : vector<4x1xf32> to vector<4x256xf32>
    %170 = arith.subf %153, %169 : vector<4x256xf32>
    %cst_92 = arith.constant 9.99999974E-6 : f32
    %171 = vector.broadcast %cst_92 : f32 to vector<4x1xf32>
    %172 = arith.addf %168, %171 : vector<4x1xf32>
    %173 = math.rsqrt %172 : vector<4x1xf32>
    %174 = vector.broadcast %173 : vector<4x1xf32> to vector<4x256xf32>
    %175 = arith.mulf %170, %174 : vector<4x256xf32>
    %176 = vector.broadcast %2 : vector<4x1xf32> to vector<4x256xf32>
    %177 = arith.mulf %175, %176 : vector<4x256xf32>
    %178 = vector.broadcast %3 : vector<4x1xf32> to vector<4x256xf32>
    %179 = arith.addf %177, %178 : vector<4x256xf32>
    %cst_93 = arith.constant 0.000000e+00 : f32
    %180 = vector.broadcast %cst_93 : f32 to vector<4x256xf32>
    %181 = arith.cmpf oge, %179, %180 : vector<4x256xf32>
    %cst_94 = arith.constant 2.000000e-01 : f32
    %182 = vector.broadcast %cst_94 : f32 to vector<4x256xf32>
    %183 = arith.mulf %182, %179 : vector<4x256xf32>
    %184 = arith.select %181, %179, %183 : vector<4x256xi1>, vector<4x256xf32>
    %c0_95 = arith.constant 0 : index
    %c0_96 = arith.constant 0 : index
    %c0_97 = arith.constant 0 : index
    %185 = vector.load %arg12[%c0_95, %c0_96, %c0_97] : memref<1x4x256xf32, #tpu.memory_space<vmem>>, vector<1x4x256xf32>
    %186 = vector.shape_cast %185 : vector<1x4x256xf32> to vector<4x256xf32>
    %187 = vector.shape_cast %184 : vector<4x256xf32> to vector<1x4x256xf32>
    tpu.vector_store %arg12[%c0_95, %c0_96, %c0_97], %187 {strides = array<i32>} : memref<1x4x256xf32, #tpu.memory_space<vmem>>, vector<1x4x256xf32>,
    %c0_98 = arith.constant 0 : index
    %c0_99 = arith.constant 0 : index
    %c0_100 = arith.constant 0 : index
    %188 = vector.load %arg13[%c0_98, %c0_99, %c0_100] : memref<1x1x256xf32, #tpu.memory_space<vmem>>, vector<1x1x256xf32>
    %189 = vector.shape_cast %188 : vector<1x1x256xf32> to vector<1x256xf32>
    %190 = vector.shape_cast %155 : vector<1x256xf32> to vector<1x1x256xf32>
    tpu.vector_store %arg13[%c0_98, %c0_99, %c0_100], %190 {strides = array<i32>} : memref<1x1x256xf32, #tpu.memory_space<vmem>>, vector<1x1x256xf32>,
    return
  }
  func.func @transform_0(%arg0: i32) -> (i32, i32, i32) {
    %c0_i32 = arith.constant 0 : i32
    %c0_i32_0 = arith.constant 0 : i32
    %c0_i32_1 = arith.constant 0 : i32
    return %arg0, %c0_i32, %c0_i32_0 : i32, i32, i32
  }
  func.func @transform_1(%arg0: i32) -> (i32, i32, i32) {
    %c0_i32 = arith.constant 0 : i32
    %c0_i32_0 = arith.constant 0 : i32
    %c0_i32_1 = arith.constant 0 : i32
    return %arg0, %c0_i32, %c0_i32_0 : i32, i32, i32
  }
  func.func @transform_2(%arg0: i32) -> (i32, i32, i32) {
    %c0_i32 = arith.constant 0 : i32
    %c0_i32_0 = arith.constant 0 : i32
    %c0_i32_1 = arith.constant 0 : i32
    return %arg0, %c0_i32, %c0_i32_0 : i32, i32, i32
  }
  func.func @transform_3(%arg0: i32) -> (i32, i32) {
    %c0_i32 = arith.constant 0 : i32
    %c0_i32_0 = arith.constant 0 : i32
    %c0_i32_1 = arith.constant 0 : i32
    return %c0_i32, %c0_i32_0 : i32, i32
  }
  func.func @transform_4(%arg0: i32) -> (i32, i32) {
    %c0_i32 = arith.constant 0 : i32
    %c0_i32_0 = arith.constant 0 : i32
    %c0_i32_1 = arith.constant 0 : i32
    return %c0_i32, %c0_i32_0 : i32, i32
  }
  func.func @transform_5(%arg0: i32) -> (i32, i32) {
    %c0_i32 = arith.constant 0 : i32
    %c0_i32_0 = arith.constant 0 : i32
    %c0_i32_1 = arith.constant 0 : i32
    return %c0_i32, %c0_i32_0 : i32, i32
  }
  func.func @transform_6(%arg0: i32) -> (i32, i32) {
    %c0_i32 = arith.constant 0 : i32
    %c0_i32_0 = arith.constant 0 : i32
    %c0_i32_1 = arith.constant 0 : i32
    return %c0_i32, %c0_i32_0 : i32, i32
  }
  func.func @transform_7(%arg0: i32) -> (i32, i32) {
    %c0_i32 = arith.constant 0 : i32
    %c0_i32_0 = arith.constant 0 : i32
    %c0_i32_1 = arith.constant 0 : i32
    return %c0_i32, %c0_i32_0 : i32, i32
  }
  func.func @transform_8(%arg0: i32) -> (i32, i32) {
    %c0_i32 = arith.constant 0 : i32
    %c0_i32_0 = arith.constant 0 : i32
    %c0_i32_1 = arith.constant 0 : i32
    return %c0_i32, %c0_i32_0 : i32, i32
  }
  func.func @transform_9(%arg0: i32) -> (i32, i32) {
    %c0_i32 = arith.constant 0 : i32
    %c0_i32_0 = arith.constant 0 : i32
    %c0_i32_1 = arith.constant 0 : i32
    return %c0_i32, %c0_i32_0 : i32, i32
  }
  func.func @transform_10(%arg0: i32) -> (i32, i32) {
    %c0_i32 = arith.constant 0 : i32
    %c0_i32_0 = arith.constant 0 : i32
    %c0_i32_1 = arith.constant 0 : i32
    return %c0_i32, %c0_i32_0 : i32, i32
  }
  func.func @transform_11(%arg0: i32) -> (i32, i32, i32) {
    %c0_i32 = arith.constant 0 : i32
    %c0_i32_0 = arith.constant 0 : i32
    %c0_i32_1 = arith.constant 0 : i32
    return %arg0, %c0_i32, %c0_i32_0 : i32, i32, i32
  }
  func.func @transform_12(%arg0: i32) -> (i32, i32, i32) {
    %c0_i32 = arith.constant 0 : i32
    %c0_i32_0 = arith.constant 0 : i32
    %c0_i32_1 = arith.constant 0 : i32
    return %arg0, %c0_i32, %c0_i32_0 : i32, i32, i32
  }
}

</mosaic_0001>

<bundles_post_ra>
// kernel: unet_up_forward.1
= control target key start
LH: loop header
LB: loop body
LE: loop exit
PB: predicated region body
PF: predicated region fallthrough
CT: control target
= control target key end

     0   :  { %s5814_s0 = inlined_call_operand.vmem [shape: f32[2,8,64], index: 0, kind: input, shape index: {}]   ;;  %s5815_s1 = inlined_call_operand.vmem [shape: f32[2,4,256], index: 1, kind: input, shape index: {}]   ;;  %s5816_s2 = inlined_call_operand.vmem [shape: f32[2,1,256], index: 2, kind: input, shape index: {}]   ;;  %s5817_s3 = inlined_call_operand.vmem [shape: f32[64,326], index: 3, kind: input, shape index: {}]   ;;  %s5818_s4 = inlined_call_operand.hbm [shape: f32[256,326], index: 4, kind: input, shape index: {}, may-alias: {4,5}]   ;;  %s5819_s5 = inlined_call_operand.hbm [shape: f32[256,326], index: 5, kind: input, shape index: {}, may-alias: {4,5}]   ;;  %s5820_s6 = inlined_call_operand.hbm [shape: f32[288,326], index: 6, kind: input, shape index: {}]   ;;  %s5821_s7 = inlined_call_operand.hbm [shape: f32[288,256], index: 7, kind: input, shape index: {}]   ;;  %s5822_s8 = inlined_call_operand.vmem [shape: bf16[4,72], index: 8, kind: input, shape index: {}]   ;;  %s5823_s9 = inlined_call_operand.vmem [shape: bf16[4,72], index: 9, kind: input, shape index: {}]   ;;  %s5824_s10 = inlined_call_operand.vmem [shape: f32[4,4], index: 10, kind: input, shape index: {}]   ;;  %s5825_s11 = inlined_call_operand.vmem [shape: f32[2,4,256], index: 11, kind: output, shape index: {0}]   ;;  %s5826_s12 = inlined_call_operand.vmem [shape: f32[2,1,256], index: 12, kind: output, shape index: {1}]  }
   0x1   :  { %5861 = sst [smem:[#allocation36_spill]] %s5825_s11 }
   0x2   :  { %18 = vsyncpa [#allocation5], 0 }
   0x3   :  { %19 = vsyncpa [#allocation7], 0 }
   0x4   :  { %20 = vsyncpa [#allocation10], 0  ;;  %s4654_s21 = smov 0  }
   0x5 LB: > { %5862 = sst [smem:[#allocation14_spill]] %s4562_s21  ;;  %s4660_s22 = sadd.s32 4294967295, %s4562_s21   ;;  %s4562_s21 = sphi %s4654_s21, %s26_s21  }
   0x6   : > { %p3462_p0 = scmp.ge.s32.totalorder %s4562_s21, 1  ;;  %p329_p1 = scmp.lt.s32.totalorder %s4562_s21, 3 }
   0x7   : > { %p5828_p2 = scmp.eq.s32.totalorder %s4660_s22, 0  ;;  %s4564_s24 = smov [#allocation6]  }
   0x8   : > { %p4665_p3 = pnand %p3462_p0, %p329_p1  ;;  %s357_s25 = sshll.u32 %s4564_s24, 4  ;;  %s4669_s25 = int_to_ptr.vmem [resolvable:$true] %s357_s25 }
   0x9   : > { %s4565_s26 = smov [#allocation4]   ;;  %s4566_s29 = smov [#allocation8]  }
   0xa   : > { %s5863_s23 = scalar_select %p4665_p3, 1, 0 }
   0xb   : > { %p4358_p4 = pneg %p4665_p3  ;;  %s344_s27 = sshll.u32 %s4565_s26, 4  ;;  %s4673_s27 = int_to_ptr.vmem [resolvable:$true] %s344_s27 }
   0xc   : > { %s370_s30 = sshll.u32 %s4566_s29, 4  ;;  %s4567_s13 = smov [#allocation9]   ;;  %s4681_s30 = int_to_ptr.vmem [resolvable:$true] %s370_s30 }
   0xd   : > { %p4677_p5 = pnand %p5828_p2, %p4358_p4  ;;  %s4683_s14 = sshll.u32 %s4567_s13, 4  ;;  %s384_s14 = int_to_ptr.vmem [resolvable:$true] %s4683_s14 }
   0xe   : > { %s4432_s17 = scalar_lea.hbm %s5819_s5, 12288 }
   0xf   : > { %p4433_p6 = scmp.ne.s32.totalorder %s5819_s5, %s4432_s17  ;;  %p4693_p7 = pneg %p4677_p5 }
  0x10   : > { %p4439_p10 = scmp.lt.u32.totalorder %s4432_s17, %s5819_s5 }
  0x11   : > { %p4435_p8 = pnand %p4693_p7, %p4433_p6 }
  0x13   : > { %p4436_p9 = pneg %p4435_p8 }
  0x15   : > { %p4441_p11 = pnand %p4439_p10, %p4436_p9 }
  0x17   : > { %4444 = shalt.err (!%p4441_p11)
}
  0x18   : > { %s4445_s29 = scalar_lea.vmem %s4669_s25, 12288  ;;  %p4453_p1 = scmp.lt.s32.totalorder %s4669_s25, %s4669_s25 }
  0x19   : > { %p4446_p12 = scmp.ne.s32.totalorder %s4669_s25, %s4445_s29  ;;  %p4454_p4 = scmp.lt.s32.totalorder %s4445_s29, %s4445_s29 }
  0x1b   : > { %p4448_p13 = pnand %p4446_p12, %p4693_p7  ;;  %p4455_p6 = por %p4454_p4, %p4453_p1 }
  0x1d   : > { %p4449_p0 = pneg %p4448_p13 }
  0x1f   : > { %p4456_p8 = pnand %p4455_p6, %p4449_p0 }
  0x21   : > { %4459 = shalt.err (!%p4456_p8)
}
  0x22   : > { %s4568_s13 = smov 384   ;;  %s4569_s15 = smov 24  }
  0x23   : > { %4364 = dma.hbm_to_vmem [thread:$0]  (!%p4677_p5), %s5819_s5, 12288, %s4669_s25, [#allocation7], %s4568_s13, %s4568_s13, %s4569_s15  }
  0x24   : > { %s4460_s24 = scalar_lea.hbm %s5818_s4, 12288 }
  0x25   : > { %p4461_p9 = scmp.ne.s32.totalorder %s5818_s4, %s4460_s24  ;;  %p4467_p12 = scmp.lt.u32.totalorder %s4460_s24, %s5818_s4 }
  0x27   : > { %p4463_p10 = pnand %p4461_p9, %p4693_p7 }
  0x29   : > { %p4464_p11 = pneg %p4463_p10 }
  0x2b   : > { %p4469_p13 = pnand %p4467_p12, %p4464_p11 }
  0x2d   : > { %4472 = shalt.err (!%p4469_p13)
}
  0x2e   : > { %s4473_s25 = scalar_lea.vmem %s4673_s27, 12288  ;;  %p4481_p6 = scmp.lt.s32.totalorder %s4673_s27, %s4673_s27 }
  0x2f   : > { %p4474_p0 = scmp.ne.s32.totalorder %s4673_s27, %s4473_s25  ;;  %p4482_p8 = scmp.lt.s32.totalorder %s4473_s25, %s4473_s25 }
  0x31   : > { %p4476_p1 = pnand %p4474_p0, %p4693_p7  ;;  %p4483_p9 = por %p4482_p8, %p4481_p6 }
  0x33   : > { %p4477_p4 = pneg %p4476_p1 }
  0x35   : > { %p4484_p10 = pnand %p4483_p9, %p4477_p4 }
  0x37   : > { %4487 = shalt.err (!%p4484_p10)
}
  0x38   : > { %4361 = dma.hbm_to_vmem [thread:$0]  (!%p4677_p5), %s5818_s4, 12288, %s4673_s27, [#allocation5], %s4568_s13, %s4568_s13, %s4569_s15  }
  0x39   : > { %s4488_s18 = scalar_lea.hbm %s5820_s6, 13824 }
  0x3a   : > { %p4489_p11 = scmp.ne.s32.totalorder %s5820_s6, %s4488_s18  ;;  %p4495_p0 = scmp.lt.u32.totalorder %s4488_s18, %s5820_s6 }
  0x3c   : > { %p4491_p12 = pnand %p4489_p11, %p4693_p7 }
  0x3e   : > { %p4492_p13 = pneg %p4491_p12 }
  0x40   : > { %p4497_p1 = pnand %p4495_p0, %p4492_p13 }
  0x42   : > { %4500 = shalt.err (!%p4497_p1)
}
  0x43   : > { %s4501_s27 = scalar_lea.vmem %s4681_s30, 13824  ;;  %p4509_p9 = scmp.lt.s32.totalorder %s4681_s30, %s4681_s30 }
  0x44   : > { %p4502_p4 = scmp.ne.s32.totalorder %s4681_s30, %s4501_s27  ;;  %p4510_p10 = scmp.lt.s32.totalorder %s4501_s27, %s4501_s27 }
  0x46   : > { %p4504_p6 = pnand %p4502_p4, %p4693_p7  ;;  %p4511_p11 = por %p4510_p10, %p4509_p9 }
  0x48   : > { %p4505_p8 = pneg %p4504_p6 }
  0x4a   : > { %p4512_p12 = pnand %p4511_p11, %p4505_p8 }
  0x4c   : > { %4515 = shalt.err (!%p4512_p12)
}
  0x4d   : > { %4367 = dma.hbm_to_vmem [thread:$0]  (!%p4677_p5), %s5820_s6, 13824, %s4681_s30, [#allocation7], %s4568_s13, %s4568_s13, %s4569_s15  }
  0x4e   : > { %s4516_s17 = scalar_lea.hbm %s5821_s7, 9216 }
  0x4f   : > { %p4517_p13 = scmp.ne.s32.totalorder %s5821_s7, %s4516_s17  ;;  %p4523_p4 = scmp.lt.u32.totalorder %s4516_s17, %s5821_s7 }
  0x51   : > { %p4519_p0 = pnand %p4517_p13, %p4693_p7 }
  0x53   : > { %p4520_p1 = pneg %p4519_p0 }
  0x55   : > { %p4525_p6 = pnand %p4523_p4, %p4520_p1 }
  0x57   : > { %4528 = shalt.err (!%p4525_p6)
}
  0x58   : > { %s4529_s29 = scalar_lea.vmem %s384_s14, 9216  ;;  %p4537_p11 = scmp.lt.s32.totalorder %s384_s14, %s384_s14 }
  0x59   : > { %p4530_p8 = scmp.ne.s32.totalorder %s384_s14, %s4529_s29  ;;  %p4538_p12 = scmp.lt.s32.totalorder %s4529_s29, %s4529_s29 }
  0x5b   : > { %p4532_p9 = pnand %p4530_p8, %p4693_p7  ;;  %p4539_p2 = por %p4538_p12, %p4537_p11 }
  0x5d   : > { %p4533_p10 = pneg %p4532_p9 }
  0x5f   : > { %p4540_p3 = pnand %p4539_p2, %p4533_p10 }
  0x61   : > { %4543 = shalt.err (!%p4540_p3)
}
  0x62   : > { %s4570_s30 = smov 256   ;;  %s4571_s13 = smov 16  }
  0x63   : > { %4370 = dma.hbm_to_vmem [thread:$0]  (!%p4677_p5), %s5821_s7, 9216, %s384_s14, [#allocation10], %s4570_s30, %s4570_s30, %s4571_s13  }
  0x64   : > { %p5866_p13 = scmp.ne.s32.totalorder %s5863_s23, 0 }
  0x66   : > { %430 = sbr.rel (%p5866_p13) target bundleno = 2091 (0x82b), region = 64 }
  0x6d   : > { %p5867_p0 = scmp.eq.s32.totalorder %s4660_s22, 0 }
  0x6f   : > { %4549 = dma.done.wait (%p5867_p0), [#allocation5], 12288   ;;  %p5868_p7 = pmov %p5867_p0 }
  0x70   : > { %p5869_p2 = pmov %p5867_p0 }
  0x71   : > { %4551 = vsyncadd (%p5868_p7), [#allocation5], 4294955008 }
  0x72   : > { %4553 = dma.done.wait (%p5869_p2), [#allocation7], 26112   ;;  %p5870_p3 = pmov %p5867_p0 }
  0x73   : > { %p5871_p1 = pmov %p5867_p0 }
  0x74   : > { %4555 = vsyncadd (%p5870_p3), [#allocation7], 4294941184 }
  0x75   : > { %4557 = dma.done.wait (%p5871_p1), [#allocation10], 9216   ;;  %p5872_p5 = pmov %p5867_p0 }
  0x76   : > { %v5832_v0 = vmov 0.0|0.0   ;;  %v5834_v1 = vmov 0.0   ;;  %vm4574_vm0 = vmmov 0   ;;  %v522_v2 = vld [vmem:[%s5817_s3 + $0x8] sm:$0xff]  ;;  %v525_v3 = vld [vmem:[%s5817_s3 + $0x20] sm:$0xff]  ;;  %v523_v4 = vld [vmem:[%s5817_s3 + $0x10] sm:$0xff] }
  0x77   : > { %4559 = vsyncadd (%p5872_p5), [#allocation10], 4294958080  ;;  %3766 = vmatprep.subr.bf16.mxu1 %v5832_v0  ;;  %613 = vmatprep.mubr.f32.mxu0 %v5834_v1  ;;  %v3750_v5 = vpack.c.bf16 %v525_v3, %v522_v2  ;;  %v526_v6 = vld [vmem:[%s5817_s3 + $0x28] sm:$0xff]  ;;  %v521_v7 = vld [vmem:[%s5817_s3] sm:$0xff]  ;;  %p496_p4 = scmp.lt.s32.totalorder %s4660_s22, 1  ;;  %vm545_vm1 = vcmask 523264   ;;  %v5830_v3 = vlaneseq }
  0x78   : > { %3697 = vmatprep.mubr.msk.f32.mxu1 %vm4574_vm0, %v5834_v1  ;;  %v524_v8 = vld [vmem:[%s5817_s3 + $0x18] sm:$0xff]  ;;  %v3767_v9 = vpack.c.bf16 %v526_v6, %v523_v4  ;;  %v531_v12 = vld [vmem:[%s5817_s3 + $0x50] sm:$0xff]  ;;  %v529_v13 = vld [vmem:[%s5817_s3 + $0x40] sm:$0xff]  ;;  %vm956_vm2 = vcmask 261120   ;;  %s4575_s14 = smov 127   ;;  %s4576_s20 = smov 126  }
  0x79   : > { %v3752_v10 = vpack.c.bf16 %v524_v8, %v521_v7  ;;  %v528_v11 = vld [vmem:[%s5817_s3 + $0x38] sm:$0xff]  ;;  %3751 = vmatprep.subr.bf16.mxu0 %v3750_v5  ;;  %v527_v16 = vld [vmem:[%s5817_s3 + $0x30] sm:$0xff]  ;;  %v530_v17 = vld [vmem:[%s5817_s3 + $0x48] sm:$0xff]  ;;  %s5925_s22 = smov (!%p496_p4, %s4660_s22), 1  ;;  %s4577_s25 = smov 110   ;;  %vm970_vm3 = vcmask 1039360  }
  0x7a   : > { %v3754_v14 = vpack.c.bf16 %v531_v12, %v528_v11  ;;  %v532_v15 = vld [vmem:[%s5817_s3 + $0x58] sm:$0xff]  ;;  %3768 = vmatpush3.bf16.msra.mxu1 %v3767_v9  ;;  %v3756_v19 = vpack.c.bf16 %v530_v17, %v527_v16  ;;  %v534_v20 = vld [vmem:[%s5817_s3 + $0x68] sm:$0xff]  ;;  %v537_v21 = vld [vmem:[%s5817_s3 + $0x80] sm:$0xff]  ;;  %s4887_s26 = sshll.u32 %s5925_s22, 3  ;;  %v4897_v16 = vshrl.u32 %v5830_v3, 7  ;;  %s3476_s15 = sshll.u32 %s5925_s22, 1 }
  0x7b   : > { %3753 = vmatpush1.bf16.msra.mxu0 %v3752_v10  ;;  %v3770_v18 = vpack.c.bf16 %v532_v15, %v529_v13  ;;  %v535_v22 = vld [vmem:[%s5817_s3 + $0x70] sm:$0xff]  ;;  %3769 = vmatprep.subr.bf16.mxu1 %v5832_v0  ;;  %v3758_v23 = vpack.c.bf16 %v537_v21, %v534_v20  ;;  %v538_v24 = vld [vmem:[%s5817_s3 + $0x88] sm:$0xff]  ;;  %v533_v25 = vld [vmem:[%s5817_s3 + $0x60] sm:$0xff]  ;;  %s499_s13 = scalar_lea.vmem %s5814_s0, %s4887_s26  ;;  %s508_s28 = scalar_lea.vmem %s5816_s2, %s3476_s15  ;;  %vm1002_vm4 = vcmask 1031168   ;;  %vm1031_vm5 = vcmask 900096  }
  0x7c   : > { %3755 = vmatprep.subr.bf16.mxu0 %v3754_v14  ;;  %v536_v26 = vld [vmem:[%s5817_s3 + $0x78] sm:$0xff]  ;;  %v543_v28 = vld [vmem:[%s5817_s3 + $0xb0] sm:$0xff]  ;;  %v3773_v29 = vpack.c.bf16 %v538_v24, %v535_v22  ;;  %v541_v31 = vld [vmem:[%s5817_s3 + $0xa0] sm:$0xff]  ;;  %5873 = vst [vmem:[#allocation15_spill] sm:$0xff] %v4897_v16  ;;  %s4578_s11 = smov 109   ;;  %s4579_s21 = smov 108  }
  0x7d   : > { %v540_v27 = vld [vmem:[%s5817_s3 + $0x98] sm:$0xff]  ;;  %v3760_v30 = vpack.c.bf16 %v536_v26, %v533_v25  ;;  %v539_v34 = vld [vmem:[%s5817_s3 + $0x90] sm:$0xff]  ;;  %v542_v35 = vld [vmem:[%s5817_s3 + $0xa8] sm:$0xff]  ;;  %s4580_s16 = smov 92   ;;  %s4581_s17 = smov 90   ;;  %vm1176_vm6 = vcmask 736256  }
  0x7e   : > { %3771 = vmatpush3.bf16.msra.mxu1 %v3770_v18  ;;  %v544_v32 = vld [vmem:[%s5817_s3 + $0xb8] sm:$0xff]  ;;  %v3762_v33 = vpack.c.bf16 %v543_v28, %v540_v27  ;;  %v741_v36 = vld [vmem:[#allocation4 + $0x190] sm:$0xff]  ;;  %v695_v39 = vld [vmem:[#allocation4 + $0x20] sm:$0xff]  ;;  %v3764_v41 = vpack.c.bf16 %v542_v35, %v539_v34  ;;  %s4582_s18 = smov 91   ;;  %vm1060_vm7 = vcmask 891904   ;;  %vm1089_vm8 = vcmask 883712   ;;  %s504_s23 = scalar_lea.vmem %s5815_s1, %s4887_s26 }
  0x7f   : > { %3757 = vmatpush1.bf16.msra.mxu0 %v3756_v19  ;;  %3772 = vmatprep.subr.bf16.mxu1 %v5832_v0  ;;  %v744_v37 = vld [vmem:[#allocation4 + $0x1a8] sm:$0xff]  ;;  %v3776_v40 = vpack.c.bf16 %v544_v32, %v541_v31  ;;  %v693_v42 = vld [vmem:[#allocation4 + $0x10] sm:$0xff]  ;;  %v691_v46 = vld [vmem:[#allocation4] sm:$0xff]  ;;  %vm1118_vm9 = vcmask 752640   ;;  %vm1147_vm10 = vcmask 744448   ;;  %vm1246_vm11 = vcmask 1043456  }
  0x80   : > { %3759 = vmatprep.subr.bf16.mxu0 %v3758_v23  ;;  %v692_v38 = vld [vmem:[#allocation4 + $0x8] sm:$0xff]  ;;  %v3842_v44 = vpack.c.bf16 %v744_v37, %v741_v36  ;;  %v694_v47 = vld [vmem:[#allocation4 + $0x18] sm:$0xff]  ;;  %v747_v48 = vld [vmem:[#allocation4 + $0x1c0] sm:$0xff]  ;;  %vm1242_vm12 = vcmask 588800  }
  0x81   : > { %v696_v43 = vld [vmem:[#allocation4 + $0x28] sm:$0xff]  ;;  %v3778_v45 = vpack.c.bf16 %v695_v39, %v692_v38  ;;  %v750_v49 = vld [vmem:[#allocation4 + $0x1d8] sm:$0xff]  ;;  %v701_v51 = vld [vmem:[#allocation4 + $0x50] sm:$0xff]  ;;  %v3780_v54 = vpack.c.bf16 %v694_v47, %v691_v46 }
  0x82   : > { %3774 = vmatpush3.bf16.msra.mxu1 %v3773_v29  ;;  %v698_v50 = vld [vmem:[#allocation4 + $0x38] sm:$0xff]  ;;  %v520_v52 = vld [vmem:[%s499_s13] sm:$0xff]  ;;  %v3844_v53 = vpack.c.bf16 %v696_v43, %v693_v42  ;;  %v699_v55 = vld [vmem:[#allocation4 + $0x40] sm:$0xff]  ;;  %v3846_v57 = vpack.c.bf16 %v750_v49, %v747_v48  ;;  %v794_v29 = vsub.s32 1, %v4897_v16 }
  0x83   : > { %3761 = vmatpush1.bf16.msra.mxu0 %v3760_v30  ;;  %3775 = vmatprep.subr.bf16.mxu1 %v5832_v0  ;;  %v702_v56 = vld [vmem:[#allocation4 + $0x58] sm:$0xff]  ;;  %v3782_v58 = vpack.c.bf16 %v701_v51, %v698_v50  ;;  %v697_v59 = vld [vmem:[#allocation4 + $0x30] sm:$0xff]  ;;  %v700_v60 = vld [vmem:[#allocation4 + $0x48] sm:$0xff] }
  0x84   : > { %3763 = vmatprep.subr.bf16.mxu0 %v3762_v33  ;;  %v753_v61 = vld [vmem:[#allocation4 + $0x1f0] sm:$0xff]  ;;  %v756_v62 = vld [vmem:[#allocation4 + $0x208] sm:$0xff]  ;;  %v707_v2 = vld [vmem:[#allocation4 + $0x80] sm:$0xff]  ;;  %v3848_v4 = vpack.c.bf16 %v702_v56, %v699_v55  ;;  %v3784_v5 = vpack.c.bf16 %v700_v60, %v697_v59 }
  0x85   : > { %v704_v63 = vld [vmem:[#allocation4 + $0x68] sm:$0xff]  ;;  %v705_v6 = vld [vmem:[#allocation4 + $0x70] sm:$0xff]  ;;  %v3850_v8 = vpack.c.bf16 %v756_v62, %v753_v61  ;;  %v703_v10 = vld [vmem:[#allocation4 + $0x60] sm:$0xff] }
  0x86   : > { %3777 = vmatpush3.bf16.msra.mxu1 %v3776_v40  ;;  %v708_v7 = vld [vmem:[#allocation4 + $0x88] sm:$0xff]  ;;  %v3786_v9 = vpack.c.bf16 %v707_v2, %v704_v63  ;;  %v706_v11 = vld [vmem:[#allocation4 + $0x78] sm:$0xff]  ;;  %v759_v12 = vld [vmem:[#allocation4 + $0x220] sm:$0xff] }
  0x87   : > { %3765 = vmatpush1.bf16.msra.mxu0 %v3764_v41  ;;  %3843 = vmatprep.subr.bf16.mxu1 %v3842_v44  ;;  %v762_v13 = vld [vmem:[#allocation4 + $0x238] sm:$0xff]  ;;  %v713_v15 = vld [vmem:[#allocation4 + $0xb0] sm:$0xff]  ;;  %v3852_v17 = vpack.c.bf16 %v708_v7, %v705_v6  ;;  %v3788_v18 = vpack.c.bf16 %v706_v11, %v703_v10  ;;  %v711_v19 = vld [vmem:[#allocation4 + $0xa0] sm:$0xff] }
  0x88   : > { %3779 = vmatprep.subr.bf16.mxu0 %v3778_v45  ;;  %v710_v14 = vld [vmem:[#allocation4 + $0x98] sm:$0xff]  ;;  %v3854_v21 = vpack.c.bf16 %v762_v13, %v759_v12  ;;  %v709_v23 = vld [vmem:[#allocation4 + $0x90] sm:$0xff]  ;;  %v712_v24 = vld [vmem:[#allocation4 + $0xa8] sm:$0xff] }
  0x89   : > { %3698 = vmatmul.mubr.msk.f32.vlgmr.msra.gmra.mrb[0].mxu1 %vm545_vm1, %v520_v52  ;;  %v714_v20 = vld [vmem:[#allocation4 + $0xb8] sm:$0xff]  ;;  %v3790_v22 = vpack.c.bf16 %v713_v15, %v710_v14  ;;  %v765_v25 = vld [vmem:[#allocation4 + $0x250] sm:$0xff]  ;;  %v768_v26 = vld [vmem:[#allocation4 + $0x268] sm:$0xff]  ;;  %v3792_v31 = vpack.c.bf16 %v712_v24, %v709_v23 }
  0x8a   : > { %3480 = vmatmul.mubr.msk.f32.vlgmr.msra.gmra.mrb[0].mxu0 %vm545_vm1, %v520_v52  ;;  %3845 = vmatpush3.bf16.msra.mxu1 %v3844_v53  ;;  %v716_v27 = vld [vmem:[#allocation4 + $0xc8] sm:$0xff]  ;;  %v719_v28 = vld [vmem:[#allocation4 + $0xe0] sm:$0xff]  ;;  %v3856_v30 = vpack.c.bf16 %v714_v20, %v711_v19  ;;  %v717_v32 = vld [vmem:[#allocation4 + $0xd0] sm:$0xff]  ;;  %v3858_v35 = vpack.c.bf16 %v768_v26, %v765_v25  ;;  %vm2329_vm1 = vcmask 257024  }
  0x8b   : > { %3781 = vmatpush1.bf16.msra.mxu0 %v3780_v54  ;;  %3847 = vmatprep.subr.bf16.mxu1 %v3846_v57  ;;  %v720_v33 = vld [vmem:[#allocation4 + $0xe8] sm:$0xff]  ;;  %v715_v34 = vld [vmem:[#allocation4 + $0xc0] sm:$0xff]  ;;  %v3794_v36 = vpack.c.bf16 %v719_v28, %v716_v27  ;;  %v718_v37 = vld [vmem:[#allocation4 + $0xd8] sm:$0xff] }
  0x8c   : > { %3783 = vmatprep.subr.bf16.mxu0 %v3782_v58  ;;  %v771_v38 = vld [vmem:[#allocation4 + $0x280] sm:$0xff]  ;;  %v4906_v39 = vld [vmem:[%s508_s28] sm:$0x3]  ;;  %v774_v40 = vld [vmem:[#allocation4 + $0x298] sm:$0xff]  ;;  %v3860_v44 = vpack.c.bf16 %v720_v33, %v717_v32  ;;  %v3796_v45 = vpack.c.bf16 %v718_v37, %v715_v34 }
  0x8d   : > { %v722_v41 = vld [vmem:[#allocation4 + $0xf8] sm:$0xff]  ;;  %v725_v42 = vld [vmem:[#allocation4 + $0x110] sm:$0xff]  ;;  %v795_v43 = vrot.slane %v4906_v39, %v794_v29  ;;  %v723_v46 = vld [vmem:[#allocation4 + $0x100] sm:$0xff]  ;;  %v3862_v48 = vpack.c.bf16 %v774_v40, %v771_v38 }
  0x8e   : > { %3849 = vmatpush3.bf16.msra.mxu1 %v3848_v4  ;;  %v726_v47 = vld [vmem:[#allocation4 + $0x118] sm:$0xff]  ;;  %v3798_v49 = vpack.c.bf16 %v725_v42, %v722_v41  ;;  %v721_v50 = vld [vmem:[#allocation4 + $0xf0] sm:$0xff]  ;;  %v724_v51 = vld [vmem:[#allocation4 + $0x108] sm:$0xff] }
  0x8f   : > { %3785 = vmatpush1.bf16.msra.mxu0 %v3784_v5  ;;  %3851 = vmatprep.subr.bf16.mxu1 %v3850_v8  ;;  %v777_v52 = vld [vmem:[#allocation4 + $0x2b0] sm:$0xff]  ;;  %v780_v53 = vld [vmem:[#allocation4 + $0x2c8] sm:$0xff]  ;;  %v731_v55 = vld [vmem:[#allocation4 + $0x140] sm:$0xff]  ;;  %v3864_v56 = vpack.c.bf16 %v726_v47, %v723_v46  ;;  %v3800_v57 = vpack.c.bf16 %v724_v51, %v721_v50 }
  0x90   : > { %3787 = vmatprep.subr.bf16.mxu0 %v3786_v9  ;;  %v728_v54 = vld [vmem:[#allocation4 + $0x128] sm:$0xff]  ;;  %933 = vmatprep.mubr.f32.mxu1 %v795_v43  ;;  %v729_v58 = vld [vmem:[#allocation4 + $0x130] sm:$0xff]  ;;  %v3866_v60 = vpack.c.bf16 %v780_v53, %v777_v52  ;;  %v727_v62 = vld [vmem:[#allocation4 + $0x120] sm:$0xff] }
  0x91   : > { %862 = vmatprep.mubr.f32.mxu0 %v795_v43  ;;  %v732_v59 = vld [vmem:[#allocation4 + $0x148] sm:$0xff]  ;;  %v3802_v61 = vpack.c.bf16 %v731_v55, %v728_v54  ;;  %v730_v63 = vld [vmem:[#allocation4 + $0x138] sm:$0xff]  ;;  %v783_v2 = vld [vmem:[#allocation4 + $0x2e0] sm:$0xff] }
  0x92   : > { %3853 = vmatpush3.bf16.msra.mxu1 %v3852_v17  ;;  %v786_v4 = vld [vmem:[#allocation4 + $0x2f8] sm:$0xff]  ;;  %v737_v6 = vld [vmem:[#allocation4 + $0x170] sm:$0xff]  ;;  %v3868_v7 = vpack.c.bf16 %v732_v59, %v729_v58  ;;  %v3804_v8 = vpack.c.bf16 %v730_v63, %v727_v62  ;;  %v735_v9 = vld [vmem:[#allocation4 + $0x160] sm:$0xff] }
  0x93   : > { %3789 = vmatpush1.bf16.msra.mxu0 %v3788_v18  ;;  %3855 = vmatprep.subr.bf16.mxu1 %v3854_v21  ;;  %v734_v5 = vld [vmem:[#allocation4 + $0x158] sm:$0xff]  ;;  %v3870_v10 = vpack.c.bf16 %v786_v4, %v783_v2  ;;  %v733_v13 = vld [vmem:[#allocation4 + $0x150] sm:$0xff]  ;;  %v736_v14 = vld [vmem:[#allocation4 + $0x168] sm:$0xff]  ;;  %v4910_v18 = vsub.s32 0, %v4897_v16 }
  0x94   : > { %3791 = vmatprep.subr.bf16.mxu0 %v3790_v22  ;;  %v3806_v11 = vpack.c.bf16 %v737_v6, %v734_v5  ;;  %v738_v12 = vld [vmem:[#allocation4 + $0x178] sm:$0xff]  ;;  %v740_v15 = vld [vmem:[#allocation4 + $0x188] sm:$0xff]  ;;  %v743_v17 = vld [vmem:[#allocation4 + $0x1a0] sm:$0xff]  ;;  %v3808_v20 = vpack.c.bf16 %v736_v14, %v733_v13 }
  0x95   : > { %v3872_v19 = vpack.c.bf16 %v738_v12, %v735_v9  ;;  %v3810_v21 = vpack.c.bf16 %v743_v17, %v740_v15  ;;  %v739_v22 = vld [vmem:[#allocation4 + $0x180] sm:$0xff]  ;;  %v742_v23 = vld [vmem:[#allocation4 + $0x198] sm:$0xff]  ;;  %v749_v25 = vld [vmem:[#allocation4 + $0x1d0] sm:$0xff]  ;;  %v791_v26 = vrot.slane %v4906_v39, %v4910_v18 }
  0x96   : > { %3857 = vmatpush3.bf16.msra.mxu1 %v3856_v30  ;;  %v746_v24 = vld [vmem:[#allocation4 + $0x1b8] sm:$0xff]  ;;  %v3812_v27 = vpack.c.bf16 %v742_v23, %v739_v22  ;;  %v745_v29 = vld [vmem:[#allocation4 + $0x1b0] sm:$0xff]  ;;  %v748_v30 = vld [vmem:[#allocation4 + $0x1c8] sm:$0xff] }
  0x97   : > { %3793 = vmatpush1.bf16.msra.mxu0 %v3792_v31  ;;  %3859 = vmatprep.subr.bf16.mxu1 %v3858_v35  ;;  %v3814_v28 = vpack.c.bf16 %v749_v25, %v746_v24  ;;  %v752_v31 = vld [vmem:[#allocation4 + $0x1e8] sm:$0xff]  ;;  %v755_v32 = vld [vmem:[#allocation4 + $0x200] sm:$0xff]  ;;  %v3816_v33 = vpack.c.bf16 %v748_v30, %v745_v29  ;;  %v758_v37 = vld [vmem:[#allocation4 + $0x218] sm:$0xff]  ;;  %v5831_v24 = vmov 0  }
  0x98   : > { %3795 = vmatprep.subr.bf16.mxu0 %v3794_v36  ;;  %v3818_v34 = vpack.c.bf16 %v755_v32, %v752_v31  ;;  %v751_v35 = vld [vmem:[#allocation4 + $0x1e0] sm:$0xff]  ;;  %v754_v36 = vld [vmem:[#allocation4 + $0x1f8] sm:$0xff]  ;;  %v761_v38 = vld [vmem:[#allocation4 + $0x230] sm:$0xff]  ;;  %4412 = vset.pattern.permute.xlu0 %v5831_v24 }
  0x99   : > { %v3820_v39 = vpack.c.bf16 %v754_v36, %v751_v35  ;;  %v3822_v40 = vpack.c.bf16 %v761_v38, %v758_v37  ;;  %v757_v41 = vld [vmem:[#allocation4 + $0x210] sm:$0xff]  ;;  %v760_v42 = vld [vmem:[#allocation4 + $0x228] sm:$0xff]  ;;  %v763_v47 = vld [vmem:[#allocation4 + $0x240] sm:$0xff] }
  0x9a   : > { %3861 = vmatpush3.bf16.msra.mxu1 %v3860_v44  ;;  %v764_v43 = vld [vmem:[#allocation4 + $0x248] sm:$0xff]  ;;  %v767_v44 = vld [vmem:[#allocation4 + $0x260] sm:$0xff]  ;;  %v773_v50 = vld [vmem:[#allocation4 + $0x290] sm:$0xff] }
  0x9b   : > { %3797 = vmatpush1.bf16.msra.mxu0 %v3796_v45  ;;  %3863 = vmatprep.subr.bf16.mxu1 %v3862_v48  ;;  %v3824_v45 = vpack.c.bf16 %v760_v42, %v757_v41  ;;  %v3826_v46 = vpack.c.bf16 %v767_v44, %v764_v43  ;;  %v766_v48 = vld [vmem:[#allocation4 + $0x258] sm:$0xff]  ;;  %v769_v53 = vld [vmem:[#allocation4 + $0x270] sm:$0xff]  ;;  %v772_v54 = vld [vmem:[#allocation4 + $0x288] sm:$0xff] }
  0x9c   : > { %3799 = vmatprep.subr.bf16.mxu0 %v3798_v49  ;;  %v770_v49 = vld [vmem:[#allocation4 + $0x278] sm:$0xff]  ;;  %v3828_v51 = vpack.c.bf16 %v766_v48, %v763_v47  ;;  %v776_v55 = vld [vmem:[#allocation4 + $0x2a8] sm:$0xff]  ;;  %v775_v59 = vld [vmem:[#allocation4 + $0x2a0] sm:$0xff] }
  0x9d   : > { %v3830_v52 = vpack.c.bf16 %v773_v50, %v770_v49  ;;  %v785_v62 = vld [vmem:[#allocation4 + $0x2f0] sm:$0xff]  ;;  %v784_v5 = vld [vmem:[#allocation4 + $0x2e8] sm:$0xff]  ;;  %v1393_v30 = vld [vmem:[#allocation8] sm:$0xff] }
  0x9e   : > { %3865 = vmatpush3.bf16.msra.mxu1 %v3864_v56  ;;  %v779_v56 = vld [vmem:[#allocation4 + $0x2c0] sm:$0xff]  ;;  %v781_v4 = vld [vmem:[#allocation4 + $0x2d0] sm:$0xff]  ;;  %v1396_v31 = vld [vmem:[#allocation8 + $0x18] sm:$0xff] }
  0x9f   : > { %3801 = vmatpush1.bf16.msra.mxu0 %v3800_v57  ;;  %3867 = vmatprep.subr.bf16.mxu1 %v3866_v60  ;;  %v3832_v57 = vpack.c.bf16 %v772_v54, %v769_v53  ;;  %v3834_v58 = vpack.c.bf16 %v779_v56, %v776_v55  ;;  %v778_v60 = vld [vmem:[#allocation4 + $0x2b8] sm:$0xff]  ;;  %v3840_v6 = vpack.c.bf16 %v784_v5, %v781_v4  ;;  %v519_v25 = vld [vmem:[%s5824_s10] sm:$0xf]  ;;  %v1402_v36 = vld [vmem:[#allocation8 + $0x48] sm:$0xff] }
  0xa0   : > { %3803 = vmatprep.subr.bf16.mxu0 %v3802_v61  ;;  %v782_v61 = vld [vmem:[#allocation4 + $0x2d8] sm:$0xff]  ;;  %v3836_v63 = vpack.c.bf16 %v778_v60, %v775_v59  ;;  %v1399_v35 = vld [vmem:[#allocation8 + $0x30] sm:$0xff]  ;;  %v1406_v38 = vld [vmem:[#allocation8 + $0x68] sm:$0xff] }
  0xa1   : > { %v3838_v2 = vpack.c.bf16 %v785_v62, %v782_v61  ;;  %v1400_v32 = vld [vmem:[#allocation8 + $0x38] sm:$0xff]  ;;  %v1405_v43 = vld [vmem:[#allocation8 + $0x60] sm:$0xff]  ;;  %v1411_v50 = vld [vmem:[#allocation8 + $0x90] sm:$0xff] }
  0xa2   : > { %3869 = vmatpush3.bf16.msra.mxu1 %v3868_v7  ;;  %v1408_v44 = vld [vmem:[#allocation8 + $0x78] sm:$0xff]  ;;  %v1421_v53 = vld [vmem:[#allocation8 + $0xe0] sm:$0xff]  ;;  %v1427_v60 = vld [vmem:[#allocation8 + $0x110] sm:$0xff] }
  0xa3   : > { %3805 = vmatpush1.bf16.msra.mxu0 %v3804_v8  ;;  %3871 = vmatprep.subr.bf16.mxu1 %v3870_v10  ;;  %v5046_v47 = vpack.c.bf16 %v1408_v44, %v1405_v43  ;;  %v1424_v59 = vld [vmem:[#allocation8 + $0xf8] sm:$0xff]  ;;  %v1426_v4 = vld [vmem:[#allocation8 + $0x108] sm:$0xff]  ;;  %v1447_v44 = vld [vmem:[#allocation8 + $0x1b0] sm:$0xff] }
  0xa4   : > { %3807 = vmatprep.subr.bf16.mxu0 %v3806_v11  ;;  %v1430_v5 = vld [vmem:[#allocation8 + $0x128] sm:$0xff]  ;;  %v1440_v3 = vld [vmem:[#allocation8 + $0x178] sm:$0xff] }
  0xa6   : > { %3873 = vmatpush3.bf16.msra.mxu1 %v3872_v19 }
  0xa7   : > { %3809 = vmatpush1.bf16.msra.mxu0 %v3808_v20 }
  0xa8   : > { %3811 = vmatprep.subr.bf16.mxu0 %v3810_v21 }
  0xa9   : > { %934 = vmatmul.mubr.f32.vlgmr.msra.gmra.mrb[2].mxu1 %v791_v26 }
  0xaa   : > { %1288 = vmatprep.mubr.bf16.mxu1 %v5831_v24 }
  0xab   : > { %3813 = vmatpush1.bf16.msra.mxu0 %v3812_v27  ;;  %v1397_v27 = vld [vmem:[#allocation8 + $0x20] sm:$0xff] }
  0xac   : > { %3815 = vmatprep.subr.bf16.mxu0 %v3814_v28 }
  0xaf   : > { %3817 = vmatpush1.bf16.msra.mxu0 %v3816_v33  ;;  %v5026_v33 = vpack.c.bf16 %v1396_v31, %v1393_v30  ;;  %v1441_v31 = vld [vmem:[#allocation8 + $0x180] sm:$0xff] }
  0xb0   : > { %3819 = vmatprep.subr.bf16.mxu0 %v3818_v34  ;;  %v1403_v34 = vld [vmem:[#allocation8 + $0x50] sm:$0xff] }
  0xb1   : > { %v5029_v37 = vpack.c.bf16 %v1403_v34, %v1400_v32  ;;  %v1444_v32 = vld [vmem:[#allocation8 + $0x198] sm:$0xff] }
  0xb3   : > { %3821 = vmatpush1.bf16.msra.mxu0 %v3820_v39  ;;  %v1409_v39 = vld [vmem:[#allocation8 + $0x80] sm:$0xff] }
  0xb4   : > { %3823 = vmatprep.subr.bf16.mxu0 %v3822_v40  ;;  %v5034_v40 = vpack.c.bf16 %v1402_v36, %v1399_v35  ;;  %v5039_v42 = vpack.c.bf16 %v1409_v39, %v1406_v38  ;;  %v1448_v36 = vld [vmem:[#allocation8 + $0x1b8] sm:$0xff]  ;;  %v1451_v38 = vld [vmem:[#allocation8 + $0x1d0] sm:$0xff]  ;;  %v5096_v39 = vpack.c.bf16 %v1444_v32, %v1441_v31  ;;  %v1466_v32 = vld [vmem:[#allocation8 + $0x248] sm:$0xff] }
  0xb5   : > { %v5099_v43 = vpack.c.bf16 %v1451_v38, %v1448_v36  ;;  %v1468_v36 = vld [vmem:[#allocation8 + $0x258] sm:$0xff] }
  0xb7   : > { %3825 = vmatpush1.bf16.msra.mxu0 %v3824_v45  ;;  %v1412_v45 = vld [vmem:[#allocation8 + $0x98] sm:$0xff] }
  0xb8   : > { %3827 = vmatprep.subr.bf16.mxu0 %v3826_v46  ;;  %v1415_v46 = vld [vmem:[#allocation8 + $0xb0] sm:$0xff] }
  0xb9   : > { %v5051_v49 = vpack.c.bf16 %v1415_v46, %v1412_v45  ;;  %v1450_v45 = vld [vmem:[#allocation8 + $0x1c8] sm:$0xff] }
  0xbb   : > { %3829 = vmatpush1.bf16.msra.mxu0 %v3828_v51  ;;  %v1414_v51 = vld [vmem:[#allocation8 + $0xa8] sm:$0xff] }
  0xbc   : > { %3831 = vmatprep.subr.bf16.mxu0 %v3830_v52  ;;  %v1418_v52 = vld [vmem:[#allocation8 + $0xc8] sm:$0xff]  ;;  %v5056_v54 = vpack.c.bf16 %v1414_v51, %v1411_v50 }
  0xbd   : > { %v5061_v56 = vpack.c.bf16 %v1421_v53, %v1418_v52  ;;  %v1454_v51 = vld [vmem:[#allocation8 + $0x1e8] sm:$0xff]  ;;  %v1457_v52 = vld [vmem:[#allocation8 + $0x200] sm:$0xff]  ;;  %v5104_v53 = vpack.c.bf16 %v1450_v45, %v1447_v44  ;;  %v1472_v45 = vld [vmem:[#allocation8 + $0x278] sm:$0xff] }
  0xbf   : > { %3833 = vmatpush1.bf16.msra.mxu0 %v3832_v57  ;;  %v1417_v57 = vld [vmem:[#allocation8 + $0xc0] sm:$0xff] }
  0xc0   : > { %3835 = vmatprep.subr.bf16.mxu0 %v3834_v58  ;;  %v1420_v58 = vld [vmem:[#allocation8 + $0xd8] sm:$0xff] }
  0xc1   : > { %v5066_v61 = vpack.c.bf16 %v1420_v58, %v1417_v57  ;;  %v5107_v57 = vpack.c.bf16 %v1457_v52, %v1454_v51  ;;  %v1453_v58 = vld [vmem:[#allocation8 + $0x1e0] sm:$0xff]  ;;  %v1475_v51 = vld [vmem:[#allocation8 + $0x290] sm:$0xff] }
  0xc3   : > { %3837 = vmatpush1.bf16.msra.mxu0 %v3836_v63  ;;  %v5071_v63 = vpack.c.bf16 %v1427_v60, %v1424_v59  ;;  %v1456_v59 = vld [vmem:[#allocation8 + $0x1f8] sm:$0xff] }
  0xc4   : > { %3839 = vmatprep.subr.bf16.mxu0 %v3838_v2  ;;  %v1423_v2 = vld [vmem:[#allocation8 + $0xf0] sm:$0xff] }
  0xc7   : > { %3841 = vmatpush1.bf16.msra.mxu0 %v3840_v6  ;;  %v1433_v6 = vld [vmem:[#allocation8 + $0x140] sm:$0xff] }
  0xca   : > { %863 = vmatmul.mubr.f32.vlgmr.msra.gmra.mrb[2].mxu0 %v791_v26  ;;  %v1394_v26 = vld [vmem:[#allocation8 + $0x8] sm:$0xff] }
  0xcb   : > { %v5022_v29 = vpack.c.bf16 %v1397_v27, %v1394_v26  ;;  %v1445_v26 = vld [vmem:[#allocation8 + $0x1a0] sm:$0xff] }
  0xcd   : > { %3875 = vmatprep.subr.bf16.mxu0 %v5022_v29 }
  0xce   : > { %3877 = vmatpush1.bf16.msra.mxu0 %v5026_v33 }
  0xcf   : > { %3879 = vmatprep.subr.bf16.mxu0 %v5029_v37 }
  0xd2   : > { %3881 = vmatpush1.bf16.msra.mxu0 %v5034_v40 }
  0xd3   : > { %3883 = vmatprep.subr.bf16.mxu0 %v5039_v42 }
  0xd6   : > { %3885 = vmatpush1.bf16.msra.mxu0 %v5046_v47 }
  0xd7   : > { %3887 = vmatprep.subr.bf16.mxu0 %v5051_v49 }
  0xda   : > { %3889 = vmatpush1.bf16.msra.mxu0 %v5056_v54 }
  0xdb   : > { %3891 = vmatprep.subr.bf16.mxu0 %v5061_v56 }
  0xde   : > { %3893 = vmatpush1.bf16.msra.mxu0 %v5066_v61 }
  0xdf   : > { %3895 = vmatprep.subr.bf16.mxu0 %v5071_v63 }
 0x15c   : > { %v686_v8 = vpop.f32.mrb[0].mxu1 }
 0x15d   : > { %v615_v7 = vpop.f32.mrb[0].mxu0  ;;  %v3699_v10 = vpop.f32.mrb[1].mxu1 }
 0x15e   : > { %v617_v9 = vpop.f32.mrb[1].mxu0  ;;  %v1432_v10 = vld [vmem:[#allocation8 + $0x138] sm:$0xff] }
 0x17c   : > { %v3551_v11 = vpop.f32.mrb[2].mxu1 }
 0x17d   : > { %v3552_v12 = vpop.f32.mrb[3].mxu1 }
 0x17e   : > { %v4914_v13 = vadd.f32 %v3552_v12, %v3551_v11  ;;  %v1436_v11 = vld [vmem:[#allocation8 + $0x158] sm:$0xff]  ;;  %v1439_v12 = vld [vmem:[#allocation8 + $0x170] sm:$0xff] }
 0x180   : > { %v950_v14 = vrot.slane %v4914_v13, %v4910_v18 }
 0x182   : > { %v953_v15 = vmul.f32 %v950_v14, %v686_v8  ;;  %v5079_v8 = vpack.c.bf16 %v1433_v6, %v1430_v5  ;;  %v1463_v5 = vld [vmem:[#allocation8 + $0x230] sm:$0xff] }
 0x184   : > { %968 = vrot.lane.b32.xlu0 %v953_v15, %s4575_s14  ;;  %957 = vst.msk [vmem:[#allocation2 + $0x10] sm:$0xff] %vm956_vm2, %v953_v15 }
 0x188   : > { %1000 = vrot.lane.b32.xlu0 %v953_v15, %s4576_s20 }
 0x18c   : > { %1029 = vrot.lane.b32.xlu0 %v953_v15, %s4577_s25 }
 0x190   : > { %1058 = vrot.lane.b32.xlu0 %v953_v15, %s4578_s11 }
 0x194   : > { %1087 = vrot.lane.b32.xlu0 %v953_v15, %s4579_s21 }
 0x19d   : > { %v4924_v17 = vpop.f32.mrb[2].mxu0 }
 0x19e   : > { %v942_v19 = vrot.slane %v4924_v17, %v4910_v18  ;;  %v4928_v20 = vpop.f32.mrb[3].mxu0 }
 0x19f   : > { %v946_v21 = vrot.slane %v4928_v20, %v4910_v18 }
 0x1a0   : > { %v4932_v22 = vmul.f32 %v942_v19, %v615_v7  ;;  %v5076_v7 = vpack.c.bf16 %v1426_v4, %v1423_v2  ;;  %v1435_v19 = vld [vmem:[#allocation8 + $0x150] sm:$0xff]  ;;  %v1460_v4 = vld [vmem:[#allocation8 + $0x218] sm:$0xff] }
 0x1a1   : > { %v4934_v23 = vmul.f32 %v946_v21, %v617_v9  ;;  %v1429_v9 = vld [vmem:[#allocation8 + $0x120] sm:$0xff]  ;;  %v1438_v21 = vld [vmem:[#allocation8 + $0x168] sm:$0xff] }
 0x1a2   : > { %1025 = vrot.lane.b32.xlu0 %v4932_v22, %s4577_s25  ;;  %964 = vrot.lane.b32.xlu1 %v4932_v22, %s4575_s14  ;;  %v5082_v14 = vpack.c.bf16 %v1432_v10, %v1429_v9  ;;  %v5088_v27 = vpack.c.bf16 %v1438_v21, %v1435_v19  ;;  %v5118_v19 = vpack.c.bf16 %v1463_v5, %v1460_v4  ;;  %v1459_v21 = vld [vmem:[#allocation8 + $0x210] sm:$0xff] }
 0x1a3   : > { %3897 = vmatpush1.bf16.msra.mxu0 %v5076_v7 }
 0x1a4   : > { %3899 = vmatprep.subr.bf16.mxu0 %v5079_v8  ;;  %5875 = vst [vmem:[#allocation17_spill] sm:$0xff] %v5118_v19 }
 0x1a6   : > { %1083 = vrot.lane.b32.xlu0 %v4932_v22, %s4579_s21  ;;  %996 = vrot.lane.b32.xlu1 %v4932_v22, %s4576_s20 }
 0x1a7   : > { %3901 = vmatpush1.bf16.msra.mxu0 %v5082_v14 }
 0x1aa   : > { %1054 = vrot.lane.b32.xlu1 %v4932_v22, %s4578_s11  ;;  %966 = vrot.lane.b32.xlu0 %v4934_v23, %s4575_s14 }
 0x1ae   : > { %1112 = vrot.lane.b32.xlu1 %v4932_v22, %s4580_s16  ;;  %1116 = vrot.lane.b32.xlu0 %v953_v15, %s4580_s16 }
 0x1b2   : > { %1170 = vrot.lane.b32.xlu1 %v4932_v22, %s4581_s17  ;;  %1145 = vrot.lane.b32.xlu0 %v953_v15, %s4582_s18 }
 0x1b6   : > { %998 = vrot.lane.b32.xlu1 %v4934_v23, %s4576_s20  ;;  %1141 = vrot.lane.b32.xlu0 %v4932_v22, %s4582_s18 }
 0x1ba   : > { %1027 = vrot.lane.b32.xlu1 %v4934_v23, %s4577_s25  ;;  %1172 = vrot.lane.b32.xlu0 %v4934_v23, %s4581_s17 }
 0x1be   : > { %1056 = vrot.lane.b32.xlu1 %v4934_v23, %s4578_s11  ;;  %984 = vrot.lane.b32.xlu0 %v4928_v20, %s4575_s14 }
 0x1c2   : > { %1085 = vrot.lane.b32.xlu1 %v4934_v23, %s4579_s21  ;;  %982 = vrot.lane.b32.xlu0 %v4924_v17, %s4575_s14 }
 0x1c6   : > { %1114 = vrot.lane.b32.xlu1 %v4934_v23, %s4580_s16  ;;  %1015 = vrot.lane.b32.xlu0 %v4914_v13, %s4576_s20 }
 0x1ca   : > { %1143 = vrot.lane.b32.xlu1 %v4934_v23, %s4582_s18  ;;  %1042 = vrot.lane.b32.xlu0 %v4928_v20, %s4577_s25 }
 0x1ce   : > { %1174 = vrot.lane.b32.xlu1 %v953_v15, %s4581_s17  ;;  %1040 = vrot.lane.b32.xlu0 %v4924_v17, %s4577_s25  ;;  %v5085_v15 = vpack.c.bf16 %v1439_v12, %v1436_v11  ;;  %v5115_v12 = vpack.c.bf16 %v1456_v59, %v1453_v58  ;;  %v5132_v58 = vpack.c.bf16 %v1475_v51, %v1472_v45  ;;  %v1471_v59 = vld [vmem:[#allocation8 + $0x270] sm:$0xff] }
 0x1d0   : > { %3903 = vmatprep.subr.bf16.mxu0 %v5085_v15  ;;  %5874 = vst [vmem:[#allocation16_spill] sm:$0xff] %v5115_v12  ;;  %5879 = vst [vmem:[#allocation21_spill] sm:$0xff] %v5132_v58 }
 0x1d1   : > { %3905 = vmatpush1.bf16.msra.mxu0 %v5088_v27 }
 0x1d2   : > { %986 = vrot.lane.b32.xlu1 %v4914_v13, %s4575_s14  ;;  %1073 = vrot.lane.b32.xlu0 %v4914_v13, %s4578_s11 }
 0x1d6   : > { %1013 = vrot.lane.b32.xlu1 %v4928_v20, %s4576_s20  ;;  %1100 = vrot.lane.b32.xlu0 %v4928_v20, %s4579_s21 }
 0x1da   : > { %1011 = vrot.lane.b32.xlu1 %v4924_v17, %s4576_s20  ;;  %1098 = vrot.lane.b32.xlu0 %v4924_v17, %s4579_s21 }
 0x1de   : > { %1044 = vrot.lane.b32.xlu1 %v4914_v13, %s4577_s25  ;;  %1131 = vrot.lane.b32.xlu0 %v4914_v13, %s4580_s16 }
 0x1e2   : > { %1071 = vrot.lane.b32.xlu1 %v4928_v20, %s4578_s11  ;;  %1158 = vrot.lane.b32.xlu0 %v4928_v20, %s4582_s18 }
 0x1e6   : > { %1069 = vrot.lane.b32.xlu1 %v4924_v17, %s4578_s11  ;;  %1156 = vrot.lane.b32.xlu0 %v4924_v17, %s4582_s18 }
 0x1ea   : > { %1102 = vrot.lane.b32.xlu1 %v4914_v13, %s4579_s21  ;;  %1189 = vrot.lane.b32.xlu0 %v4914_v13, %s4581_s17 }
 0x1ee   : > { %1129 = vrot.lane.b32.xlu1 %v4928_v20, %s4580_s16  ;;  %1372 = vperm.xlu0 %4412, %v519_v25   ;;  %v1442_v25 = vld [vmem:[#allocation8 + $0x188] sm:$0xff] }
 0x1ef   : > { %v5091_v30 = vpack.c.bf16 %v1445_v26, %v1442_v25  ;;  %v1462_v25 = vld [vmem:[#allocation8 + $0x228] sm:$0xff] }
 0x1f1   : > { %3907 = vmatprep.subr.bf16.mxu0 %v5091_v30 }
 0x1f2   : > { %1127 = vrot.lane.b32.xlu1 %v4924_v17, %s4580_s16  ;;  %3909 = vmatpush1.bf16.msra.mxu0 %v5096_v39 }
 0x1f3   : > { %3911 = vmatprep.subr.bf16.mxu0 %v5099_v43 }
 0x1f6   : > { %1160 = vrot.lane.b32.xlu1 %v4914_v13, %s4582_s18  ;;  %v5020_v28 = vpop.permute.xlu0 %968  ;;  %3913 = vmatpush1.bf16.msra.mxu0 %v5104_v53 }
 0x1f7   : > { %978 = vst.msk [vmem:[#allocation2 + $0x28] sm:$0xff] %vm956_vm2, %v5020_v28  ;;  %3915 = vmatprep.subr.bf16.mxu0 %v5107_v57 }
 0x1fa   : > { %1187 = vrot.lane.b32.xlu1 %v4928_v20, %s4581_s17  ;;  %v5036_v41 = vpop.permute.xlu0 %1000  ;;  %3917 = vmatpush1.bf16.msra.mxu0 %v5115_v12 }
 0x1fb   : > { %1010 = vst.msk [vmem:[#allocation2 + $0x40] sm:$0xff] %vm956_vm2, %v5036_v41  ;;  %3919 = vmatprep.subr.bf16.mxu0 %v5118_v19 }
 0x1fe   : > { %1185 = vrot.lane.b32.xlu1 %v4924_v17, %s4581_s17  ;;  %v5048_v48 = vpop.permute.xlu0 %1029 }
 0x1ff   : > { %1039 = vst.msk [vmem:[#allocation2 + $0x58] sm:$0xff] %vm956_vm2, %v5048_v48 }
 0x202   : > { %v5058_v55 = vpop.permute.xlu0 %1058 }
 0x203   : > { %1068 = vst.msk [vmem:[#allocation2 + $0x70] sm:$0xff] %vm956_vm2, %v5058_v55 }
 0x206   : > { %v5068_v62 = vpop.permute.xlu0 %1087 }
 0x207   : > { %1097 = vst.msk [vmem:[#allocation2 + $0x88] sm:$0xff] %vm956_vm2, %v5068_v62 }
 0x214   : > { %v5093_v34 = vpop.permute.xlu0 %1025  ;;  %v965_v35 = vpop.permute.xlu1 %964 }
 0x218   : > { %v5101_v46 = vpop.permute.xlu0 %1083  ;;  %v997_v50 = vpop.permute.xlu1 %996 }
 0x21c   : > { %v1055_v60 = vpop.permute.xlu1 %1054  ;;  %v967_v2 = vpop.permute.xlu0 %966 }
 0x21d   : > { %v971_v6 = vsel %vm970_vm3, %v965_v35, %v967_v2  ;;  %v972_v9 = vsel %vm970_vm3, %v967_v2, %v5020_v28  ;;  %v1469_v35 = vld [vmem:[#allocation8 + $0x260] sm:$0xff]  ;;  %v1474_v2 = vld [vmem:[#allocation8 + $0x288] sm:$0xff] }
 0x21e   : > { %v1228_v10 = vpack.c.bf16 %v972_v9, %v4934_v23  ;;  %v1227_v11 = vpack.c.bf16 %v971_v6, %v4932_v22  ;;  %v5122_v22 = vpack.c.bf16 %v1462_v25, %v1459_v21  ;;  %v5125_v23 = vpack.c.bf16 %v1469_v35, %v1466_v32  ;;  %v1465_v28 = vld [vmem:[#allocation8 + $0x240] sm:$0xff] }
 0x21f   : > { %v5129_v52 = vpack.c.bf16 %v1468_v36, %v1465_v28 }
 0x220   : > { %v1113_v26 = vpop.permute.xlu1 %1112  ;;  %v1117_v31 = vpop.permute.xlu0 %1116  ;;  %1256 = vmatprep.subr.bf16.mxu1 %v1228_v10  ;;  %5876 = vst [vmem:[#allocation18_spill] sm:$0xff] %v5122_v22  ;;  %5877 = vst [vmem:[#allocation19_spill] sm:$0xff] %v5125_v23  ;;  %3921 = vmatpush1.bf16.msra.mxu0 %v5122_v22  ;;  %v5138_v10 = vpack.c.bf16 %v1474_v2, %v1471_v59 }
 0x221   : > { %1126 = vst.msk [vmem:[#allocation2 + $0xa0] sm:$0xff] %vm956_vm2, %v1117_v31  ;;  %1257 = vmatpush1.bf16.msra.mxu1 %v1227_v11  ;;  %5878 = vst [vmem:[#allocation20_spill] sm:$0xff] %v5129_v52  ;;  %3923 = vmatprep.subr.bf16.mxu0 %v5125_v23 }
 0x222   : > { %5880 = vst [vmem:[#allocation22_spill] sm:$0xff] %v5138_v10 }
 0x224   : > { %v1171_v38 = vpop.permute.xlu1 %1170  ;;  %v1146_v44 = vpop.permute.xlu0 %1145  ;;  %3925 = vmatpush1.bf16.msra.mxu0 %v5129_v52 }
 0x225   : > { %1155 = vst.msk [vmem:[#allocation2 + $0xb8] sm:$0xff] %vm956_vm2, %v1146_v44  ;;  %3927 = vmatprep.subr.bf16.mxu0 %v5132_v58 }
 0x228   : > { %v999_v4 = vpop.permute.xlu1 %998  ;;  %v1142_v5 = vpop.permute.xlu0 %1141  ;;  %3929 = vmatpush1.bf16.msra.mxu0 %v5138_v10 }
 0x229   : > { %v1003_v6 = vsel %vm1002_vm4, %v997_v50, %v999_v4  ;;  %v1004_v9 = vsel %vm1002_vm4, %v999_v4, %v5036_v41 }
 0x22c   : > { %v1028_v11 = vpop.permute.xlu1 %1027  ;;  %v1173_v21 = vpop.permute.xlu0 %1172 }
 0x22d   : > { %v1032_v25 = vsel %vm1031_vm5, %v5093_v34, %v1028_v11  ;;  %v1033_v32 = vsel %vm1031_vm5, %v1028_v11, %v5048_v48  ;;  %v1177_v50 = vsel %vm1176_vm6, %v1171_v38, %v1173_v21 }
 0x22e   : > { %v1231_v41 = vpack.c.bf16 %v1033_v32, %v1004_v9  ;;  %v1230_v35 = vpack.c.bf16 %v1032_v25, %v1003_v6 }
 0x230   : > { %v1057_v28 = vpop.permute.xlu1 %1056  ;;  %1258 = vmatprep.subr.bf16.mxu1 %v1231_v41  ;;  %v1205_v41 = vld [vmem:[#allocation2 + $0x28] sm:$0xff]  ;;  %v985_v24 = vpop.permute.xlu0 %984 }
 0x231   : > { %v1061_v36 = vsel %vm1060_vm7, %v1055_v60, %v1057_v28  ;;  %v1062_v45 = vsel %vm1060_vm7, %v1057_v28, %v5058_v55  ;;  %1259 = vmatpush1.bf16.msra.mxu1 %v1230_v35  ;;  %v1208_v35 = vld [vmem:[#allocation2 + $0x40] sm:$0xff] }
 0x234   : > { %v1086_v34 = vpop.permute.xlu1 %1085 }
 0x235   : > { %v1090_v48 = vsel %vm1089_vm8, %v5101_v46, %v1086_v34  ;;  %v1091_v38 = vsel %vm1089_vm8, %v1086_v34, %v5068_v62  ;;  %v1239_v62 = vpack.c.bf16 %v1177_v50, %v1177_v50  ;;  %v1211_v50 = vld [vmem:[#allocation2 + $0x58] sm:$0xff] }
 0x236   : > { %v1234_v51 = vpack.c.bf16 %v1091_v38, %v1062_v45  ;;  %v1233_v59 = vpack.c.bf16 %v1090_v48, %v1061_v36  ;;  %v1232_v28 = vpack.c.bf16 %v1211_v50, %v1208_v35  ;;  %v1217_v36 = vld [vmem:[#allocation2 + $0x88] sm:$0xff]  ;;  %v1214_v45 = vld [vmem:[#allocation2 + $0x70] sm:$0xff]  ;;  %v1223_v48 = vld [vmem:[#allocation2 + $0xb8] sm:$0xff] }
 0x237   : > { %v1235_v34 = vpack.c.bf16 %v1217_v36, %v1214_v45  ;;  %v1407_v35 = vld [vmem:[#allocation8 + $0x70] sm:$0xff]  ;;  %v1461_v36 = vld [vmem:[#allocation8 + $0x220] sm:$0xff]  ;;  %v1464_v45 = vld [vmem:[#allocation8 + $0x238] sm:$0xff] }
 0x238   : > { %v1115_v2 = vpop.permute.xlu1 %1114  ;;  %1260 = vmatprep.subr.bf16.mxu1 %v1234_v51  ;;  %v1220_v51 = vld [vmem:[#allocation2 + $0xa0] sm:$0xff] }
 0x239   : > { %v1119_v4 = vsel %vm1118_vm9, %v1113_v26, %v1115_v2  ;;  %v1120_v60 = vsel %vm1118_vm9, %v1115_v2, %v1117_v31  ;;  %1261 = vmatpush1.bf16.msra.mxu1 %v1233_v59  ;;  %v1248_v31 = vsel %vm1246_vm11, %v1239_v62, 0  ;;  %v1238_v59 = vpack.c.bf16 %v1223_v48, %v1220_v51  ;;  %v1443_v2 = vld [vmem:[#allocation8 + $0x190] sm:$0xff] }
 0x23a   : > { %v5192_v48 = vpack.c.bf16 %v1464_v45, %v1461_v36  ;;  %v1467_v51 = vld [vmem:[#allocation8 + $0x250] sm:$0xff]  ;;  %v1478_v36 = vld [vmem:[#allocation8 + $0x2a8] sm:$0xff]  ;;  %v1481_v45 = vld [vmem:[#allocation8 + $0x2c0] sm:$0xff] }
 0x23c   : > { %v1144_v55 = vpop.permute.xlu1 %1143 }
 0x23d   : > { %v1148_v6 = vsel %vm1147_vm10, %v1142_v5, %v1144_v55  ;;  %v1149_v9 = vsel %vm1147_vm10, %v1144_v55, %v1146_v44  ;;  %v1199_v44 = vld [vmem:[%s5822_s8] sm:$0x3]  ;;  %v1202_v5 = vld [vmem:[#allocation2 + $0x10] sm:$0xff] }
 0x23e   : > { %v1237_v46 = vpack.c.bf16 %v1149_v9, %v1120_v60  ;;  %v1236_v11 = vpack.c.bf16 %v1148_v6, %v1119_v4  ;;  %v1446_v4 = vld [vmem:[#allocation8 + $0x1a8] sm:$0xff]  ;;  %v1395_v6 = vld [vmem:[#allocation8 + $0x10] sm:$0xff] }
 0x23f   : > { %v5173_v55 = vpack.c.bf16 %v1446_v4, %v1443_v2  ;;  %v1398_v9 = vld [vmem:[#allocation8 + $0x28] sm:$0xff] }
 0x240   : > { %v1175_v25 = vpop.permute.xlu1 %1174  ;;  %1262 = vmatprep.subr.bf16.mxu1 %v1237_v46  ;;  %v1449_v46 = vld [vmem:[#allocation8 + $0x1c0] sm:$0xff]  ;;  %v5176_v62 = vpack.c.bf16 %v1398_v9, %v1395_v6  ;;  %v1422_v6 = vld [vmem:[#allocation8 + $0xe8] sm:$0xff] }
 0x241   : > { %v1178_v32 = vsel %vm1176_vm6, %v1173_v21, %v1175_v25  ;;  %1184 = vst.msk [vmem:[#allocation2 + $0xd0] sm:$0xff] %vm956_vm2, %v1175_v25  ;;  %1263 = vmatpush1.bf16.msra.mxu1 %v1236_v11  ;;  %v1229_v21 = vpack.c.bf16 %v1205_v41, %v1202_v5  ;;  %v1452_v11 = vld [vmem:[#allocation8 + $0x1d8] sm:$0xff]  ;;  %v1455_v41 = vld [vmem:[#allocation8 + $0x1f0] sm:$0xff]  ;;  %v1458_v5 = vld [vmem:[#allocation8 + $0x208] sm:$0xff] }
 0x242   : > { %v1240_v26 = vpack.c.bf16 %v1178_v32, %v1178_v32  ;;  %v5179_v32 = vpack.c.bf16 %v1452_v11, %v1449_v46  ;;  %v5186_v50 = vpack.c.bf16 %v1458_v5, %v1455_v41  ;;  %v1473_v9 = vld [vmem:[#allocation8 + $0x280] sm:$0xff]  ;;  %v1476_v46 = vld [vmem:[#allocation8 + $0x298] sm:$0xff]  ;;  %v1479_v5 = vld [vmem:[#allocation8 + $0x2b0] sm:$0xff] }
 0x244   : > { %3482 = vmatprep.subr.msk.bf16.mxu1 %vm1246_vm11, %v1240_v26  ;;  %v1401_v26 = vld [vmem:[#allocation8 + $0x40] sm:$0xff] }
 0x245   : > { %1265 = vmatpush1.bf16.msra.mxu1 %v1248_v31  ;;  %v1404_v31 = vld [vmem:[#allocation8 + $0x58] sm:$0xff] }
 0x246   : > { %3700 = vmatprep.subr.bf16.mxu1 %v5834_v1 }
 0x248   : > { %3483 = vmatmul.mubr.msk.bf16.vlgmr.msra.gmra.mrb[4].mxu1 %vm1242_vm12, %v1199_v44  ;;  %v1226_v38 = vld [vmem:[#allocation2 + $0xd0] sm:$0xff] }
 0x249   : > { %3701 = vmatpush3.bf16.msra.mxu1 %v1229_v21  ;;  %3710 = vmatprep.mubr.msk.bf16.mxu1 %vm4574_vm0, %v5834_v1  ;;  %v1241_v60 = vpack.c.bf16 %v1226_v38, %v1226_v38  ;;  %v5183_v21 = vpack.c.bf16 %v1404_v31, %v1401_v26  ;;  %v1416_v38 = vld [vmem:[#allocation8 + $0xb8] sm:$0xff]  ;;  %v1425_v26 = vld [vmem:[#allocation8 + $0x100] sm:$0xff] }
 0x24a   : > { %3702 = vmatprep.subr.bf16.mxu1 %v5834_v1  ;;  %v1428_v31 = vld [vmem:[#allocation8 + $0x118] sm:$0xff] }
 0x24b   : > { %v1254_v25 = vsel %vm1246_vm11, %v1241_v60, 0  ;;  %v1419_v60 = vld [vmem:[#allocation8 + $0xd0] sm:$0xff]  ;;  %v5207_v41 = vpack.c.bf16 %v1428_v31, %v1425_v26  ;;  %v1488_v26 = vld [vmem:[#allocation8 + $0x2f8] sm:$0xff] }
 0x24c   : > { %v5201_v11 = vpack.c.bf16 %v1422_v6, %v1419_v60  ;;  %v1480_v60 = vld [vmem:[#allocation8 + $0x2b8] sm:$0xff] }
 0x24d   : > { %3703 = vmatpush3.bf16.msra.mxu1 %v1232_v28  ;;  %v1410_v28 = vld [vmem:[#allocation8 + $0x88] sm:$0xff]  ;;  %5884 = vst [vmem:[#allocation26_spill] sm:$0xff] %v5207_v41 }
 0x24e   : > { %3704 = vmatprep.subr.bf16.mxu1 %v5834_v1  ;;  %5882 = vst [vmem:[#allocation24_spill] sm:$0xff] %v5201_v11 }
 0x251   : > { %3705 = vmatpush3.bf16.msra.mxu1 %v1235_v34  ;;  %v5189_v34 = vpack.c.bf16 %v1410_v28, %v1407_v35  ;;  %v1482_v35 = vld [vmem:[#allocation8 + $0x2c8] sm:$0xff] }
 0x252   : > { %3706 = vmatprep.subr.bf16.mxu1 %v5834_v1  ;;  %v5211_v28 = vpack.c.bf16 %v1482_v35, %v1479_v5  ;;  %v1484_v5 = vld [vmem:[#allocation8 + $0x2d8] sm:$0xff]  ;;  %v1487_v35 = vld [vmem:[#allocation8 + $0x2f0] sm:$0xff] }
 0x254   : > { %5885 = vst [vmem:[#allocation27_spill] sm:$0xff] %v5211_v28 }
 0x255   : > { %3707 = vmatpush3.bf16.msra.mxu1 %v1238_v59  ;;  %v1470_v59 = vld [vmem:[#allocation8 + $0x268] sm:$0xff] }
 0x256   : > { %3708 = vmatprep.subr.bf16.mxu1 %v5834_v1  ;;  %v5198_v4 = vpack.c.bf16 %v1470_v59, %v1467_v51  ;;  %v1434_v51 = vld [vmem:[#allocation8 + $0x148] sm:$0xff]  ;;  %v1477_v59 = vld [vmem:[#allocation8 + $0x2a0] sm:$0xff] }
 0x258   : > { %5881 = vst [vmem:[#allocation23_spill] sm:$0xff] %v5198_v4 }
 0x259   : > { %3709 = vmatpush3.bf16.msra.mxu1 %v1254_v25  ;;  %v5204_v25 = vpack.c.bf16 %v1476_v46, %v1473_v9  ;;  %v5218_v9 = vpack.c.bf16 %v1480_v60, %v1477_v59  ;;  %v1485_v46 = vld [vmem:[#allocation8 + $0x2e0] sm:$0xff] }
 0x25a   : > { %3947 = vmatprep.subr.bf16.mxu1 %v5173_v55  ;;  %v5223_v31 = vpack.c.bf16 %v1488_v26, %v1485_v46  ;;  %v1490_v46 = vld [vmem:[#allocation8 + $0x308] sm:$0xff]  ;;  %v1493_v26 = vld [vmem:[#allocation8 + $0x320] sm:$0xff] }
 0x25b   : > { %5883 = vst [vmem:[#allocation25_spill] sm:$0xff] %v5204_v25  ;;  %5888 = vst [vmem:[#allocation30_spill] sm:$0xff] %v5218_v9 }
 0x25c   : > { %3711 = vmatmul.mubr.msk.bf16.vlgmr.msra.gmra.mrb[8].mxu1 %vm1242_vm12, %v1199_v44  ;;  %v1413_v44 = vld [vmem:[#allocation8 + $0xa0] sm:$0xff]  ;;  %5889 = vst [vmem:[#allocation31_spill] sm:$0xff] %v5223_v31 }
 0x25d   : > { %3949 = vmatpush3.bf16.msra.mxu1 %v5176_v62  ;;  %v5195_v2 = vpack.c.bf16 %v1416_v38, %v1413_v44  ;;  %v1431_v44 = vld [vmem:[#allocation8 + $0x130] sm:$0xff]  ;;  %v5213_v38 = vpack.c.bf16 %v1481_v45, %v1478_v36  ;;  %v1437_v36 = vld [vmem:[#allocation8 + $0x160] sm:$0xff]  ;;  %v5225_v45 = vpack.c.bf16 %v1487_v35, %v1484_v5  ;;  %v5236_v5 = vpack.c.bf16 %v1493_v26, %v1490_v46  ;;  %v987_v35 = vpop.permute.xlu1 %986 }
 0x25e   : > { %3951 = vmatprep.subr.bf16.mxu1 %v5179_v32  ;;  %v5216_v6 = vpack.c.bf16 %v1434_v51, %v1431_v44  ;;  %v1483_v44 = vld [vmem:[#allocation8 + $0x2d0] sm:$0xff]  ;;  %v1486_v51 = vld [vmem:[#allocation8 + $0x2e8] sm:$0xff]  ;;  %v5228_v59 = vpack.c.bf16 %v1440_v3, %v1437_v36  ;;  %v983_v36 = vpop.permute.xlu0 %982 }
 0x25f   : > { %5886 = vst [vmem:[#allocation28_spill] sm:$0xff] %v5213_v38  ;;  %3931 = vmatprep.subr.bf16.mxu0 %v5213_v38  ;;  %5890 = vst [vmem:[#allocation32_spill] sm:$0xff] %v5225_v45  ;;  %v5230_v60 = vpack.c.bf16 %v1486_v51, %v1483_v44  ;;  %v988_v26 = vsel %vm970_vm3, %v983_v36, %v985_v24 }
 0x260   : > { %5887 = vst [vmem:[#allocation29_spill] sm:$0xff] %v5216_v6  ;;  %3933 = vmatpush1.bf16.msra.mxu0 %v5218_v9  ;;  %5891 = vst [vmem:[#allocation33_spill] sm:$0xff] %v5228_v59 }
 0x261   : > { %3953 = vmatpush3.bf16.msra.mxu1 %v5183_v21  ;;  %5892 = vst [vmem:[#allocation34_spill] sm:$0xff] %v5230_v60  ;;  %3935 = vmatprep.subr.bf16.mxu0 %v5225_v45  ;;  %5893 = vst [vmem:[#allocation35_spill] sm:$0xff] %v5236_v5  ;;  %v1014_v3 = vpop.permute.xlu1 %1013 }
 0x262   : > { %3955 = vmatprep.subr.bf16.mxu1 %v5186_v50  ;;  %v1016_v51 = vpop.permute.xlu0 %1015 }
 0x264   : > { %3937 = vmatpush1.bf16.msra.mxu0 %v5230_v60 }
 0x265   : > { %3957 = vmatpush3.bf16.msra.mxu1 %v5189_v34  ;;  %3939 = vmatprep.subr.bf16.mxu0 %v5236_v5  ;;  %v1012_v44 = vpop.permute.xlu1 %1011 }
 0x266   : > { %3959 = vmatprep.subr.bf16.mxu1 %v5192_v48  ;;  %v1043_v1 = vpop.permute.xlu0 %1042  ;;  %v1017_v5 = vsel %vm1002_vm4, %v1012_v44, %v1014_v3 }
 0x269   : > { %3961 = vmatpush3.bf16.msra.mxu1 %v5195_v2  ;;  %v1045_v0 = vpop.permute.xlu1 %1044 }
 0x26a   : > { %3963 = vmatprep.subr.bf16.mxu1 %v5198_v4  ;;  %v1041_v45 = vpop.permute.xlu0 %1040  ;;  %v1047_v36 = vsel %vm1031_vm5, %v1043_v1, %v1045_v0 }
 0x26d   : > { %3965 = vmatpush3.bf16.msra.mxu1 %v5201_v11  ;;  %v1072_v16 = vpop.permute.xlu1 %1071 }
 0x26e   : > { %3967 = vmatprep.subr.bf16.mxu1 %v5204_v25  ;;  %v1074_v60 = vpop.permute.xlu0 %1073  ;;  %v1018_v25 = vsel %vm1002_vm4, %v1014_v3, %v1016_v51 }
 0x271   : > { %3969 = vmatpush3.bf16.msra.mxu1 %v5207_v41  ;;  %v1070_v9 = vpop.permute.xlu1 %1069  ;;  %v1046_v41 = vsel %vm1031_vm5, %v1041_v45, %v1043_v1 }
 0x272   : > { %3971 = vmatprep.subr.bf16.mxu1 %v5211_v28  ;;  %v989_v28 = vsel %vm970_vm3, %v985_v24, %v987_v35  ;;  %v1075_v22 = vsel %vm1060_vm7, %v1070_v9, %v1072_v16 }
 0x273   : > { %v994_v19 = vadd.f32 %v989_v28, %v4928_v20 }
 0x275   : > { %3973 = vmatpush3.bf16.msra.mxu1 %v5216_v6  ;;  %v993_v6 = vadd.f32 %v988_v26, %v4924_v17  ;;  %v1023_v4 = vadd.f32 %v1018_v25, %v994_v19  ;;  %v1076_v17 = vsel %vm1060_vm7, %v1072_v16, %v1074_v60 }
 0x276   : > { %3975 = vmatprep.subr.bf16.mxu1 %v5223_v31 }
 0x277   : > { %v1022_v58 = vadd.f32 %v1017_v5, %v993_v6  ;;  %v1052_v24 = vadd.f32 %v1047_v36, %v1023_v4  ;;  %v995_v4 = vadd.f32 %v4914_v13, %v987_v35 }
 0x279   : > { %3977 = vmatpush3.bf16.msra.mxu1 %v5228_v59  ;;  %v1103_v59 = vpop.permute.xlu1 %1102  ;;  %v1051_v11 = vadd.f32 %v1046_v41, %v1022_v58  ;;  %v1081_v3 = vadd.f32 %v1076_v17, %v1052_v24  ;;  %v1024_v36 = vadd.f32 %v1016_v51, %v995_v4  ;;  %v1489_v4 = vld [vmem:[#allocation8 + $0x300] sm:$0xff] }
 0x27a   : > { %3985 = vmatprep.subr.bf16.mxu1 %v5022_v29  ;;  %v1101_v29 = vpop.permute.xlu0 %1100 }
 0x27b   : > { %v1080_v44 = vadd.f32 %v1075_v22, %v1051_v11  ;;  %v1105_v9 = vsel %vm1089_vm8, %v1101_v29, %v1103_v59 }
 0x27c   : > { %v1110_v1 = vadd.f32 %v1105_v9, %v1081_v3 }
 0x27d   : > { %v1130_v38 = vpop.permute.xlu1 %1129 }
 0x27e   : > { %v1099_v10 = vpop.permute.xlu0 %1098 }
 0x27f   : > { %v1104_v6 = vsel %vm1089_vm8, %v1099_v10, %v1101_v29 }
 0x280   : > { %v1109_v26 = vadd.f32 %v1104_v6, %v1080_v44  ;;  %v1053_v44 = vadd.f32 %v1045_v0, %v1024_v36  ;;  %v1499_v36 = vld [vmem:[#allocation8 + $0x350] sm:$0xff] }
 0x281   : > { %v1128_v46 = vpop.permute.xlu1 %1127 }
 0x282   : > { %v1132_v31 = vpop.permute.xlu0 %1131  ;;  %v1133_v45 = vsel %vm1118_vm9, %v1128_v46, %v1130_v38  ;;  %v1082_v6 = vadd.f32 %v1074_v60, %v1053_v44 }
 0x283   : > { %v1134_v58 = vsel %vm1118_vm9, %v1130_v38, %v1132_v31  ;;  %v1138_v20 = vadd.f32 %v1133_v45, %v1109_v26 }
 0x284   : > { %v1139_v11 = vadd.f32 %v1134_v58, %v1110_v1  ;;  %v1111_v24 = vadd.f32 %v1103_v59, %v1082_v6 }
 0x285   : > { %v1161_v52 = vpop.permute.xlu1 %1160 }
 0x286   : > { %v1159_v23 = vpop.permute.xlu0 %1158 }
 0x287   : > { %v1163_v22 = vsel %vm1147_vm10, %v1159_v23, %v1161_v52 }
 0x288   : > { %v1168_v29 = vadd.f32 %v1163_v22, %v1139_v11 }
 0x289   : > { %v1188_v12 = vpop.permute.xlu1 %1187 }
 0x28a   : > { %v1157_v5 = vpop.permute.xlu0 %1156 }
 0x28b   : > { %v1162_v19 = vsel %vm1147_vm10, %v1157_v5, %v1159_v23  ;;  %v1140_v5 = vadd.f32 %v1132_v31, %v1111_v24  ;;  %v5894_v31 = vmov 0.0   ;;  %v1495_v24 = vld [vmem:[#allocation8 + $0x330] sm:$0xff] }
 0x28c   : > { %v1167_v28 = vadd.f32 %v1162_v19, %v1138_v20 }
 0x28d   : > { %v1186_v41 = vpop.permute.xlu1 %1185  ;;  %v1169_v13 = vadd.f32 %v1161_v52, %v1140_v5  ;;  %v1498_v5 = vld [vmem:[#allocation8 + $0x348] sm:$0xff] }
 0x28e   : > { %v1190_v16 = vpop.permute.xlu0 %1189  ;;  %v1191_v10 = vsel %vm1176_vm6, %v1186_v41, %v1188_v12 }
 0x28f   : > { %v1192_v25 = vsel %vm1176_vm6, %v1188_v12, %v1190_v16  ;;  %v5258_v46 = vadd.f32 %v1191_v10, %v1167_v28  ;;  %v1198_v45 = vadd.f32 %v1190_v16, %v1169_v13  ;;  %v5857_v13 = vmov 1.0  }
 0x290   : > { %v5260_v38 = vadd.f32 %v1192_v25, %v1168_v29  ;;  %v1492_v25 = vld [vmem:[#allocation8 + $0x318] sm:$0xff] }
 0x291   : > { %v1346_v17 = vmax.f32 %v5258_v46, 1.0  ;;  %v1348_v3 = vmax.f32 %v1198_v45, 1.0  ;;  %vm1337_vm14 = vcmp.gt.f32.partialorder %v5258_v46, 0.0  ;;  %v1496_v29 = vld [vmem:[#allocation8 + $0x338] sm:$0xff]  ;;  %vm1339_vm15 = vcmp.gt.f32.partialorder %v1198_v45, 0.0 }
 0x292   : > { %v1347_v23 = vmax.f32 %v5260_v38, 1.0  ;;  %vm1338_vm13 = vcmp.gt.f32.partialorder %v5260_v38, 0.0  ;;  %v1373_v58 = vpop.permute.xlu0 %1372  ;;  %v3485_v41 = vsel %vm1337_vm14, 1.0, %v5894_v31  ;;  %v5278_v6 = vpack.c.bf16 %v1499_v36, %v1496_v29  ;;  %v2072_v38 = vld [vmem:[#allocation6] sm:$0xff]  ;;  %v2078_v29 = vld [vmem:[#allocation6 + $0x30] sm:$0xff]  ;;  %v2081_v36 = vld [vmem:[#allocation6 + $0x48] sm:$0xff] }
 0x293   : > { %4417 = vrcp.f32 %v1346_v17  ;;  %v3486_v52 = vsel %vm1338_vm13, 1.0, %v5894_v31  ;;  %v1381_v28 = vrot.slane %v3485_v41, %v4910_v18  ;;  %v1500_v41 = vld [vmem:[#allocation8 + $0x358] sm:$0xff] }
 0x294   : > { %4419 = vrcp.f32 %v1347_v23  ;;  %v1385_v10 = vrot.slane %v3486_v52, %v4910_v18  ;;  %v5276_v23 = vpack.c.bf16 %v1492_v25, %v1489_v4  ;;  %v1497_v52 = vld [vmem:[#allocation8 + $0x340] sm:$0xff]  ;;  %v2122_v4 = vld [vmem:[#allocation6 + $0x190] sm:$0xff]  ;;  %v2125_v25 = vld [vmem:[#allocation6 + $0x1a8] sm:$0xff] }
 0x295   : > { %4421 = vrcp.f32 %v1348_v3  ;;  %v4158_v46 = vpack.c.bf16 %v2125_v25, %v2122_v4  ;;  %v2152_v4 = vld [vmem:[#allocation6 + $0x280] sm:$0xff]  ;;  %v2155_v25 = vld [vmem:[#allocation6 + $0x298] sm:$0xff] }
 0x29d   : > { %v4418_v35 = vpop.eup %4417 }
 0x29e   : > { %v4420_v12 = vpop.eup %4419  ;;  %v1350_v9 = vmul.f32 9.0, %v4418_v35  ;;  %v5286_v35 = vpack.c.bf16 %v1498_v5, %v1495_v24  ;;  %v2074_v5 = vld [vmem:[#allocation6 + $0x10] sm:$0xff] }
 0x29f   : > { %v1352_v26 = vmul.f32 9.0, %v4420_v12  ;;  %v4422_v12 = vpop.eup %4421 }
 0x2a0   : > { %v1358_v0 = vrot.slane %v1350_v9, %v4910_v18  ;;  %v5895_v9 = vmov 0.0|0.0  }
 0x2a1   : > { %v1362_v60 = vrot.slane %v1352_v26, %v4910_v18  ;;  %v5298_v26 = vsel %vm1339_vm15, 1.0, %v5894_v31 }
 0x2a2   : > { %v1389_v45 = vrot.slane %v5298_v26, %v4910_v18 }
 0x31b   : > { %v1290_v51 = vpop.f32.mrb[4].mxu1 }
 0x31c   : > { %v1367_v20 = vmul.f32 %v1358_v0, %v1290_v51  ;;  %v1292_v59 = vpop.f32.mrb[5].mxu1  ;;  %v1491_v51 = vld [vmem:[#allocation8 + $0x310] sm:$0xff] }
 0x31d   : > { %v1368_v1 = vmul.f32 %v1362_v60, %v1292_v59  ;;  %v1294_v22 = vpop.f32.mrb[6].mxu1 }
 0x31e   : > { %v1375_v19 = vadd.f32 %v1373_v58, %v1367_v20  ;;  %v1295_v16 = vpop.f32.mrb[7].mxu1  ;;  %v2079_v22 = vld [vmem:[#allocation6 + $0x38] sm:$0xff] }
 0x31f   : > { %v1376_v11 = vadd.f32 %v1373_v58, %v1368_v1  ;;  %v5914_v1 = vld [vmem:[#allocation34_spill] sm:$0xff]  ;;  %v5915_v16 = vld [vmem:[#allocation35_spill] sm:$0xff] }
 0x320   : > { %v1390_v17 = vmul.f32 %v1381_v28, %v1375_v19  ;;  %v2082_v19 = vld [vmem:[#allocation6 + $0x50] sm:$0xff] }
 0x321   : > { %v1391_v44 = vmul.f32 %v1385_v10, %v1376_v11  ;;  %v5363_v11 = vld [vmem:[%s504_s23] sm:$0xff]  ;;  %v4098_v28 = vpack.c.bf16 %v2082_v19, %v2079_v22 }
 0x322   : > { %v2169_v24 = vcombine.high %v5363_v11, %v5363_v11  ;;  %v2098_v19 = vld [vmem:[#allocation6 + $0xd0] sm:$0xff] }
 0x323   : > { %1568 = vmatprep.mubr.f32.mxu0 %v1391_v44  ;;  %1710 = vmatprep.mubr.f32.mxu1 %v1391_v44  ;;  %v2085_v44 = vld [vmem:[#allocation6 + $0x68] sm:$0xff] }
 0x324   : > { %1569 = vmatmul.mubr.f32.vlgmr.msra.gmra.mrb[4].mxu0 %v1390_v17  ;;  %1711 = vmatmul.mubr.f32.vlgmr.msra.gmra.mrb[12].mxu1 %v1390_v17  ;;  %v2088_v17 = vld [vmem:[#allocation6 + $0x80] sm:$0xff] }
 0x325   : > { %3987 = vmatpush1.bf16.msra.mxu1 %v5026_v33  ;;  %3490 = vmatprep.mubr.msk.f32.mxu1 %vm1338_vm13, %v5857_v13  ;;  %v1354_v33 = vmul.f32 9.0, %v4422_v12  ;;  %v2077_v12 = vld [vmem:[#allocation6 + $0x28] sm:$0xff] }
 0x326   : > { %3989 = vmatprep.subr.bf16.mxu1 %v5029_v37  ;;  %3941 = vmatpush1.bf16.msra.mxu0 %v5276_v23 }
 0x327   : > { %3943 = vmatprep.subr.bf16.mxu0 %v5278_v6  ;;  %1639 = vmatprep.mubr.f32.mxu0 %v5894_v31  ;;  %v1366_v37 = vrot.slane %v1354_v33, %v4910_v18  ;;  %v4100_v33 = vpack.c.bf16 %v2081_v36, %v2078_v29  ;;  %v2108_v29 = vld [vmem:[#allocation6 + $0x120] sm:$0xff]  ;;  %v2111_v36 = vld [vmem:[#allocation6 + $0x138] sm:$0xff] }
 0x329   : > { %3991 = vmatpush1.bf16.msra.mxu1 %v5034_v40 }
 0x32a   : > { %3993 = vmatprep.subr.bf16.mxu1 %v5039_v42  ;;  %3945 = vmatpush1.bf16.msra.mxu0 %v5286_v35  ;;  %v1494_v42 = vld [vmem:[#allocation8 + $0x328] sm:$0xff] }
 0x32b   : > { %3978 = vmatprep.subr.bf16.mxu0 %v5895_v9  ;;  %v3979_v59 = vpack.c.bf16 %v1494_v42, %v1491_v51  ;;  %v2091_v51 = vld [vmem:[#allocation6 + $0x98] sm:$0xff]  ;;  %v2094_v42 = vld [vmem:[#allocation6 + $0xb0] sm:$0xff] }
 0x32d   : > { %3995 = vmatpush1.bf16.msra.mxu1 %v5046_v47 }
 0x32e   : > { %3997 = vmatprep.subr.bf16.mxu1 %v5051_v49 }
 0x32f   : > { %v1331_v3 = vpop.f32.mrb[8].mxu1 }
 0x330   : > { %v1369_v0 = vmul.f32 %v1366_v37, %v1331_v3  ;;  %v3712_v40 = vpop.f32.mrb[9].mxu1  ;;  %v2131_v37 = vld [vmem:[#allocation6 + $0x1d8] sm:$0xff]  ;;  %v2084_v3 = vld [vmem:[#allocation6 + $0x60] sm:$0xff] }
 0x331   : > { %3999 = vmatpush1.bf16.msra.mxu1 %v5056_v54  ;;  %v1334_v60 = vpop.f32.mrb[10].mxu1  ;;  %v3982_v54 = vpack.c.bf16 %v1500_v41, %v1497_v52  ;;  %v4160_v40 = vpack.c.bf16 %v2077_v12, %v2074_v5  ;;  %v2090_v52 = vld [vmem:[#allocation6 + $0x90] sm:$0xff]  ;;  %v2093_v41 = vld [vmem:[#allocation6 + $0xa8] sm:$0xff]  ;;  %v2104_v5 = vld [vmem:[#allocation6 + $0x100] sm:$0xff] }
 0x332   : > { %v1377_v20 = vadd.f32 %v1373_v58, %v1369_v0  ;;  %4001 = vmatprep.subr.bf16.mxu1 %v5061_v56  ;;  %v3713_v47 = vpop.f32.mrb[11].mxu1  ;;  %v5896_v56 = vld [vmem:[#allocation23_spill] sm:$0xff]  ;;  %v2075_v58 = vld [vmem:[#allocation6 + $0x18] sm:$0xff] }
 0x333   : > { %v4096_v10 = vpack.c.bf16 %v2075_v58, %v2072_v38  ;;  %v2087_v0 = vld [vmem:[#allocation6 + $0x78] sm:$0xff]  ;;  %v2134_v47 = vld [vmem:[#allocation6 + $0x1f0] sm:$0xff]  ;;  %v2109_v58 = vld [vmem:[#allocation6 + $0x128] sm:$0xff] }
 0x334   : > { %v1392_v49 = vmul.f32 %v1389_v45, %v1377_v20  ;;  %v2083_v20 = vld [vmem:[#allocation6 + $0x58] sm:$0xff]  ;;  %v4104_v45 = vpack.c.bf16 %v2087_v0, %v2084_v3  ;;  %v2114_v3 = vld [vmem:[#allocation6 + $0x150] sm:$0xff]  ;;  %v2117_v0 = vld [vmem:[#allocation6 + $0x168] sm:$0xff] }
 0x335   : > { %4003 = vmatpush1.bf16.msra.mxu1 %v5066_v61  ;;  %v5897_v61 = vld [vmem:[#allocation16_spill] sm:$0xff]  ;;  %v2107_v12 = vld [vmem:[#allocation6 + $0x118] sm:$0xff] }
 0x336   : > { %3488 = vmatmul.mubr.msk.f32.vlgmr.msra.gmra.mrb[4].mxu0 %vm956_vm2, %v1392_v49  ;;  %4005 = vmatprep.subr.bf16.mxu1 %v5071_v63  ;;  %v5898_v63 = vld [vmem:[#allocation17_spill] sm:$0xff] }
 0x337   : > { %3980 = vmatpush3.bf16.msra.mxu0 %v3979_v59  ;;  %3722 = vmatprep.mubr.msk.f32.mxu0 %vm4574_vm0, %v5894_v31 }
 0x338   : > { %3981 = vmatprep.subr.bf16.mxu0 %v5895_v9 }
 0x339   : > { %4007 = vmatpush1.bf16.msra.mxu1 %v5076_v7  ;;  %v5899_v7 = vld [vmem:[#allocation24_spill] sm:$0xff] }
 0x33a   : > { %4009 = vmatprep.subr.bf16.mxu1 %v5079_v8  ;;  %v5900_v8 = vld [vmem:[#allocation25_spill] sm:$0xff] }
 0x33b   : > { %3983 = vmatpush3.bf16.msra.mxu0 %v3982_v54 }
 0x33c   : > { %4057 = vmatprep.subr.bf16.mxu0 %v5173_v55  ;;  %v5909_v55 = vld [vmem:[#allocation22_spill] sm:$0xff] }
 0x33d   : > { %4011 = vmatpush1.bf16.msra.mxu1 %v5082_v14  ;;  %v5901_v14 = vld [vmem:[#allocation18_spill] sm:$0xff] }
 0x33e   : > { %3723 = vmatmul.mubr.msk.f32.vlgmr.msra.gmra.mrb[6].mxu0 %vm956_vm2, %v1392_v49  ;;  %4013 = vmatprep.subr.bf16.mxu1 %v5085_v15  ;;  %v5902_v15 = vld [vmem:[#allocation19_spill] sm:$0xff]  ;;  %v4106_v49 = vpack.c.bf16 %v2094_v42, %v2091_v51  ;;  %v2121_v51 = vld [vmem:[#allocation6 + $0x188] sm:$0xff] }
 0x33f   : > { %4059 = vmatpush3.bf16.msra.mxu0 %v5176_v62  ;;  %3493 = vmatprep.mubr.msk.f32.mxu0 %vm1338_vm13, %v5857_v13  ;;  %v5910_v62 = vld [vmem:[#allocation28_spill] sm:$0xff]  ;;  %v2124_v42 = vld [vmem:[#allocation6 + $0x1a0] sm:$0xff]  ;;  %vm2342_vm13 = vcmask 261124  }
 0x340   : > { %4061 = vmatprep.subr.bf16.mxu0 %v5179_v32  ;;  %v5911_v32 = vld [vmem:[#allocation33_spill] sm:$0xff] }
 0x341   : > { %4015 = vmatpush1.bf16.msra.mxu1 %v5088_v27  ;;  %v5903_v27 = vld [vmem:[#allocation26_spill] sm:$0xff] }
 0x342   : > { %4017 = vmatprep.subr.bf16.mxu1 %v5091_v30  ;;  %v5904_v30 = vld [vmem:[#allocation27_spill] sm:$0xff] }
 0x343   : > { %4063 = vmatpush3.bf16.msra.mxu0 %v5183_v21  ;;  %v5912_v21 = vld [vmem:[#allocation30_spill] sm:$0xff] }
 0x344   : > { %4065 = vmatprep.subr.bf16.mxu0 %v5186_v50  ;;  %v2073_v50 = vld [vmem:[#allocation6 + $0x8] sm:$0xff] }
 0x345   : > { %4019 = vmatpush1.bf16.msra.mxu1 %v5096_v39  ;;  %v5905_v39 = vld [vmem:[#allocation20_spill] sm:$0xff] }
 0x346   : > { %4021 = vmatprep.subr.bf16.mxu1 %v5099_v43  ;;  %v5906_v43 = vld [vmem:[#allocation21_spill] sm:$0xff] }
 0x347   : > { %4067 = vmatpush3.bf16.msra.mxu0 %v5189_v34  ;;  %v2076_v34 = vld [vmem:[#allocation6 + $0x20] sm:$0xff] }
 0x348   : > { %4069 = vmatprep.subr.bf16.mxu0 %v5192_v48  ;;  %v5913_v48 = vld [vmem:[#allocation32_spill] sm:$0xff] }
 0x349   : > { %4023 = vmatpush1.bf16.msra.mxu1 %v5104_v53  ;;  %v5907_v53 = vld [vmem:[#allocation29_spill] sm:$0xff] }
 0x34a   : > { %4025 = vmatprep.subr.bf16.mxu1 %v5107_v57  ;;  %v5908_v57 = vld [vmem:[#allocation31_spill] sm:$0xff] }
 0x34b   : > { %4071 = vmatpush3.bf16.msra.mxu0 %v5195_v2  ;;  %v4094_v2 = vpack.c.bf16 %v2076_v34, %v2073_v50  ;;  %v2149_v50 = vld [vmem:[#allocation6 + $0x268] sm:$0xff] }
 0x34c   : > { %4073 = vmatprep.subr.bf16.mxu0 %v5896_v56  ;;  %v2100_v56 = vld [vmem:[#allocation6 + $0xe0] sm:$0xff] }
 0x34d   : > { %4027 = vmatpush1.bf16.msra.mxu1 %v5897_v61 }
 0x34e   : > { %4029 = vmatprep.subr.bf16.mxu1 %v5898_v63  ;;  %v2086_v63 = vld [vmem:[#allocation6 + $0x70] sm:$0xff] }
 0x34f   : > { %4075 = vmatpush3.bf16.msra.mxu0 %v5899_v7  ;;  %v2089_v7 = vld [vmem:[#allocation6 + $0x88] sm:$0xff] }
 0x350   : > { %4077 = vmatprep.subr.bf16.mxu0 %v5900_v8  ;;  %v4108_v8 = vpack.c.bf16 %v2093_v41, %v2090_v52  ;;  %v2120_v52 = vld [vmem:[#allocation6 + $0x180] sm:$0xff]  ;;  %v2123_v41 = vld [vmem:[#allocation6 + $0x198] sm:$0xff] }
 0x351   : > { %4031 = vmatpush1.bf16.msra.mxu1 %v5901_v14  ;;  %v2140_v14 = vld [vmem:[#allocation6 + $0x220] sm:$0xff] }
 0x352   : > { %4033 = vmatprep.subr.bf16.mxu1 %v5902_v15  ;;  %v2143_v15 = vld [vmem:[#allocation6 + $0x238] sm:$0xff] }
 0x353   : > { %4079 = vmatpush3.bf16.msra.mxu0 %v5903_v27 }
 0x354   : > { %4081 = vmatprep.subr.bf16.mxu0 %v5904_v30  ;;  %v2099_v30 = vld [vmem:[#allocation6 + $0xd8] sm:$0xff] }
 0x355   : > { %4035 = vmatpush1.bf16.msra.mxu1 %v5905_v39  ;;  %v4168_v39 = vpack.c.bf16 %v2089_v7, %v2086_v63  ;;  %v2116_v63 = vld [vmem:[#allocation6 + $0x160] sm:$0xff]  ;;  %v2119_v7 = vld [vmem:[#allocation6 + $0x178] sm:$0xff] }
 0x356   : > { %4037 = vmatprep.subr.bf16.mxu1 %v5906_v43  ;;  %v2103_v43 = vld [vmem:[#allocation6 + $0xf8] sm:$0xff] }
 0x357   : > { %4083 = vmatpush3.bf16.msra.mxu0 %v5907_v53  ;;  %v2106_v53 = vld [vmem:[#allocation6 + $0x110] sm:$0xff] }
 0x358   : > { %4085 = vmatprep.subr.bf16.mxu0 %v5908_v57  ;;  %v4170_v57 = vpack.c.bf16 %v2143_v15, %v2140_v14  ;;  %v4114_v34 = vpack.c.bf16 %v2106_v53, %v2103_v43  ;;  %v2126_v15 = vld [vmem:[#allocation6 + $0x1b0] sm:$0xff] }
 0x359   : > { %4039 = vmatpush1.bf16.msra.mxu1 %v5909_v55  ;;  %v2092_v55 = vld [vmem:[#allocation6 + $0xa0] sm:$0xff] }
 0x35a   : > { %4041 = vmatprep.subr.bf16.mxu1 %v5910_v62  ;;  %v2095_v62 = vld [vmem:[#allocation6 + $0xb8] sm:$0xff] }
 0x35b   : > { %4087 = vmatpush3.bf16.msra.mxu0 %v5911_v32  ;;  %v4172_v38 = vpack.c.bf16 %v2095_v62, %v2092_v55  ;;  %v2135_v55 = vld [vmem:[#allocation6 + $0x1f8] sm:$0xff] }
 0x35c   : > { %4088 = vmatprep.subr.bf16.mxu0 %v5895_v9  ;;  %v2139_v62 = vld [vmem:[#allocation6 + $0x218] sm:$0xff] }
 0x35d   : > { %4043 = vmatpush1.bf16.msra.mxu1 %v5912_v21  ;;  %v2146_v21 = vld [vmem:[#allocation6 + $0x250] sm:$0xff] }
 0x35e   : > { %3494 = vmatmul.mubr.msk.f32.vlgmr.msra.gmra.mrb[8].mxu0 %vm1337_vm14, %v5857_v13  ;;  %4045 = vmatprep.subr.bf16.mxu1 %v5913_v48  ;;  %v2102_v48 = vld [vmem:[#allocation6 + $0xf0] sm:$0xff]  ;;  %v4174_v22 = vpack.c.bf16 %v2149_v50, %v2146_v21 }
 0x35f   : > { %4090 = vmatpush3.bf16.msra.mxu0 %v3979_v59  ;;  %3733 = vmatprep.mubr.msk.f32.mxu0 %vm4574_vm0, %v5894_v31  ;;  %v2137_v59 = vld [vmem:[#allocation6 + $0x208] sm:$0xff] }
 0x360   : > { %4091 = vmatprep.subr.bf16.mxu0 %v5895_v9  ;;  %v2128_v9 = vld [vmem:[#allocation6 + $0x1c0] sm:$0xff]  ;;  %v4166_v61 = vpack.c.bf16 %v2137_v59, %v2134_v47  ;;  %v2167_v59 = vld [vmem:[#allocation6 + $0x2f8] sm:$0xff] }
 0x361   : > { %4047 = vmatpush1.bf16.msra.mxu1 %v5914_v1  ;;  %v4162_v60 = vpack.c.bf16 %v2131_v37, %v2128_v9  ;;  %v2112_v1 = vld [vmem:[#allocation6 + $0x140] sm:$0xff]  ;;  %v2158_v9 = vld [vmem:[#allocation6 + $0x2b0] sm:$0xff]  ;;  %v2161_v37 = vld [vmem:[#allocation6 + $0x2c8] sm:$0xff] }
 0x362   : > { %4049 = vmatprep.subr.bf16.mxu1 %v5915_v16  ;;  %v2101_v16 = vld [vmem:[#allocation6 + $0xe8] sm:$0xff]  ;;  %v2164_v47 = vld [vmem:[#allocation6 + $0x2e0] sm:$0xff] }
 0x363   : > { %4093 = vmatpush3.bf16.msra.mxu0 %v3982_v54  ;;  %v2097_v54 = vld [vmem:[#allocation6 + $0xc8] sm:$0xff] }
 0x364   : > { %3491 = vmatmul.mubr.msk.f32.vlgmr.msra.gmra.mrb[14].mxu1 %vm1337_vm14, %v5857_v13  ;;  %4095 = vmatprep.subr.bf16.mxu0 %v4094_v2  ;;  %v4110_v27 = vpack.c.bf16 %v2100_v56, %v2097_v54  ;;  %v2105_v2 = vld [vmem:[#allocation6 + $0x108] sm:$0xff]  ;;  %v2127_v54 = vld [vmem:[#allocation6 + $0x1b8] sm:$0xff]  ;;  %v2130_v56 = vld [vmem:[#allocation6 + $0x1d0] sm:$0xff] }
 0x365   : > { %4051 = vmatpush1.bf16.msra.mxu1 %v5276_v23  ;;  %1924 = vmatprep.mubr.f32.mxu1 %v5894_v31  ;;  %v4102_v23 = vpack.c.bf16 %v2088_v17, %v2085_v44  ;;  %v4176_v44 = vpack.c.bf16 %v2101_v16, %v2098_v19  ;;  %v2115_v17 = vld [vmem:[#allocation6 + $0x158] sm:$0xff]  ;;  %v4130_v14 = vpack.c.bf16 %v2130_v56, %v2127_v54  ;;  %v2144_v19 = vld [vmem:[#allocation6 + $0x240] sm:$0xff] }
 0x366   : > { %3734 = vmatmul.mubr.msk.f32.vlgmr.msra.gmra.mrb[10].mxu0 %vm956_vm2, %v5298_v26  ;;  %4053 = vmatprep.subr.bf16.mxu1 %v5278_v6  ;;  %v2080_v6 = vld [vmem:[#allocation6 + $0x40] sm:$0xff]  ;;  %v2147_v16 = vld [vmem:[#allocation6 + $0x258] sm:$0xff] }
 0x367   : > { %4097 = vmatpush1.bf16.msra.mxu0 %v4096_v10  ;;  %2235 = vmatprep.mubr.f32.mxu0 %v2169_v24  ;;  %v4116_v10 = vpack.c.bf16 %v2105_v2, %v2102_v48  ;;  %v2141_v48 = vld [vmem:[#allocation6 + $0x228] sm:$0xff] }
 0x368   : > { %4099 = vmatprep.subr.bf16.mxu0 %v4098_v28  ;;  %v4118_v28 = vpack.c.bf16 %v2112_v1, %v2109_v58  ;;  %v2145_v2 = vld [vmem:[#allocation6 + $0x248] sm:$0xff]  ;;  %v5916_v58 = vmov 0  }
 0x369   : > { %4055 = vmatpush1.bf16.msra.mxu1 %v5286_v35  ;;  %v4164_v35 = vpack.c.bf16 %v2083_v20, %v2080_v6  ;;  %v2110_v6 = vld [vmem:[#allocation6 + $0x130] sm:$0xff]  ;;  %v2113_v20 = vld [vmem:[#allocation6 + $0x148] sm:$0xff] }
 0x36a   : > { %4159 = vmatprep.subr.bf16.mxu1 %v4158_v46  ;;  %v4178_v46 = vpack.c.bf16 %v2155_v25, %v2152_v4  ;;  %v2154_v4 = vld [vmem:[#allocation6 + $0x290] sm:$0xff]  ;;  %v4144_v25 = vpack.c.bf16 %v2147_v16, %v2144_v19 }
 0x36b   : > { %4101 = vmatpush1.bf16.msra.mxu0 %v4100_v33  ;;  %v4120_v33 = vpack.c.bf16 %v2111_v36, %v2108_v29  ;;  %v2150_v29 = vld [vmem:[#allocation6 + $0x270] sm:$0xff]  ;;  %v2153_v36 = vld [vmem:[#allocation6 + $0x288] sm:$0xff] }
 0x36c   : > { %3492 = vmatmul.mubr.msk.f32.vlgmr.msra.gmra.mrb[14].mxu1 %vm956_vm2, %v5298_v26  ;;  %4103 = vmatprep.subr.bf16.mxu0 %v4102_v23  ;;  %v2096_v26 = vld [vmem:[#allocation6 + $0xc0] sm:$0xff] }
 0x36d   : > { %4161 = vmatpush3.bf16.msra.mxu1 %v4160_v40  ;;  %2306 = vmatprep.mubr.f32.mxu1 %v2169_v24  ;;  %v4112_v32 = vpack.c.bf16 %v2099_v30, %v2096_v26  ;;  %v2118_v24 = vld [vmem:[#allocation6 + $0x170] sm:$0xff]  ;;  %v4180_v40 = vpack.c.bf16 %v2107_v12, %v2104_v5  ;;  %v4188_v26 = vpack.c.bf16 %v2119_v7, %v2116_v63  ;;  %v2133_v30 = vld [vmem:[#allocation6 + $0x1e8] sm:$0xff]  ;;  %v2156_v5 = vld [vmem:[#allocation6 + $0x2a0] sm:$0xff] }
 0x36e   : > { %4163 = vmatprep.subr.bf16.mxu1 %v4162_v60  ;;  %v4122_v23 = vpack.c.bf16 %v2118_v24, %v2115_v17  ;;  %v4182_v60 = vpack.c.bf16 %v2161_v37, %v2158_v9  ;;  %v2160_v17 = vld [vmem:[#allocation6 + $0x2c0] sm:$0xff]  ;;  %v4148_v24 = vpack.c.bf16 %v2153_v36, %v2150_v29  ;;  %v2159_v12 = vld [vmem:[#allocation6 + $0x2b8] sm:$0xff]  ;;  %v2166_v9 = vld [vmem:[#allocation6 + $0x2f0] sm:$0xff] }
 0x36f   : > { %4105 = vmatpush1.bf16.msra.mxu0 %v4104_v45  ;;  %v4124_v45 = vpack.c.bf16 %v2117_v0, %v2114_v3  ;;  %v4152_v37 = vpack.c.bf16 %v2159_v12, %v2156_v5  ;;  %v2162_v3 = vld [vmem:[#allocation6 + $0x2d0] sm:$0xff]  ;;  %v2165_v0 = vld [vmem:[#allocation6 + $0x2e8] sm:$0xff] }
 0x370   : > { %4107 = vmatprep.subr.bf16.mxu0 %v4106_v49  ;;  %v4126_v49 = vpack.c.bf16 %v2124_v42, %v2121_v51 }
 0x371   : > { %4165 = vmatpush3.bf16.msra.mxu1 %v4164_v35  ;;  %v4184_v35 = vpack.c.bf16 %v2113_v20, %v2110_v6 }
 0x372   : > { %4167 = vmatprep.subr.bf16.mxu1 %v4166_v61  ;;  %v4186_v61 = vpack.c.bf16 %v2167_v59, %v2164_v47 }
 0x373   : > { %4109 = vmatpush1.bf16.msra.mxu0 %v4108_v8  ;;  %v4128_v8 = vpack.c.bf16 %v2123_v41, %v2120_v52 }
 0x374   : > { %4111 = vmatprep.subr.bf16.mxu0 %v4110_v27  ;;  %v2129_v27 = vld [vmem:[#allocation6 + $0x1c8] sm:$0xff] }
 0x375   : > { %4169 = vmatpush3.bf16.msra.mxu1 %v4168_v39  ;;  %v2136_v39 = vld [vmem:[#allocation6 + $0x200] sm:$0xff]  ;;  %v4132_v43 = vpack.c.bf16 %v2129_v27, %v2126_v15 }
 0x376   : > { %4171 = vmatprep.subr.bf16.mxu1 %v4170_v57  ;;  %v4134_v53 = vpack.c.bf16 %v2136_v39, %v2133_v30  ;;  %v2132_v57 = vld [vmem:[#allocation6 + $0x1e0] sm:$0xff] }
 0x377   : > { %4113 = vmatpush1.bf16.msra.mxu0 %v4112_v32  ;;  %v2142_v32 = vld [vmem:[#allocation6 + $0x230] sm:$0xff]  ;;  %v4136_v21 = vpack.c.bf16 %v2135_v55, %v2132_v57 }
 0x378   : > { %4115 = vmatprep.subr.bf16.mxu0 %v4114_v34  ;;  %v4138_v50 = vpack.c.bf16 %v2142_v32, %v2139_v62  ;;  %v2138_v34 = vld [vmem:[#allocation6 + $0x210] sm:$0xff] }
 0x379   : > { %4173 = vmatpush3.bf16.msra.mxu1 %v4172_v38  ;;  %v2148_v38 = vld [vmem:[#allocation6 + $0x260] sm:$0xff]  ;;  %v4140_v1 = vpack.c.bf16 %v2141_v48, %v2138_v34 }
 0x37a   : > { %4175 = vmatprep.subr.bf16.mxu1 %v4174_v22  ;;  %v4142_v22 = vpack.c.bf16 %v2148_v38, %v2145_v2 }
 0x37b   : > { %4117 = vmatpush1.bf16.msra.mxu0 %v4116_v10  ;;  %v2151_v10 = vld [vmem:[#allocation6 + $0x278] sm:$0xff] }
 0x37c   : > { %4119 = vmatprep.subr.bf16.mxu0 %v4118_v28  ;;  %v4146_v28 = vpack.c.bf16 %v2154_v4, %v2151_v10 }
 0x37d   : > { %4177 = vmatpush3.bf16.msra.mxu1 %v4176_v44  ;;  %v2157_v44 = vld [vmem:[#allocation6 + $0x2a8] sm:$0xff] }
 0x37e   : > { %4179 = vmatprep.subr.bf16.mxu1 %v4178_v46  ;;  %v4150_v46 = vpack.c.bf16 %v2160_v17, %v2157_v44 }
 0x37f   : > { %4121 = vmatpush1.bf16.msra.mxu0 %v4120_v33  ;;  %v2163_v33 = vld [vmem:[#allocation6 + $0x2d8] sm:$0xff] }
 0x380   : > { %4123 = vmatprep.subr.bf16.mxu0 %v4122_v23  ;;  %v4154_v23 = vpack.c.bf16 %v2166_v9, %v2163_v33 }
 0x381   : > { %4181 = vmatpush3.bf16.msra.mxu1 %v4180_v40  ;;  %v4156_v40 = vpack.c.bf16 %v2165_v0, %v2162_v3 }
 0x382   : > { %4183 = vmatprep.subr.bf16.mxu1 %v4182_v60 }
 0x383   : > { %4125 = vmatpush1.bf16.msra.mxu0 %v4124_v45 }
 0x384   : > { %4127 = vmatprep.subr.bf16.mxu0 %v4126_v49 }
 0x385   : > { %4185 = vmatpush3.bf16.msra.mxu1 %v4184_v35 }
 0x386   : > { %4187 = vmatprep.subr.bf16.mxu1 %v4186_v61 }
 0x387   : > { %4129 = vmatpush1.bf16.msra.mxu0 %v4128_v8 }
 0x388   : > { %4131 = vmatprep.subr.bf16.mxu0 %v4130_v14 }
 0x389   : > { %4189 = vmatpush3.bf16.msra.mxu1 %v4188_v26 }
 0x38b   : > { %4133 = vmatpush1.bf16.msra.mxu0 %v4132_v43 }
 0x38c   : > { %2307 = vmatmul.mubr.f32.vlgmr.msra.gmra.mrb[16].mxu1 %v5363_v11  ;;  %4135 = vmatprep.subr.bf16.mxu0 %v4134_v53 }
 0x38d   : > { %2776 = vmatprep.mubr.bf16.mxu1 %v5916_v58 }
 0x38f   : > { %4137 = vmatpush1.bf16.msra.mxu0 %v4136_v21 }
 0x390   : > { %4139 = vmatprep.subr.bf16.mxu0 %v4138_v50 }
 0x393   : > { %4141 = vmatpush1.bf16.msra.mxu0 %v4140_v1 }
 0x394   : > { %4143 = vmatprep.subr.bf16.mxu0 %v4142_v22 }
 0x397   : > { %4145 = vmatpush1.bf16.msra.mxu0 %v4144_v25 }
 0x398   : > { %4147 = vmatprep.subr.bf16.mxu0 %v4146_v28 }
 0x39b   : > { %4149 = vmatpush1.bf16.msra.mxu0 %v4148_v24 }
 0x39c   : > { %4151 = vmatprep.subr.bf16.mxu0 %v4150_v46 }
 0x39f   : > { %4153 = vmatpush1.bf16.msra.mxu0 %v4152_v37 }
 0x3a0   : > { %4155 = vmatprep.subr.bf16.mxu0 %v4154_v23 }
 0x3a3   : > { %4157 = vmatpush1.bf16.msra.mxu0 %v4156_v40 }
 0x3a6   : > { %2236 = vmatmul.mubr.f32.vlgmr.msra.gmra.mrb[12].mxu0 %v5363_v11 }
 0x3f7   : > { %v3592_v51 = vpop.f32.mrb[12].mxu1 }
 0x3f8   : > { %v3593_v42 = vpop.f32.mrb[13].mxu1 }
 0x3f9   : > { %v3594_v60 = vadd.f32 %v3593_v42, %v3592_v51 }
 0x409   : > { %v1641_v6 = vpop.f32.mrb[4].mxu0 }
 0x40a   : > { %2327 = vst [vmem:[#allocation3] sm:$0xf] %v1641_v6  ;;  %2350 = vrot.lane.b32.xlu0 %v1641_v6, %s4575_s14  ;;  %v1643_v20 = vpop.f32.mrb[5].mxu0 }
 0x40b   : > { %2328 = vst [vmem:[#allocation3 + $0x8] sm:$0xf] %v1643_v20  ;;  %2352 = vrot.lane.b32.xlu1 %v1643_v20, %s4575_s14 }
 0x40e   : > { %2395 = vrot.lane.b32.xlu0 %v1641_v6, %s4576_s20 }
 0x40f   : > { %2649 = vrot.lane.b32.xlu1 %v1643_v20, %s4581_s17 }
 0x411   : > { %v1782_v45 = vpop.f32.mrb[6].mxu0 }
 0x412   : > { %v1783_v47 = vadd.f32 %v3594_v60, %v1782_v45  ;;  %v3724_v59 = vpop.f32.mrb[7].mxu0  ;;  %2437 = vrot.lane.b32.xlu0 %v1641_v6, %s4577_s25 }
 0x414   : > { %2354 = vrot.lane.b32.xlu1 %v1783_v47, %s4575_s14  ;;  %2330 = vst.msk [vmem:[#allocation3 + $0x10] sm:$0xf] %vm2329_vm1, %v1783_v47 }
 0x416   : > { %2479 = vrot.lane.b32.xlu0 %v1641_v6, %s4578_s11 }
 0x418   : > { %2399 = vrot.lane.b32.xlu1 %v1783_v47, %s4576_s20 }
 0x41a   : > { %2521 = vrot.lane.b32.xlu0 %v1641_v6, %s4579_s21 }
 0x41c   : > { %2441 = vrot.lane.b32.xlu1 %v1783_v47, %s4577_s25 }
 0x41e   : > { %2563 = vrot.lane.b32.xlu0 %v1641_v6, %s4580_s16 }
 0x420   : > { %2483 = vrot.lane.b32.xlu1 %v1783_v47, %s4578_s11 }
 0x422   : > { %2605 = vrot.lane.b32.xlu0 %v1641_v6, %s4582_s18 }
 0x424   : > { %2525 = vrot.lane.b32.xlu1 %v1783_v47, %s4579_s21 }
 0x426   : > { %2647 = vrot.lane.b32.xlu0 %v1641_v6, %s4581_s17 }
 0x428   : > { %2567 = vrot.lane.b32.xlu1 %v1783_v47, %s4580_s16 }
 0x42a   : > { %2397 = vrot.lane.b32.xlu0 %v1643_v20, %s4576_s20 }
 0x42c   : > { %2609 = vrot.lane.b32.xlu1 %v1783_v47, %s4582_s18 }
 0x42e   : > { %2439 = vrot.lane.b32.xlu0 %v1643_v20, %s4577_s25 }
 0x431   : > { %v3632_v11 = vpop.f32.mrb[8].mxu0 }
 0x432   : > { %v3633_v49 = vpop.f32.mrb[9].mxu0  ;;  %2481 = vrot.lane.b32.xlu0 %v1643_v20, %s4578_s11 }
 0x433   : > { %v3634_v52 = vadd.f32 %v3633_v49, %v3632_v11  ;;  %v2881_v49 = vld [vmem:[#allocation9 + $0x8] sm:$0xff] }
 0x436   : > { %2523 = vrot.lane.b32.xlu0 %v1643_v20, %s4579_s21 }
 0x439   : > { %v2067_v41 = vpop.f32.mrb[10].mxu0 }
 0x43a   : > { %v5403_v35 = vadd.f32 %v3634_v52, %v2067_v41  ;;  %v3735_v54 = vpop.f32.mrb[11].mxu0  ;;  %2565 = vrot.lane.b32.xlu0 %v1643_v20, %s4580_s16  ;;  %v2883_v52 = vld [vmem:[#allocation9 + $0x18] sm:$0xff] }
 0x43b   : > { %v5506_v41 = vpack.c.bf16 %v2883_v52, %v2881_v49  ;;  %v2880_v54 = vld [vmem:[#allocation9] sm:$0xff]  ;;  %v2918_v52 = vld [vmem:[#allocation9 + $0x130] sm:$0xff] }
 0x43c   : > { %v2323_v14 = vrot.slane %v5403_v35, %v4910_v18  ;;  %v2916_v49 = vld [vmem:[#allocation9 + $0x120] sm:$0xff] }
 0x43d   : > { %4191 = vmatprep.subr.bf16.mxu0 %v5506_v41 }
 0x43e   : > { %2607 = vrot.lane.b32.xlu0 %v1643_v20, %s4582_s18 }
 0x43f   : > { %v5407_v56 = vpop.f32.mrb[14].mxu1 }
 0x440   : > { %v5409_v61 = vpop.f32.mrb[15].mxu1  ;;  %v2315_v26 = vrot.slane %v5407_v56, %v4910_v18 }
 0x441   : > { %v2319_v39 = vrot.slane %v5409_v61, %v4910_v18 }
 0x442   : > { %2651 = vrot.lane.b32.xlu0 %v1783_v47, %s4581_s17 }
 0x45f   : > { %v3672_v63 = vpop.f32.mrb[16].mxu1 }
 0x460   : > { %v3673_v7 = vpop.f32.mrb[17].mxu1 }
 0x461   : > { %v3674_v8 = vadd.f32 %v3673_v7, %v3672_v63  ;;  %v2882_v63 = vld [vmem:[#allocation9 + $0x10] sm:$0xff] }
 0x462   : > { %v5508_v7 = vpack.c.bf16 %v2882_v63, %v2880_v54  ;;  %v5590_v54 = vpack.c.bf16 %v2918_v52, %v2916_v49 }
 0x463   : > { %v2326_v15 = vmul.f32 %v3674_v8, %v2323_v14  ;;  %v2885_v8 = vld [vmem:[#allocation9 + $0x28] sm:$0xff]  ;;  %v2887_v14 = vld [vmem:[#allocation9 + $0x38] sm:$0xff] }
 0x464   : > { %4193 = vmatpush1.bf16.msra.mxu0 %v5508_v7 }
 0x465   : > { %v5414_v27 = vrot.slane %v2326_v15, 4  ;;  %v5516_v15 = vpack.c.bf16 %v2887_v14, %v2885_v8  ;;  %v2921_v8 = vld [vmem:[#allocation9 + $0x148] sm:$0xff]  ;;  %v2923_v14 = vld [vmem:[#allocation9 + $0x158] sm:$0xff] }
 0x467   : > { %2368 = vrot.lane.b32.xlu1 %v5414_v27, %s4575_s14  ;;  %2343 = vst.msk [vmem:[#allocation3 + $0x10] sm:$0xf0] %vm2342_vm13, %v5414_v27  ;;  %4195 = vmatprep.subr.bf16.mxu0 %v5516_v15 }
 0x46b   : > { %2413 = vrot.lane.b32.xlu1 %v5414_v27, %s4576_s20 }
 0x46f   : > { %2455 = vrot.lane.b32.xlu1 %v5414_v27, %s4577_s25 }
 0x473   : > { %2497 = vrot.lane.b32.xlu1 %v5414_v27, %s4578_s11 }
 0x477   : > { %2539 = vrot.lane.b32.xlu1 %v5414_v27, %s4579_s21 }
 0x479   : > { %v2237_v30 = vpop.f32.mrb[12].mxu0 }
 0x47a   : > { %v2324_v43 = vmul.f32 %v2315_v26, %v2237_v30  ;;  %v2239_v53 = vpop.f32.mrb[13].mxu0  ;;  %v2886_v26 = vld [vmem:[#allocation9 + $0x30] sm:$0xff] }
 0x47b   : > { %v2325_v57 = vmul.f32 %v2319_v39, %v2239_v53  ;;  %2581 = vrot.lane.b32.xlu1 %v5414_v27, %s4580_s16  ;;  %v2889_v39 = vld [vmem:[#allocation9 + $0x48] sm:$0xff] }
 0x47c   : > { %v2334_v55 = vrot.slane %v2324_v43, 4  ;;  %v2351_v62 = vpop.permute.xlu0 %2350  ;;  %v2891_v43 = vld [vmem:[#allocation9 + $0x58] sm:$0xff] }
 0x47d   : > { %v2335_v32 = vrot.slane %v2325_v57, 4  ;;  %v2353_v21 = vpop.permute.xlu1 %2352  ;;  %v5526_v53 = vpack.c.bf16 %v2891_v43, %v2889_v39  ;;  %v2888_v57 = vld [vmem:[#allocation9 + $0x40] sm:$0xff]  ;;  %v2922_v39 = vld [vmem:[#allocation9 + $0x150] sm:$0xff] }
 0x47e   : > { %2340 = vst [vmem:[#allocation3] sm:$0xf0] %v2334_v55  ;;  %v2356_v50 = vsel %vm970_vm3, %v2351_v62, %v2353_v21 }
 0x47f   : > { %2341 = vst [vmem:[#allocation3 + $0x8] sm:$0xf0] %v2335_v32  ;;  %2361 = vst [vmem:[#allocation3 + $0x18] sm:$0xf] %v2356_v50  ;;  %2366 = vrot.lane.b32.xlu0 %v2335_v32, %s4575_s14  ;;  %2623 = vrot.lane.b32.xlu1 %v5414_v27, %s4582_s18 }
 0x480   : > { %v2396_v34 = vpop.permute.xlu0 %2395 }
 0x481   : > { %v5438_v48 = vpop.permute.xlu1 %2649 }
 0x483   : > { %2411 = vrot.lane.b32.xlu0 %v2335_v32, %s4576_s20  ;;  %2364 = vrot.lane.b32.xlu1 %v2334_v55, %s4575_s14 }
 0x484   : > { %v2438_v2 = vpop.permute.xlu0 %2437 }
 0x486   : > { %v2355_v38 = vpop.permute.xlu1 %2354 }
 0x487   : > { %v2357_v58 = vsel %vm970_vm3, %v2353_v21, %v2355_v38  ;;  %2363 = vst.msk [vmem:[#allocation3 + $0x28] sm:$0xf] %vm2329_vm1, %v2355_v38  ;;  %2453 = vrot.lane.b32.xlu0 %v2335_v32, %s4577_s25  ;;  %2409 = vrot.lane.b32.xlu1 %v2334_v55, %s4576_s20  ;;  %v2895_v21 = vld [vmem:[#allocation9 + $0x78] sm:$0xff]  ;;  %v2897_v38 = vld [vmem:[#allocation9 + $0x88] sm:$0xff] }
 0x488   : > { %2362 = vst [vmem:[#allocation3 + $0x20] sm:$0xf] %v2357_v58  ;;  %v2480_v1 = vpop.permute.xlu0 %2479  ;;  %v2899_v58 = vld [vmem:[#allocation9 + $0x98] sm:$0xff] }
 0x48a   : > { %v2400_v22 = vpop.permute.xlu1 %2399 }
 0x48b   : > { %2408 = vst.msk [vmem:[#allocation3 + $0x40] sm:$0xf] %vm2329_vm1, %v2400_v22  ;;  %2495 = vrot.lane.b32.xlu0 %v2335_v32, %s4578_s11  ;;  %2451 = vrot.lane.b32.xlu1 %v2334_v55, %s4577_s25 }
 0x48c   : > { %v2522_v19 = vpop.permute.xlu0 %2521 }
 0x48e   : > { %v2442_v16 = vpop.permute.xlu1 %2441 }
 0x48f   : > { %2450 = vst.msk [vmem:[#allocation3 + $0x58] sm:$0xf] %vm2329_vm1, %v2442_v16  ;;  %2537 = vrot.lane.b32.xlu0 %v2335_v32, %s4579_s21  ;;  %2493 = vrot.lane.b32.xlu1 %v2334_v55, %s4578_s11 }
 0x490   : > { %v2564_v10 = vpop.permute.xlu0 %2563 }
 0x492   : > { %v2484_v4 = vpop.permute.xlu1 %2483 }
 0x493   : > { %2492 = vst.msk [vmem:[#allocation3 + $0x70] sm:$0xf] %vm2329_vm1, %v2484_v4  ;;  %2579 = vrot.lane.b32.xlu0 %v2335_v32, %s4580_s16  ;;  %2535 = vrot.lane.b32.xlu1 %v2334_v55, %s4579_s21 }
 0x494   : > { %v2606_v25 = vpop.permute.xlu0 %2605 }
 0x496   : > { %v2526_v28 = vpop.permute.xlu1 %2525 }
 0x497   : > { %2534 = vst.msk [vmem:[#allocation3 + $0x88] sm:$0xf] %vm2329_vm1, %v2526_v28  ;;  %2621 = vrot.lane.b32.xlu0 %v2335_v32, %s4582_s18  ;;  %2577 = vrot.lane.b32.xlu1 %v2334_v55, %s4580_s16 }
 0x498   : > { %v2648_v29 = vpop.permute.xlu0 %2647 }
 0x499   : > { %v2653_v36 = vsel %vm1176_vm6, %v2648_v29, %v5438_v48  ;;  %v2902_v29 = vld [vmem:[#allocation9 + $0xb0] sm:$0xff] }
 0x49a   : > { %2658 = vst [vmem:[#allocation3 + $0xc0] sm:$0xf] %v2653_v36  ;;  %v2568_v44 = vpop.permute.xlu1 %2567 }
 0x49b   : > { %2576 = vst.msk [vmem:[#allocation3 + $0xa0] sm:$0xf] %vm2329_vm1, %v2568_v44  ;;  %2663 = vrot.lane.b32.xlu0 %v2335_v32, %s4581_s17  ;;  %2619 = vrot.lane.b32.xlu1 %v2334_v55, %s4582_s18  ;;  %v2893_v32 = vld [vmem:[#allocation9 + $0x68] sm:$0xff] }
 0x49c   : > { %v2398_v17 = vpop.permute.xlu0 %2397  ;;  %v5536_v50 = vpack.c.bf16 %v2895_v21, %v2893_v32  ;;  %v2927_v32 = vld [vmem:[#allocation9 + $0x178] sm:$0xff] }
 0x49d   : > { %v2401_v24 = vsel %vm1002_vm4, %v2396_v34, %v2398_v17  ;;  %v2402_v46 = vsel %vm1002_vm4, %v2398_v17, %v2400_v22  ;;  %v2892_v34 = vld [vmem:[#allocation9 + $0x60] sm:$0xff]  ;;  %v2907_v17 = vld [vmem:[#allocation9 + $0xd8] sm:$0xff] }
 0x49e   : > { %2406 = vst [vmem:[#allocation3 + $0x30] sm:$0xf] %v2401_v24  ;;  %2407 = vst [vmem:[#allocation3 + $0x38] sm:$0xf] %v2402_v46  ;;  %v2610_v5 = vpop.permute.xlu1 %2609  ;;  %v2896_v22 = vld [vmem:[#allocation9 + $0x80] sm:$0xff] }
 0x49f   : > { %2618 = vst.msk [vmem:[#allocation3 + $0xb8] sm:$0xf] %vm2329_vm1, %v2610_v5  ;;  %2383 = vrot.lane.b32.xlu0 %v5409_v61, %s4575_s14  ;;  %2661 = vrot.lane.b32.xlu1 %v2334_v55, %s4581_s17  ;;  %v2890_v55 = vld [vmem:[#allocation9 + $0x50] sm:$0xff]  ;;  %v2904_v46 = vld [vmem:[#allocation9 + $0xc0] sm:$0xff] }
 0x4a0   : > { %v2440_v12 = vpop.permute.xlu0 %2439  ;;  %v5528_v62 = vpack.c.bf16 %v2890_v55, %v2888_v57  ;;  %v2925_v55 = vld [vmem:[#allocation9 + $0x168] sm:$0xff] }
 0x4a1   : > { %v2443_v33 = vsel %vm1031_vm5, %v2438_v2, %v2440_v12  ;;  %v2444_v9 = vsel %vm1031_vm5, %v2440_v12, %v2442_v16  ;;  %v5608_v21 = vpack.c.bf16 %v2927_v32, %v2925_v55  ;;  %v2940_v55 = vld [vmem:[#allocation9 + $0x1e0] sm:$0xff]  ;;  %v2942_v32 = vld [vmem:[#allocation9 + $0x1f0] sm:$0xff] }
 0x4a2   : > { %2448 = vst [vmem:[#allocation3 + $0x48] sm:$0xf] %v2443_v33  ;;  %2449 = vst [vmem:[#allocation3 + $0x50] sm:$0xf] %v2444_v9  ;;  %v2909_v33 = vld [vmem:[#allocation9 + $0xe8] sm:$0xff]  ;;  %v2911_v9 = vld [vmem:[#allocation9 + $0xf8] sm:$0xff] }
 0x4a3   : > { %2381 = vrot.lane.b32.xlu0 %v5407_v56, %s4575_s14  ;;  %2665 = vrot.lane.b32.xlu1 %v5414_v27, %s4581_s17  ;;  %v2884_v27 = vld [vmem:[#allocation9 + $0x20] sm:$0xff] }
 0x4a4   : > { %v2482_v37 = vpop.permute.xlu0 %2481  ;;  %v5518_v30 = vpack.c.bf16 %v2886_v26, %v2884_v27  ;;  %v5598_v27 = vpack.c.bf16 %v2923_v14, %v2921_v8  ;;  %v2920_v26 = vld [vmem:[#allocation9 + $0x140] sm:$0xff]  ;;  %v2941_v14 = vld [vmem:[#allocation9 + $0x1e8] sm:$0xff] }
 0x4a5   : > { %v2485_v23 = vsel %vm1060_vm7, %v2480_v1, %v2482_v37  ;;  %v2486_v3 = vsel %vm1060_vm7, %v2482_v37, %v2484_v4  ;;  %v5546_v1 = vpack.c.bf16 %v2899_v58, %v2897_v38  ;;  %v2903_v4 = vld [vmem:[#allocation9 + $0xb8] sm:$0xff]  ;;  %v5572_v37 = vpack.c.bf16 %v2911_v9, %v2909_v33  ;;  %v2932_v33 = vld [vmem:[#allocation9 + $0x1a0] sm:$0xff]  ;;  %v2934_v9 = vld [vmem:[#allocation9 + $0x1b0] sm:$0xff] }
 0x4a6   : > { %2490 = vst [vmem:[#allocation3 + $0x60] sm:$0xf] %v2485_v23  ;;  %2491 = vst [vmem:[#allocation3 + $0x68] sm:$0xf] %v2486_v3  ;;  %4197 = vmatpush1.bf16.msra.mxu0 %v5518_v30  ;;  %v2908_v23 = vld [vmem:[#allocation9 + $0xe0] sm:$0xff]  ;;  %v2910_v3 = vld [vmem:[#allocation9 + $0xf0] sm:$0xff]  ;;  %v5600_v43 = vpack.c.bf16 %v2922_v39, %v2920_v26 }
 0x4a7   : > { %2427 = vrot.lane.b32.xlu0 %v5403_v35, %s4576_s20  ;;  %2385 = vrot.lane.b32.xlu1 %v5403_v35, %s4575_s14  ;;  %v2943_v26 = vld [vmem:[#allocation9 + $0x1f8] sm:$0xff] }
 0x4a8   : > { %v2524_v0 = vpop.permute.xlu0 %2523  ;;  %4199 = vmatprep.subr.bf16.mxu0 %v5526_v53  ;;  %v5650_v39 = vpack.c.bf16 %v2943_v26, %v2941_v14 }
 0x4a9   : > { %v2527_v40 = vsel %vm1089_vm8, %v2522_v19, %v2524_v0  ;;  %v2528_v51 = vsel %vm1089_vm8, %v2524_v0, %v2526_v28  ;;  %v2898_v19 = vld [vmem:[#allocation9 + $0x90] sm:$0xff]  ;;  %v2900_v28 = vld [vmem:[#allocation9 + $0xa0] sm:$0xff]  ;;  %v5574_v0 = vpack.c.bf16 %v2910_v3, %v2908_v23  ;;  %v5630_v23 = vpack.c.bf16 %v2934_v9, %v2932_v33 }
 0x4aa   : > { %2532 = vst [vmem:[#allocation3 + $0x78] sm:$0xf] %v2527_v40  ;;  %2533 = vst [vmem:[#allocation3 + $0x80] sm:$0xf] %v2528_v51  ;;  %4201 = vmatpush1.bf16.msra.mxu0 %v5528_v62  ;;  %v5548_v16 = vpack.c.bf16 %v2898_v19, %v2896_v22  ;;  %v5558_v36 = vpack.c.bf16 %v2902_v29, %v2900_v28  ;;  %v2913_v40 = vld [vmem:[#allocation9 + $0x108] sm:$0xff]  ;;  %v2915_v51 = vld [vmem:[#allocation9 + $0x118] sm:$0xff] }
 0x4ab   : > { %2467 = vrot.lane.b32.xlu0 %v5409_v61, %s4577_s25  ;;  %2425 = vrot.lane.b32.xlu1 %v5409_v61, %s4576_s20  ;;  %v2929_v22 = vld [vmem:[#allocation9 + $0x188] sm:$0xff]  ;;  %v2931_v19 = vld [vmem:[#allocation9 + $0x198] sm:$0xff]  ;;  %v2930_v28 = vld [vmem:[#allocation9 + $0x190] sm:$0xff] }
 0x4ac   : > { %v2566_v42 = vpop.permute.xlu0 %2565  ;;  %4203 = vmatprep.subr.bf16.mxu0 %v5536_v50 }
 0x4ad   : > { %v2569_v60 = vsel %vm1118_vm9, %v2564_v10, %v2566_v42  ;;  %v2570_v6 = vsel %vm1118_vm9, %v2566_v42, %v2568_v44  ;;  %v2901_v10 = vld [vmem:[#allocation9 + $0xa8] sm:$0xff]  ;;  %v5578_v42 = vpack.c.bf16 %v2915_v51, %v2913_v40  ;;  %v2939_v51 = vld [vmem:[#allocation9 + $0x1d8] sm:$0xff] }
 0x4ae   : > { %2574 = vst [vmem:[#allocation3 + $0x90] sm:$0xf] %v2569_v60  ;;  %2575 = vst [vmem:[#allocation3 + $0x98] sm:$0xf] %v2570_v6  ;;  %v2905_v44 = vld [vmem:[#allocation9 + $0xc8] sm:$0xff]  ;;  %v2912_v60 = vld [vmem:[#allocation9 + $0x100] sm:$0xff] }
 0x4af   : > { %2465 = vrot.lane.b32.xlu0 %v5407_v56, %s4577_s25  ;;  %2423 = vrot.lane.b32.xlu1 %v5407_v56, %s4576_s20  ;;  %v5564_v24 = vpack.c.bf16 %v2907_v17, %v2905_v44  ;;  %v2914_v6 = vld [vmem:[#allocation9 + $0x110] sm:$0xff]  ;;  %v2933_v17 = vld [vmem:[#allocation9 + $0x1a8] sm:$0xff] }
 0x4b0   : > { %v2608_v20 = vpop.permute.xlu0 %2607  ;;  %v2937_v40 = vld [vmem:[#allocation9 + $0x1c8] sm:$0xff] }
 0x4b1   : > { %v2611_v45 = vsel %vm1147_vm10, %v2606_v25, %v2608_v20  ;;  %v2612_v47 = vsel %vm1147_vm10, %v2608_v20, %v2610_v5  ;;  %v5556_v25 = vpack.c.bf16 %v2903_v4, %v2901_v10  ;;  %v2906_v5 = vld [vmem:[#allocation9 + $0xd0] sm:$0xff]  ;;  %v5580_v20 = vpack.c.bf16 %v2914_v6, %v2912_v60  ;;  %v2928_v4 = vld [vmem:[#allocation9 + $0x180] sm:$0xff] }
 0x4b2   : > { %2616 = vst [vmem:[#allocation3 + $0xa8] sm:$0xf] %v2611_v45  ;;  %2617 = vst [vmem:[#allocation3 + $0xb0] sm:$0xf] %v2612_v47  ;;  %v5566_v12 = vpack.c.bf16 %v2906_v5, %v2904_v46  ;;  %v2917_v47 = vld [vmem:[#allocation9 + $0x128] sm:$0xff]  ;;  %v5618_v10 = vpack.c.bf16 %v2931_v19, %v2929_v22  ;;  %v5620_v29 = vpack.c.bf16 %v2930_v28, %v2928_v4  ;;  %v2935_v46 = vld [vmem:[#allocation9 + $0x1b8] sm:$0xff] }
 0x4b3   : > { %2511 = vrot.lane.b32.xlu0 %v5403_v35, %s4578_s11  ;;  %2469 = vrot.lane.b32.xlu1 %v5403_v35, %s4577_s25  ;;  %v5628_v5 = vpack.c.bf16 %v2935_v46, %v2933_v17  ;;  %v5638_v60 = vpack.c.bf16 %v2939_v51, %v2937_v40  ;;  %v2936_v6 = vld [vmem:[#allocation9 + $0x1c0] sm:$0xff]  ;;  %v2945_v4 = vld [vmem:[#allocation9 + $0x208] sm:$0xff]  ;;  %v2947_v28 = vld [vmem:[#allocation9 + $0x218] sm:$0xff] }
 0x4b4   : > { %v2652_v59 = vpop.permute.xlu0 %2651  ;;  %v5659_v17 = vpack.c.bf16 %v2947_v28, %v2945_v4 }
 0x4b5   : > { %v2654_v11 = vsel %vm1176_vm6, %v5438_v48, %v2652_v59  ;;  %2660 = vst.msk [vmem:[#allocation3 + $0xd0] sm:$0xf] %vm2329_vm1, %v2652_v59  ;;  %v2894_v48 = vld [vmem:[#allocation9 + $0x70] sm:$0xff]  ;;  %v2919_v59 = vld [vmem:[#allocation9 + $0x138] sm:$0xff] }
 0x4b6   : > { %2659 = vst [vmem:[#allocation3 + $0xc8] sm:$0xf] %v2654_v11  ;;  %v5538_v2 = vpack.c.bf16 %v2894_v48, %v2892_v34  ;;  %v5588_v11 = vpack.c.bf16 %v2919_v59, %v2917_v47  ;;  %v2924_v34 = vld [vmem:[#allocation9 + $0x160] sm:$0xff]  ;;  %v2926_v48 = vld [vmem:[#allocation9 + $0x170] sm:$0xff] }
 0x4b7   : > { %2551 = vrot.lane.b32.xlu0 %v5409_v61, %s4579_s21  ;;  %2509 = vrot.lane.b32.xlu1 %v5409_v61, %s4578_s11  ;;  %v5610_v38 = vpack.c.bf16 %v2926_v48, %v2924_v34  ;;  %v2938_v47 = vld [vmem:[#allocation9 + $0x1d0] sm:$0xff]  ;;  %v5652_v34 = vpack.c.bf16 %v2942_v32, %v2940_v55  ;;  %v2690_v55 = vld [vmem:[#allocation3] sm:$0xff] }
 0x4b8   : > { %4205 = vmatpush1.bf16.msra.mxu0 %v5538_v2  ;;  %v5640_v59 = vpack.c.bf16 %v2938_v47, %v2936_v6  ;;  %v4585_v6 = vmov 1  }
 0x4b9   : > { %4207 = vmatprep.subr.bf16.mxu0 %v5546_v1  ;;  %4413 = vset.pattern.permute.xlu0 %v4585_v6 }
 0x4bb   : > { %2549 = vrot.lane.b32.xlu0 %v5407_v56, %s4579_s21  ;;  %2507 = vrot.lane.b32.xlu1 %v5407_v56, %s4578_s11 }
 0x4bc   : > { %4209 = vmatpush1.bf16.msra.mxu0 %v5548_v16 }
 0x4bd   : > { %4211 = vmatprep.subr.bf16.mxu0 %v5556_v25 }
 0x4bf   : > { %2595 = vrot.lane.b32.xlu0 %v5403_v35, %s4580_s16  ;;  %2553 = vrot.lane.b32.xlu1 %v5403_v35, %s4579_s21 }
 0x4c0   : > { %4213 = vmatpush1.bf16.msra.mxu0 %v5558_v36 }
 0x4c1   : > { %4215 = vmatprep.subr.bf16.mxu0 %v5564_v24 }
 0x4c3   : > { %2635 = vrot.lane.b32.xlu0 %v5409_v61, %s4582_s18  ;;  %2593 = vrot.lane.b32.xlu1 %v5409_v61, %s4580_s16 }
 0x4c4   : > { %4217 = vmatpush1.bf16.msra.mxu0 %v5566_v12 }
 0x4c5   : > { %4219 = vmatprep.subr.bf16.mxu0 %v5572_v37 }
 0x4c7   : > { %2633 = vrot.lane.b32.xlu0 %v5407_v56, %s4582_s18  ;;  %2591 = vrot.lane.b32.xlu1 %v5407_v56, %s4580_s16  ;;  %s517_s16 = scalar_lea.vmem %s5826_s12, %s3476_s15 }
 0x4c8   : > { %4221 = vmatpush1.bf16.msra.mxu0 %v5574_v0 }
 0x4c9   : > { %4223 = vmatprep.subr.bf16.mxu0 %v5578_v42 }
 0x4cb   : > { %2679 = vrot.lane.b32.xlu0 %v5403_v35, %s4581_s17  ;;  %2637 = vrot.lane.b32.xlu1 %v5403_v35, %s4582_s18 }
 0x4cc   : > { %4225 = vmatpush1.bf16.msra.mxu0 %v5580_v20 }
 0x4cd   : > { %4227 = vmatprep.subr.bf16.mxu0 %v5588_v11 }
 0x4cf   : > { %2677 = vrot.lane.b32.xlu1 %v5409_v61, %s4581_s17 }
 0x4d0   : > { %4229 = vmatpush1.bf16.msra.mxu0 %v5590_v54 }
 0x4d1   : > { %4231 = vmatprep.subr.bf16.mxu0 %v5598_v27 }
 0x4d3   : > { %2675 = vrot.lane.b32.xlu1 %v5407_v56, %s4581_s17  ;;  %s5922_s17 = sld [smem:[#allocation36_spill]] }
 0x4d4   : > { %4233 = vmatpush1.bf16.msra.mxu0 %v5600_v43 }
 0x4d5   : > { %4235 = vmatprep.subr.bf16.mxu0 %v5608_v21 }
 0x4d8   : > { %4237 = vmatpush1.bf16.msra.mxu0 %v5610_v38 }
 0x4d9   : > { %v5582_v45 = vpop.permute.xlu1 %2368  ;;  %4239 = vmatprep.subr.bf16.mxu0 %v5618_v10  ;;  %s513_s18 = scalar_lea.vmem %s5922_s17, %s4887_s26 }
 0x4da   : > { %2377 = vst.msk [vmem:[#allocation3 + $0x28] sm:$0xf0] %vm2342_vm13, %v5582_v45 }
 0x4dc   : > { %4241 = vmatpush1.bf16.msra.mxu0 %v5620_v29 }
 0x4dd   : > { %v5592_v63 = vpop.permute.xlu1 %2413  ;;  %4243 = vmatprep.subr.bf16.mxu0 %v5628_v5 }
 0x4de   : > { %2422 = vst.msk [vmem:[#allocation3 + $0x40] sm:$0xf0] %vm2342_vm13, %v5592_v63 }
 0x4e0   : > { %4245 = vmatpush1.bf16.msra.mxu0 %v5630_v23 }
 0x4e1   : > { %v5602_v57 = vpop.permute.xlu1 %2455  ;;  %4247 = vmatprep.subr.bf16.mxu0 %v5638_v60 }
 0x4e2   : > { %2464 = vst.msk [vmem:[#allocation3 + $0x58] sm:$0xf0] %vm2342_vm13, %v5602_v57 }
 0x4e4   : > { %4249 = vmatpush1.bf16.msra.mxu0 %v5640_v59 }
 0x4e5   : > { %v5612_v58 = vpop.permute.xlu1 %2497  ;;  %4251 = vmatprep.subr.bf16.mxu0 %v5650_v39 }
 0x4e6   : > { %2506 = vst.msk [vmem:[#allocation3 + $0x70] sm:$0xf0] %vm2342_vm13, %v5612_v58 }
 0x4e8   : > { %4253 = vmatpush1.bf16.msra.mxu0 %v5652_v34 }
 0x4e9   : > { %v5622_v44 = vpop.permute.xlu1 %2539  ;;  %4255 = vmatprep.subr.bf16.mxu0 %v5659_v17 }
 0x4ea   : > { %2548 = vst.msk [vmem:[#allocation3 + $0x88] sm:$0xf0] %vm2342_vm13, %v5622_v44 }
 0x4ed   : > { %v5632_v3 = vpop.permute.xlu1 %2581 }
 0x4ee   : > { %2590 = vst.msk [vmem:[#allocation3 + $0xa0] sm:$0xf0] %vm2342_vm13, %v5632_v3 }
 0x4f1   : > { %v2367_v49 = vpop.permute.xlu0 %2366  ;;  %v5642_v52 = vpop.permute.xlu1 %2623 }
 0x4f2   : > { %v2371_v8 = vsel %vm970_vm3, %v2367_v49, %v5582_v45  ;;  %2632 = vst.msk [vmem:[#allocation3 + $0xb8] sm:$0xf0] %vm2342_vm13, %v5642_v52 }
 0x4f3   : > { %2376 = vst [vmem:[#allocation3 + $0x20] sm:$0xf0] %v2371_v8 }
 0x4f5   : > { %v2412_v48 = vpop.permute.xlu0 %2411  ;;  %v2365_v22 = vpop.permute.xlu1 %2364 }
 0x4f6   : > { %v2416_v45 = vsel %vm1002_vm4, %v2412_v48, %v5592_v63  ;;  %v2370_v19 = vsel %vm970_vm3, %v2365_v22, %v2367_v49  ;;  %v2691_v63 = vld [vmem:[#allocation3 + $0x8] sm:$0xff] }
 0x4f7   : > { %2421 = vst [vmem:[#allocation3 + $0x38] sm:$0xf0] %v2416_v45  ;;  %2375 = vst [vmem:[#allocation3 + $0x18] sm:$0xf0] %v2370_v19  ;;  %v5668_v49 = vld [vmem:[%s5824_s10] sm:$0xf] }
 0x4f8   : > { %5917 = vst [vmem:[#allocation23_spill] sm:$0xff] %v5668_v49  ;;  %2859 = vperm.xlu0 %4413, %v5668_v49  }
 0x4f9   : > { %v2454_v46 = vpop.permute.xlu0 %2453  ;;  %v2410_v33 = vpop.permute.xlu1 %2409 }
 0x4fa   : > { %v2458_v9 = vsel %vm1031_vm5, %v2454_v46, %v5602_v57  ;;  %v2415_v40 = vsel %vm1002_vm4, %v2410_v33, %v2412_v48  ;;  %v2694_v51 = vld [vmem:[#allocation3 + $0x20] sm:$0xff] }
 0x4fb   : > { %2463 = vst [vmem:[#allocation3 + $0x50] sm:$0xf0] %v2458_v9  ;;  %2420 = vst [vmem:[#allocation3 + $0x30] sm:$0xf0] %v2415_v40  ;;  %v2718_v47 = vpack.c.bf16 %v2694_v51, %v2691_v63 }
 0x4fd   : > { %v2496_v8 = vpop.permute.xlu0 %2495  ;;  %2744 = vmatprep.subr.bf16.mxu1 %v2718_v47  ;;  %v2452_v14 = vpop.permute.xlu1 %2451 }
 0x4fe   : > { %v2500_v57 = vsel %vm1060_vm7, %v2496_v8, %v5612_v58  ;;  %v2457_v26 = vsel %vm1031_vm5, %v2452_v14, %v2454_v46  ;;  %v2693_v32 = vld [vmem:[#allocation3 + $0x18] sm:$0xff] }
 0x4ff   : > { %2505 = vst [vmem:[#allocation3 + $0x68] sm:$0xf0] %v2500_v57  ;;  %2462 = vst [vmem:[#allocation3 + $0x48] sm:$0xf0] %v2457_v26  ;;  %v2717_v48 = vpack.c.bf16 %v2693_v32, %v2690_v55  ;;  %v2697_v28 = vld [vmem:[#allocation3 + $0x38] sm:$0xff] }
 0x501   : > { %v2538_v22 = vpop.permute.xlu0 %2537  ;;  %2745 = vmatpush1.bf16.msra.mxu1 %v2717_v48  ;;  %v2494_v45 = vpop.permute.xlu1 %2493 }
 0x502   : > { %v2542_v19 = vsel %vm1089_vm8, %v2538_v22, %v5622_v44  ;;  %v2499_v4 = vsel %vm1060_vm7, %v2494_v45, %v2496_v8  ;;  %v2700_v33 = vld [vmem:[#allocation3 + $0x50] sm:$0xff] }
 0x503   : > { %2547 = vst [vmem:[#allocation3 + $0x80] sm:$0xf0] %v2542_v19  ;;  %2504 = vst [vmem:[#allocation3 + $0x60] sm:$0xf0] %v2499_v4  ;;  %v2721_v58 = vpack.c.bf16 %v2700_v33, %v2697_v28  ;;  %v2696_v51 = vld [vmem:[#allocation3 + $0x30] sm:$0xff] }
 0x505   : > { %v2580_v9 = vpop.permute.xlu0 %2579  ;;  %2746 = vmatprep.subr.bf16.mxu1 %v2721_v58  ;;  %v2536_v46 = vpop.permute.xlu1 %2535 }
 0x506   : > { %v2584_v40 = vsel %vm1118_vm9, %v2580_v9, %v5632_v3  ;;  %v2541_v63 = vsel %vm1089_vm8, %v2536_v46, %v2538_v22  ;;  %v2699_v6 = vld [vmem:[#allocation3 + $0x48] sm:$0xff] }
 0x507   : > { %2589 = vst [vmem:[#allocation3 + $0x98] sm:$0xf0] %v2584_v40  ;;  %2546 = vst [vmem:[#allocation3 + $0x78] sm:$0xf0] %v2541_v63  ;;  %v2720_v44 = vpack.c.bf16 %v2699_v6, %v2696_v51  ;;  %v2703_v26 = vld [vmem:[#allocation3 + $0x68] sm:$0xff] }
 0x509   : > { %v2622_v47 = vpop.permute.xlu0 %2621  ;;  %2747 = vmatpush1.bf16.msra.mxu1 %v2720_v44  ;;  %v2578_v8 = vpop.permute.xlu1 %2577 }
 0x50a   : > { %v2626_v14 = vsel %vm1147_vm10, %v2622_v47, %v5642_v52  ;;  %v2583_v57 = vsel %vm1118_vm9, %v2578_v8, %v2580_v9  ;;  %v2706_v55 = vld [vmem:[#allocation3 + $0x80] sm:$0xff] }
 0x50b   : > { %2631 = vst [vmem:[#allocation3 + $0xb0] sm:$0xf0] %v2626_v14  ;;  %2588 = vst [vmem:[#allocation3 + $0x90] sm:$0xf0] %v2583_v57  ;;  %v2724_v3 = vpack.c.bf16 %v2706_v55, %v2703_v26  ;;  %v2702_v45 = vld [vmem:[#allocation3 + $0x60] sm:$0xff] }
 0x50d   : > { %v2664_v32 = vpop.permute.xlu0 %2663  ;;  %2748 = vmatprep.subr.bf16.mxu1 %v2724_v3  ;;  %v2620_v48 = vpop.permute.xlu1 %2619 }
 0x50e   : > { %v2625_v22 = vsel %vm1147_vm10, %v2620_v48, %v2622_v47  ;;  %v2705_v19 = vld [vmem:[#allocation3 + $0x78] sm:$0xff] }
 0x50f   : > { %2630 = vst [vmem:[#allocation3 + $0xa8] sm:$0xf0] %v2625_v22  ;;  %v2723_v4 = vpack.c.bf16 %v2705_v19, %v2702_v45  ;;  %v2709_v58 = vld [vmem:[#allocation3 + $0x98] sm:$0xff] }
 0x511   : > { %v5684_v28 = vpop.permute.xlu0 %2383  ;;  %2749 = vmatpush1.bf16.msra.mxu1 %v2723_v4  ;;  %v2662_v52 = vpop.permute.xlu1 %2661 }
 0x512   : > { %v2667_v33 = vsel %vm1176_vm6, %v2662_v52, %v2664_v32  ;;  %v2712_v9 = vld [vmem:[#allocation3 + $0xb0] sm:$0xff] }
 0x513   : > { %2672 = vst [vmem:[#allocation3 + $0xc0] sm:$0xf0] %v2667_v33  ;;  %v2727_v46 = vpack.c.bf16 %v2712_v9, %v2709_v58  ;;  %v2708_v44 = vld [vmem:[#allocation3 + $0x90] sm:$0xff]  ;;  %v2695_v58 = vld [vmem:[#allocation3 + $0x28] sm:$0xff] }
 0x515   : > { %v2382_v40 = vpop.permute.xlu0 %2381  ;;  %2750 = vmatprep.subr.bf16.mxu1 %v2727_v46  ;;  %v2666_v63 = vpop.permute.xlu1 %2665  ;;  %v2689_v46 = vld [vmem:[%s5823_s9] sm:$0x3] }
 0x516   : > { %v2387_v51 = vsel %vm970_vm3, %v2382_v40, %v5684_v28  ;;  %v2668_v6 = vsel %vm1176_vm6, %v2664_v32, %v2666_v63  ;;  %2674 = vst.msk [vmem:[#allocation3 + $0xd0] sm:$0xf0] %vm2342_vm13, %v2666_v63  ;;  %v2711_v47 = vld [vmem:[#allocation3 + $0xa8] sm:$0xff]  ;;  %v2692_v63 = vld [vmem:[#allocation3 + $0x10] sm:$0xff] }
 0x517   : > { %v2392_v8 = vadd.f32 %v2387_v51, %v5407_v56  ;;  %2673 = vst [vmem:[#allocation3 + $0xc8] sm:$0xf0] %v2668_v6  ;;  %v2726_v14 = vpack.c.bf16 %v2711_v47, %v2708_v44  ;;  %v2719_v51 = vpack.c.bf16 %v2695_v58, %v2692_v63  ;;  %v2701_v47 = vld [vmem:[#allocation3 + $0x58] sm:$0xff] }
 0x519   : > { %v5692_v57 = vpop.permute.xlu0 %2427  ;;  %2751 = vmatpush1.bf16.msra.mxu1 %v2726_v14  ;;  %v2386_v26 = vpop.permute.xlu1 %2385 }
 0x51a   : > { %v2394_v55 = vadd.f32 %v2386_v26, %v5403_v35  ;;  %v2714_v3 = vld [vmem:[#allocation3 + $0xc0] sm:$0xff] }
 0x51b   : > { %v2729_v45 = vpack.c.bf16 %v2714_v3, %v2714_v3  ;;  %v2698_v3 = vld [vmem:[#allocation3 + $0x40] sm:$0xff] }
 0x51c   : > { %v2436_v48 = vadd.f32 %v5692_v57, %v2394_v55 }
 0x51d   : > { %v5696_v22 = vpop.permute.xlu0 %2467  ;;  %v2426_v32 = vpop.permute.xlu1 %2425  ;;  %v2736_v33 = vsel %vm1246_vm11, %v2729_v45, 0  ;;  %v2722_v45 = vpack.c.bf16 %v2701_v47, %v2698_v3 }
 0x51e   : > { %v2715_v19 = vld [vmem:[#allocation3 + $0xc8] sm:$0xff] }
 0x51f   : > { %v2730_v4 = vpack.c.bf16 %v2715_v19, %v2715_v19 }
 0x521   : > { %v2466_v52 = vpop.permute.xlu0 %2465  ;;  %3496 = vmatprep.subr.msk.bf16.mxu1 %vm1246_vm11, %v2730_v4  ;;  %v2424_v56 = vpop.permute.xlu1 %2423 }
 0x522   : > { %v2471_v9 = vsel %vm1031_vm5, %v2466_v52, %v5696_v22  ;;  %v2429_v35 = vsel %vm1002_vm4, %v2424_v56, %v2426_v32  ;;  %2753 = vmatpush1.bf16.msra.mxu1 %v2736_v33  ;;  %v2707_v52 = vld [vmem:[#allocation3 + $0x88] sm:$0xff]  ;;  %v2704_v56 = vld [vmem:[#allocation3 + $0x70] sm:$0xff] }
 0x523   : > { %v2434_v40 = vadd.f32 %v2429_v35, %v2392_v8  ;;  %3736 = vmatprep.subr.bf16.mxu1 %v5894_v31  ;;  %v2725_v33 = vpack.c.bf16 %v2707_v52, %v2704_v56  ;;  %v2388_v52 = vsel %vm970_vm3, %v5684_v28, %v2386_v26 }
 0x525   : > { %v2512_v6 = vpop.permute.xlu0 %2511  ;;  %3497 = vmatmul.mubr.msk.bf16.vlgmr.msra.gmra.mrb[20].mxu1 %vm1242_vm12, %v2689_v46  ;;  %v2470_v44 = vpop.permute.xlu1 %2469  ;;  %v2476_v14 = vadd.f32 %v2471_v9, %v2434_v40  ;;  %v2716_v40 = vld [vmem:[#allocation3 + $0xd0] sm:$0xff] }
 0x526   : > { %v2478_v55 = vadd.f32 %v2470_v44, %v2436_v48  ;;  %3737 = vmatpush3.bf16.msra.mxu1 %v2719_v51  ;;  %3746 = vmatprep.mubr.msk.bf16.mxu1 %vm4574_vm0, %v5894_v31  ;;  %v2713_v48 = vld [vmem:[#allocation3 + $0xb8] sm:$0xff]  ;;  %v2710_v51 = vld [vmem:[#allocation3 + $0xa0] sm:$0xff]  ;;  %v2731_v13 = vpack.c.bf16 %v2716_v40, %v2716_v40  ;;  %v2472_v40 = vsel %vm1031_vm5, %v5696_v22, %v2470_v44 }
 0x527   : > { %3738 = vmatprep.subr.bf16.mxu1 %v5894_v31 }
 0x528   : > { %v2520_v8 = vadd.f32 %v2512_v6, %v2478_v55  ;;  %v2728_v55 = vpack.c.bf16 %v2713_v48, %v2710_v51 }
 0x529   : > { %v2552_v19 = vpop.permute.xlu0 %2551  ;;  %v2510_v4 = vpop.permute.xlu1 %2509 }
 0x52a   : > { %3739 = vmatpush3.bf16.msra.mxu1 %v2722_v45  ;;  %v2514_v26 = vsel %vm1060_vm7, %v2510_v4, %v2512_v6 }
 0x52b   : > { %3740 = vmatprep.subr.bf16.mxu1 %v5894_v31 }
 0x52d   : > { %v2550_v58 = vpop.permute.xlu0 %2549  ;;  %v2508_v9 = vpop.permute.xlu1 %2507 }
 0x52e   : > { %v2513_v35 = vsel %vm1060_vm7, %v2508_v9, %v2510_v4  ;;  %3741 = vmatpush3.bf16.msra.mxu1 %v2725_v33  ;;  %v2555_v47 = vsel %vm1089_vm8, %v2550_v58, %v2552_v19  ;;  %v2393_v9 = vadd.f32 %v2388_v52, %v5409_v61 }
 0x52f   : > { %v2518_v63 = vadd.f32 %v2513_v35, %v2476_v14  ;;  %3742 = vmatprep.subr.bf16.mxu1 %v5894_v31  ;;  %v2430_v14 = vsel %vm1002_vm4, %v2426_v32, %v5692_v57  ;;  %v2742_v35 = vsel %vm1246_vm11, %v2731_v13, 0 }
 0x530   : > { %v2435_v28 = vadd.f32 %v2430_v14, %v2393_v9 }
 0x531   : > { %v2596_v3 = vpop.permute.xlu0 %2595  ;;  %v2554_v45 = vpop.permute.xlu1 %2553  ;;  %v2560_v49 = vadd.f32 %v2555_v47, %v2518_v63 }
 0x532   : > { %v2562_v56 = vadd.f32 %v2554_v45, %v2520_v8  ;;  %3743 = vmatpush3.bf16.msra.mxu1 %v2728_v55  ;;  %v2477_v8 = vadd.f32 %v2472_v40, %v2435_v28  ;;  %v2556_v57 = vsel %vm1089_vm8, %v2552_v19, %v2554_v45 }
 0x533   : > { %3744 = vmatprep.subr.bf16.mxu1 %v5894_v31 }
 0x534   : > { %v5720_v33 = vadd.f32 %v2596_v3, %v2562_v56  ;;  %v2519_v61 = vadd.f32 %v2514_v26, %v2477_v8 }
 0x535   : > { %v2636_v58 = vpop.permute.xlu0 %2635  ;;  %v2594_v48 = vpop.permute.xlu1 %2593 }
 0x536   : > { %3745 = vmatpush3.bf16.msra.mxu1 %v2742_v35  ;;  %v2598_v13 = vsel %vm1118_vm9, %v2594_v48, %v2596_v3  ;;  %v2561_v22 = vadd.f32 %v2556_v57, %v2519_v61 }
 0x537   : > { %4263 = vmatprep.subr.bf16.mxu1 %v5506_v41 }
 0x538   : > { %v2603_v6 = vadd.f32 %v2598_v13, %v2561_v22 }
 0x539   : > { %v2592_v63 = vpop.permute.xlu1 %2591  ;;  %3747 = vmatmul.mubr.msk.bf16.vlgmr.msra.gmra.mrb[24].mxu1 %vm1242_vm12, %v2689_v46  ;;  %v2634_v32 = vpop.permute.xlu0 %2633 }
 0x53a   : > { %4265 = vmatpush1.bf16.msra.mxu1 %v5508_v7 }
 0x53b   : > { %4267 = vmatprep.subr.bf16.mxu1 %v5516_v15  ;;  %v5918_v15 = vmov 1.0  }
 0x53d   : > { %v2638_v44 = vpop.permute.xlu1 %2637  ;;  %v2680_v46 = vpop.permute.xlu0 %2679 }
 0x53e   : > { %v2640_v41 = vsel %vm1147_vm10, %v2636_v58, %v2638_v44  ;;  %4269 = vmatpush1.bf16.msra.mxu1 %v5518_v30  ;;  %v2597_v30 = vsel %vm1118_vm9, %v2592_v63, %v2594_v48 }
 0x53f   : > { %4271 = vmatprep.subr.bf16.mxu1 %v5526_v53  ;;  %v2645_v4 = vadd.f32 %v2640_v41, %v2603_v6  ;;  %v2602_v53 = vadd.f32 %v2597_v30, %v2560_v49  ;;  %v4586_v41 = vmov 1966171168   ;;  %v5920_v30 = vlaneseq }
 0x541   : > { %v2678_v19 = vpop.permute.xlu1 %2677  ;;  %vm3306_vm5 = vcmp.lt.s32.totalorder %v5920_v30, 256 }
 0x542   : > { %v2682_v7 = vsel %vm1176_vm6, %v2678_v19, %v2680_v46  ;;  %4273 = vmatpush1.bf16.msra.mxu1 %v5528_v62 }
 0x543   : > { %v5738_v51 = vadd.f32 %v2682_v7, %v2645_v4  ;;  %4275 = vmatprep.subr.bf16.mxu1 %v5536_v50  ;;  %v2639_v50 = vsel %vm1147_vm10, %v2634_v32, %v2636_v58  ;;  %v5919_v4 = vld [vmem:[#allocation15_spill] sm:$0xff] }
 0x545   : > { %vm2826_vm0 = vcmp.gt.f32.partialorder %v5738_v51, 0.0  ;;  %v2676_v62 = vpop.permute.xlu1 %2675 }
 0x546   : > { %4277 = vmatpush1.bf16.msra.mxu1 %v5538_v2  ;;  %3503 = vmatprep.mubr.msk.f32.mxu1 %vm2826_vm0, %v5918_v15  ;;  %v2681_v2 = vsel %vm1176_vm6, %v2676_v62, %v2678_v19  ;;  %v3500_v47 = vsel %vm2826_vm0, 1.0, %v5894_v31 }
 0x547   : > { %4279 = vmatprep.subr.bf16.mxu1 %v5546_v1  ;;  %v2644_v1 = vadd.f32 %v2639_v50, %v2602_v53  ;;  %v2872_v9 = vrot.slane %v3500_v47, %v4910_v18 }
 0x54a   : > { %4281 = vmatpush1.bf16.msra.mxu1 %v5548_v16  ;;  %v2944_v16 = vld [vmem:[#allocation9 + $0x200] sm:$0xff] }
 0x54b   : > { %4283 = vmatprep.subr.bf16.mxu1 %v5556_v25  ;;  %v2946_v25 = vld [vmem:[#allocation9 + $0x210] sm:$0xff] }
 0x54e   : > { %4285 = vmatpush1.bf16.msra.mxu1 %v5558_v36  ;;  %v2686_v36 = vadd.f32 %v2681_v2, %v2644_v1 }
 0x54f   : > { %4287 = vmatprep.subr.bf16.mxu1 %v5564_v24  ;;  %v2949_v24 = vld [vmem:[#allocation9 + $0x228] sm:$0xff] }
 0x550   : > { %vm2825_vm3 = vcmp.gt.f32.partialorder %v2686_v36, 0.0 }
 0x552   : > { %4289 = vmatpush1.bf16.msra.mxu1 %v5566_v12  ;;  %v2951_v12 = vld [vmem:[#allocation9 + $0x238] sm:$0xff] }
 0x553   : > { %4291 = vmatprep.subr.bf16.mxu1 %v5572_v37  ;;  %v2646_v37 = vadd.f32 %v2638_v44, %v5720_v33 }
 0x556   : > { %4293 = vmatpush1.bf16.msra.mxu1 %v5574_v0  ;;  %v4256_v0 = vpack.c.bf16 %v2946_v25, %v2944_v16  ;;  %v4587_v16 = vmov 2   ;;  %v4588_v25 = vmov 3  }
 0x557   : > { %4295 = vmatprep.subr.bf16.mxu1 %v5578_v42  ;;  %v4258_v42 = vpack.c.bf16 %v2951_v12, %v2949_v24  ;;  %4414 = vset.pattern.permute.xlu1 %v4587_v16 }
 0x558   : > { %4415 = vset.pattern.permute.xlu0 %v4588_v25 }
 0x55a   : > { %4297 = vmatpush1.bf16.msra.mxu1 %v5580_v20  ;;  %v2948_v20 = vld [vmem:[#allocation9 + $0x220] sm:$0xff] }
 0x55b   : > { %4299 = vmatprep.subr.bf16.mxu1 %v5588_v11  ;;  %v2950_v11 = vld [vmem:[#allocation9 + $0x230] sm:$0xff] }
 0x55e   : > { %4301 = vmatpush1.bf16.msra.mxu1 %v5590_v54  ;;  %v2688_v54 = vadd.f32 %v2680_v46, %v2646_v37 }
 0x55f   : > { %4303 = vmatprep.subr.bf16.mxu1 %v5598_v27  ;;  %v4260_v27 = vpack.c.bf16 %v2950_v11, %v2948_v20 }
 0x560   : > { %vm2827_vm4 = vcmp.gt.f32.partialorder %v2688_v54, 0.0 }
 0x562   : > { %4305 = vmatpush1.bf16.msra.mxu1 %v5600_v43  ;;  %v3501_v43 = vsel %vm2827_vm4, 1.0, %v5894_v31 }
 0x563   : > { %4307 = vmatprep.subr.bf16.mxu1 %v5608_v21  ;;  %v2834_v21 = vmax.f32 %v2686_v36, 1.0  ;;  %v2876_v13 = vrot.slane %v3501_v43, %v4910_v18  ;;  %v5921_v36 = vld [vmem:[#allocation23_spill] sm:$0xff] }
 0x565   : > { %4423 = vrcp.f32 %v2834_v21 }
 0x566   : > { %4309 = vmatpush1.bf16.msra.mxu1 %v5610_v38  ;;  %v2835_v38 = vmax.f32 %v5738_v51, 1.0 }
 0x567   : > { %4311 = vmatprep.subr.bf16.mxu1 %v5618_v10 }
 0x568   : > { %4425 = vrcp.f32 %v2835_v38 }
 0x56a   : > { %4313 = vmatpush1.bf16.msra.mxu1 %v5620_v29 }
 0x56b   : > { %4315 = vmatprep.subr.bf16.mxu1 %v5628_v5 }
 0x56e   : > { %4317 = vmatpush1.bf16.msra.mxu1 %v5630_v23 }
 0x56f   : > { %4319 = vmatprep.subr.bf16.mxu1 %v5638_v60  ;;  %v4424_v10 = vpop.eup %4423  ;;  %v2836_v60 = vmax.f32 %v2688_v54, 1.0 }
 0x570   : > { %v2838_v5 = vmul.f32 9.0, %v4424_v10 }
 0x571   : > { %4427 = vrcp.f32 %v2836_v60 }
 0x572   : > { %4321 = vmatpush1.bf16.msra.mxu1 %v5640_v59  ;;  %v4426_v29 = vpop.eup %4425  ;;  %v2846_v59 = vrot.slane %v2838_v5, %v4910_v18 }
 0x573   : > { %4323 = vmatprep.subr.bf16.mxu1 %v5650_v39  ;;  %v2840_v23 = vmul.f32 9.0, %v4426_v29  ;;  %v3499_v39 = vsel %vm2825_vm3, 1.0, %v5894_v31 }
 0x574   : > { %v2868_v56 = vrot.slane %v3499_v39, %v4910_v18 }
 0x576   : > { %4325 = vmatpush1.bf16.msra.mxu1 %v5652_v34 }
 0x577   : > { %4327 = vmatprep.subr.bf16.mxu1 %v5659_v17  ;;  %v2850_v17 = vrot.slane %v2840_v23, %v4910_v18  ;;  %v2860_v49 = vpop.permute.xlu0 %2859 }
 0x579   : > { %3504 = vmatmul.mubr.msk.f32.vlgmr.msra.gmra.mrb[18].mxu1 %vm2825_vm3, %v5918_v15 }
 0x57a   : > { %4329 = vmatpush1.bf16.msra.mxu1 %v4256_v0  ;;  %3235 = vmatprep.mubr.f32.mxu1 %v5894_v31 }
 0x57b   : > { %4331 = vmatprep.subr.bf16.mxu1 %v4258_v42  ;;  %v4428_v40 = vpop.eup %4427 }
 0x57c   : > { %v2842_v28 = vmul.f32 9.0, %v4428_v40 }
 0x57e   : > { %4333 = vmatpush1.bf16.msra.mxu1 %v4260_v27  ;;  %v2854_v26 = vrot.slane %v2842_v28, %v4910_v18 }
 0x581   : > { %3505 = vmatmul.mubr.msk.f32.vlgmr.msra.gmra.mrb[18].mxu1 %vm956_vm2, %v3501_v43 }
 0x5f8   : > { %v2778_v34 = vpop.f32.mrb[20].mxu1 }
 0x5f9   : > { %v2855_v55 = vmul.f32 %v2846_v59, %v2778_v34  ;;  %v2780_v3 = vpop.f32.mrb[21].mxu1 }
 0x5fa   : > { %v2856_v45 = vmul.f32 %v2850_v17, %v2780_v3  ;;  %v2782_v52 = vpop.f32.mrb[22].mxu1 }
 0x5fb   : > { %v2862_v14 = vadd.f32 %v2860_v49, %v2855_v55  ;;  %v2783_v33 = vpop.f32.mrb[23].mxu1 }
 0x5fc   : > { %v2863_v58 = vadd.f32 %v2860_v49, %v2856_v45 }
 0x5fd   : > { %v2877_v48 = vmul.f32 %v2868_v56, %v2862_v14 }
 0x5fe   : > { %v2878_v35 = vmul.f32 %v2872_v9, %v2863_v58 }
 0x600   : > { %3019 = vmatprep.mubr.f32.mxu0 %v2878_v35 }
 0x601   : > { %3020 = vmatmul.mubr.f32.vlgmr.msra.gmra.mrb[14].mxu0 %v2877_v48 }
 0x602   : > { %4257 = vmatpush1.bf16.msra.mxu0 %v4256_v0  ;;  %3090 = vmatprep.mubr.f32.mxu0 %v5894_v31  ;;  %v3290_v31 = vunpack.c.l.s4 %v4586_v41 }
 0x603   : > { %4259 = vmatprep.subr.bf16.mxu0 %v4258_v42 }
 0x604   : > { %v3291_v6 = vunpack.c.0.s8 %v3290_v31 }
 0x606   : > { %4261 = vmatpush1.bf16.msra.mxu0 %v4260_v27  ;;  %v3294_v19 = vsub.s32 %v3291_v6, %v5919_v4 }
 0x60c   : > { %v2819_v8 = vpop.f32.mrb[24].mxu1 }
 0x60d   : > { %v2857_v63 = vmul.f32 %v2854_v26, %v2819_v8  ;;  %v3748_v57 = vpop.f32.mrb[25].mxu1 }
 0x60e   : > { %v2822_v61 = vpop.f32.mrb[26].mxu1 }
 0x60f   : > { %v2864_v32 = vadd.f32 %v2860_v49, %v2857_v63  ;;  %v3749_v22 = vpop.f32.mrb[27].mxu1 }
 0x611   : > { %v2879_v44 = vmul.f32 %v2876_v13, %v2864_v32 }
 0x613   : > { %3502 = vmatmul.mubr.msk.f32.vlgmr.msra.gmra.mrb[14].mxu0 %vm956_vm2, %v2879_v44 }
 0x654   : > { %v3237_v46 = vpop.f32.mrb[18].mxu1 }
 0x655   : > { %v3239_v7 = vpop.f32.mrb[19].mxu1 }
 0x656   : > { %v3288_v51 = vcombine.low %v3237_v46, %v3239_v7 }
 0x658   : > { %v3295_v15 = vrot.slane %v3288_v51, %v3294_v19 }
 0x65a   : > { %v3302_v18 = vrot.slane %v3295_v15, %v3294_v19 }
 0x65c   : > { %3308 = vst.msk [vmem:[%s517_s16] sm:$0x3] %vm3306_vm5, %v3302_v18 }
 0x6e6   : > { %v3092_v53 = vpop.f32.mrb[14].mxu0 }
 0x6e7   : > { %v3242_v62 = vsel %vm1246_vm11, %v3092_v53, 0.0  ;;  %v3094_v50 = vpop.f32.mrb[15].mxu0 }
 0x6e8   : > { %v3243_v2 = vsel %vm1246_vm11, %v3094_v50, 0.0 }
 0x6e9   : > { %v3244_v1 = vadd.f32 %v3243_v2, %v3242_v62 }
 0x6eb   : > { %3245 = vadd.xlane.f32.xlu1 %v3244_v1 }
 0x6fc   : > { %3264 = vperm.xlu1 %4414, %v5921_v36  }
 0x778   : > { %v3246_v24 = vpop.xlane.xlu1 %3245 }
 0x779   : > { %v3248_v12 = vmul.f32 0.00390625, %v3246_v24 }
 0x77b   : > { %v3249_v37 = vsub.f32 %v3092_v53, %v3248_v12  ;;  %v3250_v0 = vsub.f32 %v3094_v50, %v3248_v12 }
 0x77c   : > { %v3265_v29 = vpop.permute.xlu1 %3264 }
 0x77d   : > { %v3251_v42 = vmul.f32 %v3249_v37, %v3249_v37  ;;  %v3252_v20 = vmul.f32 %v3250_v0, %v3250_v0 }
 0x77f   : > { %v3253_v11 = vsel %vm1246_vm11, %v3251_v42, 0.0  ;;  %v3254_v54 = vsel %vm1246_vm11, %v3252_v20, 0.0 }
 0x780   : > { %v3255_v27 = vadd.f32 %v3254_v54, %v3253_v11 }
 0x782   : > { %3256 = vadd.xlane.f32.xlu0 %v3255_v27 }
 0x798   : > { %3270 = vperm.xlu0 %4415, %v5921_v36  }
 0x80f   : > { %v3257_v43 = vpop.xlane.xlu0 %3256 }
 0x810   : > { %v3258_v21 = vmul.f32 0.00390625, %v3257_v43 }
 0x812   : > { %v3259_v38 = vadd.f32 1e-05, %v3258_v21 }
 0x814   : > { %4429 = vrsqrt.f32 %v3259_v38 }
 0x817   : > { %v3271_v60 = vpop.permute.xlu0 %3270 }
 0x81e   : > { %v4430_v10 = vpop.eup %4429 }
 0x81f   : > { %v3261_v5 = vmul.f32 %v4430_v10, %v3249_v37  ;;  %v3262_v23 = vmul.f32 %v4430_v10, %v3250_v0 }
 0x821   : > { %v3267_v59 = vmul.f32 %v3265_v29, %v3261_v5  ;;  %v3268_v39 = vmul.f32 %v3265_v29, %v3262_v23 }
 0x823   : > { %v3273_v34 = vadd.f32 %v3271_v60, %v3267_v59  ;;  %v3274_v17 = vadd.f32 %v3271_v60, %v3268_v39 }
 0x825   : > { %vm3275_vm2 = vcmp.ge.f32.partialorder %v3273_v34, 0.0  ;;  %vm3276_vm6 = vcmp.ge.f32.partialorder %v3274_v17, 0.0  ;;  %v3277_v49 = vmul.f32 0.2, %v3273_v34  ;;  %v3278_v47 = vmul.f32 0.2, %v3274_v17 }
 0x827   : > { %v3279_v55 = vsel %vm3275_vm2, %v3273_v34, %v3277_v49  ;;  %v3280_v3 = vsel %vm3276_vm6, %v3274_v17, %v3278_v47 }
 0x828   : > { %v3283_v45 = vcombine.low %v3279_v55, %v3280_v3 }
 0x82a   : > { %3285 = vst [vmem:[%s513_s18] sm:$0xff] %v3283_v45 }
 0x82b PF: > { %s5923_s19 = sld [smem:[#allocation14_spill]] }
 0x831   : > { %s26_s21 = sadd.s32 1, %s5923_s19  }
 0x832   : > { %p23_p6 = scmp.ge.s32.totalorder %s26_s21, 4  }
 0x834   :  { %25 = sbr.rel (!%p23_p6) target bundleno = 5 (0x5), region = 129 }
 0x83b   :  { %3344 = vsyncpa [#allocation5], 1 }
 0x83c   :  { %3346 = vsyncpa [#allocation5 + $0x1], 1 }
 0x83d   :  { %3347 = vsyncpa [#allocation7], 1 }
 0x83e   :  { %3348 = vsyncpa [#allocation10], 1 }

</bundles_post_ra>
